<compile_context>
chip_gen: v5e
topology: v5e:2x2
jax: 0.10.0
libtpu: 0.0.40
codegen_flags: <defaults>
</compile_context>

<pallas_src>
import jax
import jax.numpy as jnp
from jax.experimental import pallas as pl
from jax.experimental.pallas import tpu as pltpu

EPS = 1e-5
ROW_TILE = 512                 # target rows (of B*H*W) per tile, 1x1 stages
ACC_BYTES = 2 * 1024 * 1024    # f32 tap-accumulator budget per 3x3 strip


# --------------------------------------------------------------------------
# host-side helpers
# --------------------------------------------------------------------------
def _round_up(n, m):
    return ((n + m - 1) // m) * m


def _vmem_limit_bytes():
    """Generation-aware VMEM cap: ~3/4 of physical (v5e/v6e 128 MiB -> 96 MiB,
    v7x 64 MiB -> 48 MiB), with a safe fallback if the query is unavailable."""
    try:
        cap = int(pltpu.get_tpu_info().vmem_capacity_bytes)
        return int(min(cap * 3 // 4, 100 * 1024 * 1024))
    except Exception:
        return 48 * 1024 * 1024


def _pick_row_tile(hw, cap=ROW_TILE):
    """Rows of H*W per tile for the 1x1 / residual stages.  Multiple of 128 so
    the fused stage-4 transpose stays lane-dense, dividing H*W; else the whole
    image (block == full dim is always layout-legal)."""
    if hw <= cap:
        return hw
    if hw % 128 == 0:
        for t in range(cap, 127, -128):
            if hw % t == 0:
                return t
    # TODO(synk): very large images with H*W % 128 != 0 fall back to whole-image
    # tiles here; split stage 4's tiling from stages 1/3 if that ever matters.
    return hw


def _pick_strip(H, W, C):
    """Strip height for the 3x3 stage: divides H, keeps the f32 tap accumulator
    ~<= ACC_BYTES, prefers >= 2 strips per image (more grid steps for the v7x
    megacore), and keeps TH*W a multiple of 8 for the (rows, C) output block."""
    target = min(max(1, ACC_BYTES // max(1, W * C * 4)), max(1, H // 2))
    best = None
    for t in range(1, H):
        if H % t == 0 and t <= target and (t * W) % 8 == 0:
            best = t
    return best if best is not None else H


def _bn_fold(stats, count, gamma, beta):
    """Reduce per-tile (sum, sumsq) and fold training-mode BN into scale/shift."""
    st = stats.reshape(-1, 2, stats.shape[-1])
    s = jnp.sum(st[:, 0, :], axis=0)
    ss = jnp.sum(st[:, 1, :], axis=0)
    mean = s / count
    var = jnp.maximum(ss / count - mean * mean, 0.0)
    scale = gamma.reshape(-1) * jax.lax.rsqrt(var + EPS)
    shift = beta.reshape(-1) - mean * scale
    return scale.reshape(1, -1), shift.reshape(1, -1)


# --------------------------------------------------------------------------
# kernels
# --------------------------------------------------------------------------
def _conv1x1_stats_kernel(x_ref, w_ref, h_ref, st_ref):
    """h = x @ w (bf16 MXU inputs, f32 accumulate); bf16 store + f32 stats."""
    h = jnp.dot(x_ref[0], w_ref[...], preferred_element_type=jnp.float32)
    h_ref[0] = h.astype(h_ref.dtype)
    st_ref[...] = jnp.concatenate(
        [jnp.sum(h, axis=0, keepdims=True),
         jnp.sum(h * h, axis=0, keepdims=True)], axis=0)[None]


def _bn_act_conv1x1_stats_kernel(h_ref, s_ref, b_ref, w_ref, o_ref, st_ref):
    """o = relu6(h*scale+shift) @ w; bf16 store + f32 stats of o."""
    a = jnp.clip(h_ref[0].astype(jnp.float32) * s_ref[...] + b_ref[...],
                 0.0, 6.0)
    o = jnp.dot(a.astype(jnp.bfloat16), w_ref[...],
                preferred_element_type=jnp.float32)
    o_ref[0] = o.astype(o_ref.dtype)
    st_ref[...] = jnp.concatenate(
        [jnp.sum(o, axis=0, keepdims=True),
         jnp.sum(o * o, axis=0, keepdims=True)], axis=0)[None]


def _make_conv3x3_kernel(TH, W, C, n_strips):
    """relu6(bn1(h)) -> 3x3 conv (stride 1, pad 1) on one H-strip of one image,
    computed as 9 accumulated K=C MXU matmuls (no materialized im2col)."""

    def kernel(strip_ref, top_ref, bot_ref, s_ref, b_ref, w_ref,
               o_ref, st_ref, pad_ref):
        s = pl.program_id(1)
        scale = s_ref[...].reshape(1, 1, C)
        shift = b_ref[...].reshape(1, 1, C)

        def bn_act(v):
            return jnp.clip(v.astype(jnp.float32) * scale + shift,
                            0.0, 6.0).astype(jnp.bfloat16)

        # interior rows of the zero-padded activation strip
        pad_ref[1:TH + 1, 1:W + 1, :] = bn_act(strip_ref[0])

        # halo rows: neighbouring strip rows, or zeros at the image boundary
        zrow = jnp.zeros((1, W, C), jnp.bfloat16)

        @pl.when(s > 0)
        def _():
            pad_ref[0:1, 1:W + 1, :] = bn_act(top_ref[0])

        @pl.when(s == 0)
        def _():
            pad_ref[0:1, 1:W + 1, :] = zrow

        @pl.when(s < n_strips - 1)
        def _():
            pad_ref[TH + 1:TH + 2, 1:W + 1, :] = bn_act(bot_ref[0])

        @pl.when(s == n_strips - 1)
        def _():
            pad_ref[TH + 1:TH + 2, 1:W + 1, :] = zrow

        # zero halo columns every step (tiny; kept per-step so the kernel stays
        # correct when the parallel grid dims are sharded across TensorCores)
        zcol = jnp.zeros((TH + 2, 1, C), jnp.bfloat16)
        pad_ref[:, 0:1, :] = zcol
        pad_ref[:, W + 1:W + 2, :] = zcol

        # 3x3 conv: accumulate nine per-tap matmuls in f32
        acc = None
        for dy in range(3):
            for dx in range(3):
                t = dy * 3 + dx
                tap = pad_ref[dy:dy + TH, dx:dx + W, :].reshape(TH * W, C)
                p = jnp.dot(tap, w_ref[t * C:(t + 1) * C, :],
                            preferred_element_type=jnp.float32)
                acc = p if acc is None else acc + p

        o_ref[0] = acc.astype(o_ref.dtype)
        st_ref[...] = jnp.concatenate(
            [jnp.sum(acc, axis=0, keepdims=True),
             jnp.sum(acc * acc, axis=0, keepdims=True)], axis=0)[None]

    return kernel


def _bn_residual_t_kernel(h_ref, x_ref, s_ref, b_ref, o_ref):
    """out = relu6(h*scale + shift + x), stored transposed as (C, rows) so the
    final NCHW layout needs no extra XLA transpose pass."""
    o = (h_ref[0].astype(jnp.float32) * s_ref[...] + b_ref[...]
         + x_ref[0].astype(jnp.float32))
    o = jnp.clip(o, 0.0, 6.0)
    o_ref[0] = o.T.astype(o_ref.dtype)


# --------------------------------------------------------------------------
# wrapper
# --------------------------------------------------------------------------
@jax.jit
def bottleneck_forward(x_nchw, params):
    """x_nchw: (B, Cin, H, W) float32. Returns (B, Cout, H, W) float32."""
    w1, g1, b1, w2, g2, b2, w3, g3, b3 = params
    B, Cin, H, W = x_nchw.shape
    width = w1.shape[1]
    Cout = w3.shape[1]
    assert Cin == Cout, "identity residual (downsample=None) needs inplanes == planes*4"

    Cio = _round_up(Cout, 128)      # padded in/out channels (lane-dense)
    Cmid = _round_up(width, 128)    # padded bottleneck width
    HW = H * W
    THW = _pick_row_tile(HW)
    n_hw = HW // THW
    TH = _pick_strip(H, W, Cmid)
    n_strips = H // TH
    count = float(B * HW)

    # NCHW -> (B, H*W, C), channel-padded, stored bf16 (the 1x1 / residual
    # stages are HBM-bandwidth bound; stats stay f32 inside the kernels)
    x_nhwc = jnp.transpose(x_nchw, (0, 2, 3, 1)).astype(jnp.float32)
    x3d = jnp.pad(x_nhwc.reshape(B, HW, Cin),
                  ((0, 0), (0, 0), (0, Cio - Cin))).astype(jnp.bfloat16)

    w1p = jnp.pad(w1, ((0, Cio - Cin), (0, Cmid - width))).astype(jnp.bfloat16)
    w2p = jnp.pad(w2, ((0, 0), (0, 0), (0, Cmid - width), (0, Cmid - width)))
    w2p = w2p.reshape(9 * Cmid, Cmid).astype(jnp.bfloat16)
    w3p = jnp.pad(w3, ((0, Cmid - width), (0, Cio - Cout))).astype(jnp.bfloat16)
    g1p = jnp.pad(g1.reshape(1, -1), ((0, 0), (0, Cmid - width)))
    b1p = jnp.pad(b1.reshape(1, -1), ((0, 0), (0, Cmid - width)))
    g2p = jnp.pad(g2.reshape(1, -1), ((0, 0), (0, Cmid - width)))
    b2p = jnp.pad(b2.reshape(1, -1), ((0, 0), (0, Cmid - width)))
    g3p = jnp.pad(g3.reshape(1, -1), ((0, 0), (0, Cio - Cout)))
    b3p = jnp.pad(b3.reshape(1, -1), ((0, 0), (0, Cio - Cout)))

    cparams = pltpu.CompilerParams(
        dimension_semantics=("parallel", "parallel"),
        vmem_limit_bytes=_vmem_limit_bytes())

    # ---- stage 1: conv1 (1x1) + bn1 partial stats -------------------------
    h1, st1 = pl.pallas_call(
        _conv1x1_stats_kernel,
        out_shape=(jax.ShapeDtypeStruct((B, HW, Cmid), jnp.bfloat16),
                   jax.ShapeDtypeStruct((B * n_hw, 2, Cmid), jnp.float32)),
        grid_spec=pltpu.PrefetchScalarGridSpec(
            num_scalar_prefetch=0, grid=(B, n_hw),
            in_specs=[pl.BlockSpec((1, THW, Cio), lambda b, j: (b, j, 0)),
                      pl.BlockSpec((Cio, Cmid), lambda b, j: (0, 0))],
            out_specs=(pl.BlockSpec((1, THW, Cmid), lambda b, j: (b, j, 0)),
                       pl.BlockSpec((1, 2, Cmid),
                                    lambda b, j: (b * n_hw + j, 0, 0)))),
        compiler_params=cparams,
    )(x3d, w1p)
    sc1, sh1 = _bn_fold(st1, count, g1p, b1p)

    # ---- stage 2: bn1+relu6 -> 3x3 conv (H-strips, per-tap matmuls) -------
    h1_4d = h1.reshape(B, H, W, Cmid)
    h2, st2 = pl.pallas_call(
        _make_conv3x3_kernel(TH, W, Cmid, n_strips),
        out_shape=(jax.ShapeDtypeStruct((B, HW, Cmid), jnp.bfloat16),
                   jax.ShapeDtypeStruct((B * n_strips, 2, Cmid), jnp.float32)),
        grid_spec=pltpu.PrefetchScalarGridSpec(
            num_scalar_prefetch=0, grid=(B, n_strips),
            in_specs=[
                # strip rows
                pl.BlockSpec((1, TH, W, Cmid), lambda b, s: (b, s, 0, 0)),
                # 1-row halo above / below (clamped; zeroed in-kernel at edges)
                pl.BlockSpec((1, 1, W, Cmid),
                             lambda b, s: (b, jnp.maximum(s * TH - 1, 0), 0, 0)),
                pl.BlockSpec((1, 1, W, Cmid),
                             lambda b, s: (b, jnp.minimum((s + 1) * TH, H - 1), 0, 0)),
                pl.BlockSpec((1, Cmid), lambda b, s: (0, 0)),
                pl.BlockSpec((1, Cmid), lambda b, s: (0, 0)),
                pl.BlockSpec((9 * Cmid, Cmid), lambda b, s: (0, 0))],
            out_specs=(pl.BlockSpec((1, TH * W, Cmid), lambda b, s: (b, s, 0)),
                       pl.BlockSpec((1, 2, Cmid),
                                    lambda b, s: (b * n_strips + s, 0, 0))),
            scratch_shapes=[pltpu.VMEM((TH + 2, W + 2, Cmid), jnp.bfloat16)]),
        compiler_params=cparams,
    )(h1_4d, h1_4d, h1_4d, sc1, sh1, w2p)
    sc2, sh2 = _bn_fold(st2, count, g2p, b2p)

    # ---- stage 3: bn2+relu6 -> conv3 (1x1) + bn3 partial stats ------------
    h3, st3 = pl.pallas_call(
        _bn_act_conv1x1_stats_kernel,
        out_shape=(jax.ShapeDtypeStruct((B, HW, Cio), jnp.bfloat16),
                   jax.ShapeDtypeStruct((B * n_hw, 2, Cio), jnp.float32)),
        grid_spec=pltpu.PrefetchScalarGridSpec(
            num_scalar_prefetch=0, grid=(B, n_hw),
            in_specs=[pl.BlockSpec((1, THW, Cmid), lambda b, j: (b, j, 0)),
                      pl.BlockSpec((1, Cmid), lambda b, j: (0, 0)),
                      pl.BlockSpec((1, Cmid), lambda b, j: (0, 0)),
                      pl.BlockSpec((Cmid, Cio), lambda b, j: (0, 0))],
            out_specs=(pl.BlockSpec((1, THW, Cio), lambda b, j: (b, j, 0)),
                       pl.BlockSpec((1, 2, Cio),
                                    lambda b, j: (b * n_hw + j, 0, 0)))),
        compiler_params=cparams,
    )(h2, sc2, sh2, w3p)
    sc3, sh3 = _bn_fold(st3, count, g3p, b3p)

    # ---- stage 4: bn3 + identity residual + relu6, channel-major output ---
    out_t = pl.pallas_call(
        _bn_residual_t_kernel,
        out_shape=jax.ShapeDtypeStruct((B, Cio, HW), jnp.float32),
        grid_spec=pltpu.PrefetchScalarGridSpec(
            num_scalar_prefetch=0, grid=(B, n_hw),
            in_specs=[pl.BlockSpec((1, THW, Cio), lambda b, j: (b, j, 0)),
                      pl.BlockSpec((1, THW, Cio), lambda b, j: (b, j, 0)),
                      pl.BlockSpec((1, Cio), lambda b, j: (0, 0)),
                      pl.BlockSpec((1, Cio), lambda b, j: (0, 0))],
            out_specs=pl.BlockSpec((1, Cio, THW), lambda b, j: (b, 0, j))),
        compiler_params=cparams,
    )(h3, x3d, sc3, sh3)

    # padded channels are exactly zero; slice is a no-op when Cout % 128 == 0
    return out_t[:, :Cout, :].reshape(B, Cout, H, W)


# --------------------------------------------------------------------------
# reference (XLA) -- mirrors the kernels' intentional precision choices:
# bf16 MXU inputs, f32 accumulation, f32 training-mode BN stats computed on the
# conv output *before* the bf16 HBM downcast, bf16-stored intermediates and a
# bf16-stored residual copy of x.
# --------------------------------------------------------------------------
@jax.jit
def bottleneck_ref(x_nchw, params):
    x = jnp.transpose(x_nchw, (0, 2, 3, 1)).astype(jnp.float32)
    w1, g1, b1, w2, g2, b2, w3, g3, b3 = params
    xb = x.astype(jnp.bfloat16)
    relu6 = lambda v: jnp.clip(v, 0.0, 6.0)
    bf = lambda a: a.astype(jnp.bfloat16)

    def bn_fold(h, g, b):
        mean = jnp.mean(h, axis=(0, 1, 2))
        var = jnp.var(h, axis=(0, 1, 2))
        scale = g.reshape(-1) * jax.lax.rsqrt(var + EPS)
        shift = b.reshape(-1) - mean * scale
        return scale, shift

    h1 = jnp.einsum("bhwc,cd->bhwd", xb, bf(w1),
                    preferred_element_type=jnp.float32)
    s1, t1 = bn_fold(h1, g1, b1)
    a1 = bf(relu6(bf(h1).astype(jnp.float32) * s1 + t1))

    h2 = jax.lax.conv_general_dilated(
        a1, bf(w2), window_strides=(1, 1), padding="SAME",
        dimension_numbers=("NHWC", "HWIO", "NHWC"),
        preferred_element_type=jnp.float32)
    s2, t2 = bn_fold(h2, g2, b2)
    a2 = bf(relu6(bf(h2).astype(jnp.float32) * s2 + t2))

    h3 = jnp.einsum("bhwc,cd->bhwd", a2, bf(w3),
                    preferred_element_type=jnp.float32)
    s3, t3 = bn_fold(h3, g3, b3)
    out = relu6(bf(h3).astype(jnp.float32) * s3 + t3 + xb.astype(jnp.float32))
    return jnp.transpose(out, (0, 3, 1, 2))


def make_params(key, inplanes, planes, base_width=64, groups=1):
    width = int(planes * (base_width / 64.0)) * groups
    cout = planes * 4  # Bottleneck.expansion = 4
    ks = jax.random.split(key, 9)
    w1 = jax.random.normal(ks[0], (inplanes, width), jnp.float32) * 0.1
    g1 = 1.0 + 0.1 * jax.random.normal(ks[1], (1, width), jnp.float32)
    b1 = 0.1 * jax.random.normal(ks[2], (1, width), jnp.float32)
    w2 = jax.random.normal(ks[3], (3, 3, width, width), jnp.float32) * 0.1
    g2 = 1.0 + 0.1 * jax.random.normal(ks[4], (1, width), jnp.float32)
    b2 = 0.1 * jax.random.normal(ks[5], (1, width), jnp.float32)
    w3 = jax.random.normal(ks[6], (width, cout), jnp.float32) * 0.1
    g3 = 1.0 + 0.1 * jax.random.normal(ks[7], (1, cout), jnp.float32)
    b3 = 0.1 * jax.random.normal(ks[8], (1, cout), jnp.float32)
    return (w1, g1, b1, w2, g2, b2, w3, g3, b3)


if __name__ == "__main__":
    key = jax.random.PRNGKey(0)
    k_x, k_p = jax.random.split(key)

    # inplanes must equal planes * expansion for the identity residual
    # (downsample=None), exactly as in the PyTorch module's default use.
    B, inplanes, planes, H, W = 2, 16, 4, 16, 16
    x = jax.random.normal(k_x, (B, inplanes, H, W), jnp.float32)  # NCHW
    params = make_params(k_p, inplanes, planes)

    out = jax.block_until_ready(bottleneck_forward(x, params))
    ref = jax.block_until_ready(bottleneck_ref(x, params))

    assert out.shape == (B, planes * 4, H, W), out.shape
    err = float(jnp.max(jnp.abs(out - ref)))
    assert err < 2e-2, err
    print("KERNEL_OK")
</pallas_src>

<mosaic_0001>
module attributes {stable_mosaic.version = 11 : i64} {
  func.func @_conv1x1_stats_kernel(%arg0: i32, %arg1: i32, %arg2: memref<1x256x128xbf16, #tpu.memory_space<vmem>>, %arg3: memref<128x128xbf16, #tpu.memory_space<vmem>>, %arg4: memref<1x256x128xbf16, #tpu.memory_space<vmem>>, %arg5: memref<1x2x128xf32, #tpu.memory_space<vmem>>) attributes {dimension_semantics = [#tpu.dimension_semantics<parallel>, #tpu.dimension_semantics<parallel>], iteration_bounds = array<i64: 2, 1>, scalar_prefetch = 0 : i64, scratch_operands = 0 : i64, tpu.core_type = #tpu.core_type<tc>, window_params = [{transform_indices = @transform_0, window_bounds = array<i64: 1, 256, 128>}, {pipeline_mode = #tpu.pipeline_mode<synchronous>, transform_indices = @transform_1, window_bounds = array<i64: 128, 128>}, {transform_indices = @transform_2, window_bounds = array<i64: 1, 256, 128>}, {transform_indices = @transform_3, window_bounds = array<i64: 1, 2, 128>}]} {
    %c0 = arith.constant 0 : index
    %c0_0 = arith.constant 0 : index
    %c0_1 = arith.constant 0 : index
    %0 = vector.load %arg2[%c0, %c0_0, %c0_1] : memref<1x256x128xbf16, #tpu.memory_space<vmem>>, vector<1x256x128xbf16>
    %1 = vector.shape_cast %0 : vector<1x256x128xbf16> to vector<256x128xbf16>
    %c0_2 = arith.constant 0 : index
    %c0_3 = arith.constant 0 : index
    %2 = vector.load %arg3[%c0_2, %c0_3] : memref<128x128xbf16, #tpu.memory_space<vmem>>, vector<128x128xbf16>
    %cst = arith.constant dense<0.000000e+00> : vector<256x128xf32>
    %3 = tpu.matmul %1, %2, %cst {dimension_numbers = #tpu.dot_dimension_numbers<[1], [0], [0], [1], [0, 0, 1, 1], [], []>} : vector<256x128xbf16>, vector<128x128xbf16>, vector<256x128xf32> -> vector<256x128xf32>
    %4 = arith.truncf %3 : vector<256x128xf32> to vector<256x128xbf16>
    %c0_4 = arith.constant 0 : index
    %c0_5 = arith.constant 0 : index
    %c0_6 = arith.constant 0 : index
    %5 = vector.load %arg4[%c0_4, %c0_5, %c0_6] : memref<1x256x128xbf16, #tpu.memory_space<vmem>>, vector<1x256x128xbf16>
    %6 = vector.shape_cast %5 : vector<1x256x128xbf16> to vector<256x128xbf16>
    %7 = vector.shape_cast %4 : vector<256x128xbf16> to vector<1x256x128xbf16>
    tpu.vector_store %arg4[%c0_4, %c0_5, %c0_6], %7 {strides = array<i32>} : memref<1x256x128xbf16, #tpu.memory_space<vmem>>, vector<1x256x128xbf16>,
    %cst_7 = arith.constant dense<0.000000e+00> : vector<128xf32>
    %8 = vector.multi_reduction <add>, %3, %cst_7 [0] : vector<256x128xf32> to vector<128xf32>
    %9 = vector.shape_cast %8 : vector<128xf32> to vector<1x128xf32>
    %10 = arith.mulf %3, %3 : vector<256x128xf32>
    %cst_8 = arith.constant dense<0.000000e+00> : vector<128xf32>
    %11 = vector.multi_reduction <add>, %10, %cst_8 [0] : vector<256x128xf32> to vector<128xf32>
    %12 = vector.shape_cast %11 : vector<128xf32> to vector<1x128xf32>
    %13 = tpu.concatenate %9, %12 in 0 : vector<1x128xf32>, vector<1x128xf32> -> vector<2x128xf32>
    %14 = vector.shape_cast %13 : vector<2x128xf32> to vector<1x2x128xf32>
    %c0_9 = arith.constant 0 : index
    %c0_10 = arith.constant 0 : index
    %c0_11 = arith.constant 0 : index
    %15 = vector.load %arg5[%c0_9, %c0_10, %c0_11] : memref<1x2x128xf32, #tpu.memory_space<vmem>>, vector<1x2x128xf32>
    tpu.vector_store %arg5[%c0_9, %c0_10, %c0_11], %14 {strides = array<i32>} : memref<1x2x128xf32, #tpu.memory_space<vmem>>, vector<1x2x128xf32>,
    return
  }
  func.func @transform_0(%arg0: i32, %arg1: i32) -> (i32, i32, i32) {
    %c0_i32 = arith.constant 0 : i32
    %c0_i32_0 = arith.constant 0 : i32
    return %arg0, %arg1, %c0_i32 : i32, i32, i32
  }
  func.func @transform_1(%arg0: i32, %arg1: i32) -> (i32, i32) {
    %c0_i32 = arith.constant 0 : i32
    %c0_i32_0 = arith.constant 0 : i32
    %c0_i32_1 = arith.constant 0 : i32
    return %c0_i32, %c0_i32_0 : i32, i32
  }
  func.func @transform_2(%arg0: i32, %arg1: i32) -> (i32, i32, i32) {
    %c0_i32 = arith.constant 0 : i32
    %c0_i32_0 = arith.constant 0 : i32
    return %arg0, %arg1, %c0_i32 : i32, i32, i32
  }
  func.func @transform_3(%arg0: i32, %arg1: i32) -> (i32, i32, i32) {
    %c1_i32 = arith.constant 1 : i32
    %0 = arith.muli %arg0, %c1_i32 : i32
    %1 = arith.addi %0, %arg1 : i32
    %c0_i32 = arith.constant 0 : i32
    %c0_i32_0 = arith.constant 0 : i32
    %c0_i32_1 = arith.constant 0 : i32
    return %1, %c0_i32, %c0_i32_0 : i32, i32, i32
  }
}

module attributes {stable_mosaic.version = 11 : i64} {
  func.func @kernel(%arg0: i32, %arg1: i32, %arg2: memref<1x8x16x128xbf16, #tpu.memory_space<vmem>>, %arg3: memref<1x1x16x128xbf16, #tpu.memory_space<vmem>>, %arg4: memref<1x1x16x128xbf16, #tpu.memory_space<vmem>>, %arg5: memref<1x128xf32, #tpu.memory_space<vmem>>, %arg6: memref<1x128xf32, #tpu.memory_space<vmem>>, %arg7: memref<1152x128xbf16, #tpu.memory_space<vmem>>, %arg8: memref<1x128x128xbf16, #tpu.memory_space<vmem>>, %arg9: memref<1x2x128xf32, #tpu.memory_space<vmem>>, %arg10: memref<10x18x128xbf16, #tpu.memory_space<vmem>>) attributes {dimension_semantics = [#tpu.dimension_semantics<parallel>, #tpu.dimension_semantics<parallel>], iteration_bounds = array<i64: 2, 2>, scalar_prefetch = 0 : i64, scratch_operands = 1 : i64, tpu.core_type = #tpu.core_type<tc>, window_params = [{transform_indices = @transform_0, window_bounds = array<i64: 1, 8, 16, 128>}, {transform_indices = @transform_1, window_bounds = array<i64: 1, 1, 16, 128>}, {transform_indices = @transform_2, window_bounds = array<i64: 1, 1, 16, 128>}, {pipeline_mode = #tpu.pipeline_mode<synchronous>, transform_indices = @transform_3, window_bounds = array<i64: 1, 128>}, {pipeline_mode = #tpu.pipeline_mode<synchronous>, transform_indices = @transform_4, window_bounds = array<i64: 1, 128>}, {pipeline_mode = #tpu.pipeline_mode<synchronous>, transform_indices = @transform_5, window_bounds = array<i64: 1152, 128>}, {transform_indices = @transform_6, window_bounds = array<i64: 1, 128, 128>}, {transform_indices = @transform_7, window_bounds = array<i64: 1, 2, 128>}]} {
    %c0 = arith.constant 0 : index
    %c0_0 = arith.constant 0 : index
    %0 = vector.load %arg5[%c0, %c0_0] : memref<1x128xf32, #tpu.memory_space<vmem>>, vector<1x128xf32>
    %1 = vector.shape_cast %0 : vector<1x128xf32> to vector<1x1x128xf32>
    %c0_1 = arith.constant 0 : index
    %c0_2 = arith.constant 0 : index
    %2 = vector.load %arg6[%c0_1, %c0_2] : memref<1x128xf32, #tpu.memory_space<vmem>>, vector<1x128xf32>
    %3 = vector.shape_cast %2 : vector<1x128xf32> to vector<1x1x128xf32>
    %c0_3 = arith.constant 0 : index
    %c0_4 = arith.constant 0 : index
    %c0_5 = arith.constant 0 : index
    %c0_6 = arith.constant 0 : index
    %4 = vector.load %arg2[%c0_3, %c0_4, %c0_5, %c0_6] : memref<1x8x16x128xbf16, #tpu.memory_space<vmem>>, vector<1x8x16x128xbf16>
    %5 = vector.shape_cast %4 : vector<1x8x16x128xbf16> to vector<8x16x128xbf16>
    %6 = arith.extf %5 : vector<8x16x128xbf16> to vector<8x16x128xf32>
    %7 = vector.broadcast %1 : vector<1x1x128xf32> to vector<8x16x128xf32>
    %8 = arith.mulf %6, %7 : vector<8x16x128xf32>
    %9 = vector.broadcast %3 : vector<1x1x128xf32> to vector<8x16x128xf32>
    %10 = arith.addf %8, %9 : vector<8x16x128xf32>
    %cst = arith.constant 0.000000e+00 : f32
    %cst_7 = arith.constant 6.000000e+00 : f32
    %11 = vector.broadcast %cst : f32 to vector<8x16x128xf32>
    %12 = arith.maximumf %11, %10 : vector<8x16x128xf32>
    %13 = vector.broadcast %cst_7 : f32 to vector<8x16x128xf32>
    %14 = arith.minimumf %13, %12 : vector<8x16x128xf32>
    %15 = arith.truncf %14 : vector<8x16x128xf32> to vector<8x16x128xbf16>
    %c1 = arith.constant 1 : index
    %c1_8 = arith.constant 1 : index
    %c0_9 = arith.constant 0 : index
    %16 = vector.load %arg10[%c1, %c1_8, %c0_9] : memref<10x18x128xbf16, #tpu.memory_space<vmem>>, vector<8x16x128xbf16>
    tpu.vector_store %arg10[%c1, %c1_8, %c0_9], %15 {strides = array<i32>} : memref<10x18x128xbf16, #tpu.memory_space<vmem>>, vector<8x16x128xbf16>,
    %cst_10 = arith.constant 0.000000e+00 : bf16
    %17 = vector.broadcast %cst_10 : bf16 to vector<1x16x128xbf16>
    %c0_i32 = arith.constant 0 : i32
    %18 = arith.cmpi sgt, %arg1, %c0_i32 : i32
    %19 = arith.extui %18 : i1 to i32
    %c0_i32_11 = arith.constant 0 : i32
    %20 = arith.cmpi ne, %19, %c0_i32_11 : i32
    scf.if %20 {
      %c0_76 = arith.constant 0 : index
      %c0_77 = arith.constant 0 : index
      %c0_78 = arith.constant 0 : index
      %c0_79 = arith.constant 0 : index
      %89 = vector.load %arg3[%c0_76, %c0_77, %c0_78, %c0_79] : memref<1x1x16x128xbf16, #tpu.memory_space<vmem>>, vector<1x1x16x128xbf16>
      %90 = vector.shape_cast %89 : vector<1x1x16x128xbf16> to vector<1x16x128xbf16>
      %91 = arith.extf %90 : vector<1x16x128xbf16> to vector<1x16x128xf32>
      %92 = vector.broadcast %1 : vector<1x1x128xf32> to vector<1x16x128xf32>
      %93 = arith.mulf %91, %92 : vector<1x16x128xf32>
      %94 = vector.broadcast %3 : vector<1x1x128xf32> to vector<1x16x128xf32>
      %95 = arith.addf %93, %94 : vector<1x16x128xf32>
      %cst_80 = arith.constant 0.000000e+00 : f32
      %cst_81 = arith.constant 6.000000e+00 : f32
      %96 = vector.broadcast %cst_80 : f32 to vector<1x16x128xf32>
      %97 = arith.maximumf %96, %95 : vector<1x16x128xf32>
      %98 = vector.broadcast %cst_81 : f32 to vector<1x16x128xf32>
      %99 = arith.minimumf %98, %97 : vector<1x16x128xf32>
      %100 = arith.truncf %99 : vector<1x16x128xf32> to vector<1x16x128xbf16>
      %c0_82 = arith.constant 0 : index
      %c1_83 = arith.constant 1 : index
      %c0_84 = arith.constant 0 : index
      %101 = vector.load %arg10[%c0_82, %c1_83, %c0_84] : memref<10x18x128xbf16, #tpu.memory_space<vmem>>, vector<1x16x128xbf16>
      tpu.vector_store %arg10[%c0_82, %c1_83, %c0_84], %100 {strides = array<i32>} : memref<10x18x128xbf16, #tpu.memory_space<vmem>>, vector<1x16x128xbf16>,
    } else {
    }
    %c0_i32_12 = arith.constant 0 : i32
    %21 = arith.cmpi eq, %arg1, %c0_i32_12 : i32
    %22 = arith.extui %21 : i1 to i32
    %c0_i32_13 = arith.constant 0 : i32
    %23 = arith.cmpi ne, %22, %c0_i32_13 : i32
    scf.if %23 {
      %c0_76 = arith.constant 0 : index
      %c1_77 = arith.constant 1 : index
      %c0_78 = arith.constant 0 : index
      %89 = vector.load %arg10[%c0_76, %c1_77, %c0_78] : memref<10x18x128xbf16, #tpu.memory_space<vmem>>, vector<1x16x128xbf16>
      tpu.vector_store %arg10[%c0_76, %c1_77, %c0_78], %17 {strides = array<i32>} : memref<10x18x128xbf16, #tpu.memory_space<vmem>>, vector<1x16x128xbf16>,
    } else {
    }
    %c1_i32 = arith.constant 1 : i32
    %24 = arith.cmpi slt, %arg1, %c1_i32 : i32
    %25 = arith.extui %24 : i1 to i32
    %c0_i32_14 = arith.constant 0 : i32
    %26 = arith.cmpi ne, %25, %c0_i32_14 : i32
    scf.if %26 {
      %c0_76 = arith.constant 0 : index
      %c0_77 = arith.constant 0 : index
      %c0_78 = arith.constant 0 : index
      %c0_79 = arith.constant 0 : index
      %89 = vector.load %arg4[%c0_76, %c0_77, %c0_78, %c0_79] : memref<1x1x16x128xbf16, #tpu.memory_space<vmem>>, vector<1x1x16x128xbf16>
      %90 = vector.shape_cast %89 : vector<1x1x16x128xbf16> to vector<1x16x128xbf16>
      %91 = arith.extf %90 : vector<1x16x128xbf16> to vector<1x16x128xf32>
      %92 = vector.broadcast %1 : vector<1x1x128xf32> to vector<1x16x128xf32>
      %93 = arith.mulf %91, %92 : vector<1x16x128xf32>
      %94 = vector.broadcast %3 : vector<1x1x128xf32> to vector<1x16x128xf32>
      %95 = arith.addf %93, %94 : vector<1x16x128xf32>
      %cst_80 = arith.constant 0.000000e+00 : f32
      %cst_81 = arith.constant 6.000000e+00 : f32
      %96 = vector.broadcast %cst_80 : f32 to vector<1x16x128xf32>
      %97 = arith.maximumf %96, %95 : vector<1x16x128xf32>
      %98 = vector.broadcast %cst_81 : f32 to vector<1x16x128xf32>
      %99 = arith.minimumf %98, %97 : vector<1x16x128xf32>
      %100 = arith.truncf %99 : vector<1x16x128xf32> to vector<1x16x128xbf16>
      %c9 = arith.constant 9 : index
      %c1_82 = arith.constant 1 : index
      %c0_83 = arith.constant 0 : index
      %101 = vector.load %arg10[%c9, %c1_82, %c0_83] : memref<10x18x128xbf16, #tpu.memory_space<vmem>>, vector<1x16x128xbf16>
      tpu.vector_store %arg10[%c9, %c1_82, %c0_83], %100 {strides = array<i32>} : memref<10x18x128xbf16, #tpu.memory_space<vmem>>, vector<1x16x128xbf16>,
    } else {
    }
    %c1_i32_15 = arith.constant 1 : i32
    %27 = arith.cmpi eq, %arg1, %c1_i32_15 : i32
    %28 = arith.extui %27 : i1 to i32
    %c0_i32_16 = arith.constant 0 : i32
    %29 = arith.cmpi ne, %28, %c0_i32_16 : i32
    scf.if %29 {
      %c9 = arith.constant 9 : index
      %c1_76 = arith.constant 1 : index
      %c0_77 = arith.constant 0 : index
      %89 = vector.load %arg10[%c9, %c1_76, %c0_77] : memref<10x18x128xbf16, #tpu.memory_space<vmem>>, vector<1x16x128xbf16>
      tpu.vector_store %arg10[%c9, %c1_76, %c0_77], %17 {strides = array<i32>} : memref<10x18x128xbf16, #tpu.memory_space<vmem>>, vector<1x16x128xbf16>,
    } else {
    }
    %cst_17 = arith.constant 0.000000e+00 : bf16
    %30 = vector.broadcast %cst_17 : bf16 to vector<10x1x128xbf16>
    %c0_18 = arith.constant 0 : index
    %c0_19 = arith.constant 0 : index
    %c0_20 = arith.constant 0 : index
    %31 = vector.load %arg10[%c0_18, %c0_19, %c0_20] : memref<10x18x128xbf16, #tpu.memory_space<vmem>>, vector<10x1x128xbf16>
    tpu.vector_store %arg10[%c0_18, %c0_19, %c0_20], %30 {strides = array<i32>} : memref<10x18x128xbf16, #tpu.memory_space<vmem>>, vector<10x1x128xbf16>,
    %c0_21 = arith.constant 0 : index
    %c17 = arith.constant 17 : index
    %c0_22 = arith.constant 0 : index
    %32 = vector.load %arg10[%c0_21, %c17, %c0_22] : memref<10x18x128xbf16, #tpu.memory_space<vmem>>, vector<10x1x128xbf16>
    tpu.vector_store %arg10[%c0_21, %c17, %c0_22], %30 {strides = array<i32>} : memref<10x18x128xbf16, #tpu.memory_space<vmem>>, vector<10x1x128xbf16>,
    %c0_23 = arith.constant 0 : index
    %c0_24 = arith.constant 0 : index
    %c0_25 = arith.constant 0 : index
    %33 = vector.load %arg10[%c0_23, %c0_24, %c0_25] : memref<10x18x128xbf16, #tpu.memory_space<vmem>>, vector<8x16x128xbf16>
    %34 = vector.shape_cast %33 : vector<8x16x128xbf16> to vector<128x128xbf16>
    %c0_26 = arith.constant 0 : index
    %c0_27 = arith.constant 0 : index
    %35 = vector.load %arg7[%c0_26, %c0_27] : memref<1152x128xbf16, #tpu.memory_space<vmem>>, vector<128x128xbf16>
    %cst_28 = arith.constant dense<0.000000e+00> : vector<128x128xf32>
    %36 = tpu.matmul %34, %35, %cst_28 {dimension_numbers = #tpu.dot_dimension_numbers<[1], [0], [0], [1], [0, 0, 1, 1], [], []>} : vector<128x128xbf16>, vector<128x128xbf16>, vector<128x128xf32> -> vector<128x128xf32>
    %c0_29 = arith.constant 0 : index
    %c1_30 = arith.constant 1 : index
    %c0_31 = arith.constant 0 : index
    %37 = vector.load %arg10[%c0_29, %c1_30, %c0_31] : memref<10x18x128xbf16, #tpu.memory_space<vmem>>, vector<8x16x128xbf16>
    %38 = vector.shape_cast %37 : vector<8x16x128xbf16> to vector<128x128xbf16>
    %c128 = arith.constant 128 : index
    %c0_32 = arith.constant 0 : index
    %39 = vector.load %arg7[%c128, %c0_32] : memref<1152x128xbf16, #tpu.memory_space<vmem>>, vector<128x128xbf16>
    %cst_33 = arith.constant dense<0.000000e+00> : vector<128x128xf32>
    %40 = tpu.matmul %38, %39, %cst_33 {dimension_numbers = #tpu.dot_dimension_numbers<[1], [0], [0], [1], [0, 0, 1, 1], [], []>} : vector<128x128xbf16>, vector<128x128xbf16>, vector<128x128xf32> -> vector<128x128xf32>
    %41 = arith.addf %36, %40 : vector<128x128xf32>
    %c0_34 = arith.constant 0 : index
    %c2 = arith.constant 2 : index
    %c0_35 = arith.constant 0 : index
    %42 = vector.load %arg10[%c0_34, %c2, %c0_35] : memref<10x18x128xbf16, #tpu.memory_space<vmem>>, vector<8x16x128xbf16>
    %43 = vector.shape_cast %42 : vector<8x16x128xbf16> to vector<128x128xbf16>
    %c256 = arith.constant 256 : index
    %c0_36 = arith.constant 0 : index
    %44 = vector.load %arg7[%c256, %c0_36] : memref<1152x128xbf16, #tpu.memory_space<vmem>>, vector<128x128xbf16>
    %cst_37 = arith.constant dense<0.000000e+00> : vector<128x128xf32>
    %45 = tpu.matmul %43, %44, %cst_37 {dimension_numbers = #tpu.dot_dimension_numbers<[1], [0], [0], [1], [0, 0, 1, 1], [], []>} : vector<128x128xbf16>, vector<128x128xbf16>, vector<128x128xf32> -> vector<128x128xf32>
    %46 = arith.addf %41, %45 : vector<128x128xf32>
    %c1_38 = arith.constant 1 : index
    %c0_39 = arith.constant 0 : index
    %c0_40 = arith.constant 0 : index
    %47 = vector.load %arg10[%c1_38, %c0_39, %c0_40] : memref<10x18x128xbf16, #tpu.memory_space<vmem>>, vector<8x16x128xbf16>
    %48 = vector.shape_cast %47 : vector<8x16x128xbf16> to vector<128x128xbf16>
    %c384 = arith.constant 384 : index
    %c0_41 = arith.constant 0 : index
    %49 = vector.load %arg7[%c384, %c0_41] : memref<1152x128xbf16, #tpu.memory_space<vmem>>, vector<128x128xbf16>
    %cst_42 = arith.constant dense<0.000000e+00> : vector<128x128xf32>
    %50 = tpu.matmul %48, %49, %cst_42 {dimension_numbers = #tpu.dot_dimension_numbers<[1], [0], [0], [1], [0, 0, 1, 1], [], []>} : vector<128x128xbf16>, vector<128x128xbf16>, vector<128x128xf32> -> vector<128x128xf32>
    %51 = arith.addf %46, %50 : vector<128x128xf32>
    %c1_43 = arith.constant 1 : index
    %c1_44 = arith.constant 1 : index
    %c0_45 = arith.constant 0 : index
    %52 = vector.load %arg10[%c1_43, %c1_44, %c0_45] : memref<10x18x128xbf16, #tpu.memory_space<vmem>>, vector<8x16x128xbf16>
    %53 = vector.shape_cast %52 : vector<8x16x128xbf16> to vector<128x128xbf16>
    %c512 = arith.constant 512 : index
    %c0_46 = arith.constant 0 : index
    %54 = vector.load %arg7[%c512, %c0_46] : memref<1152x128xbf16, #tpu.memory_space<vmem>>, vector<128x128xbf16>
    %cst_47 = arith.constant dense<0.000000e+00> : vector<128x128xf32>
    %55 = tpu.matmul %53, %54, %cst_47 {dimension_numbers = #tpu.dot_dimension_numbers<[1], [0], [0], [1], [0, 0, 1, 1], [], []>} : vector<128x128xbf16>, vector<128x128xbf16>, vector<128x128xf32> -> vector<128x128xf32>
    %56 = arith.addf %51, %55 : vector<128x128xf32>
    %c1_48 = arith.constant 1 : index
    %c2_49 = arith.constant 2 : index
    %c0_50 = arith.constant 0 : index
    %57 = vector.load %arg10[%c1_48, %c2_49, %c0_50] : memref<10x18x128xbf16, #tpu.memory_space<vmem>>, vector<8x16x128xbf16>
    %58 = vector.shape_cast %57 : vector<8x16x128xbf16> to vector<128x128xbf16>
    %c640 = arith.constant 640 : index
    %c0_51 = arith.constant 0 : index
    %59 = vector.load %arg7[%c640, %c0_51] : memref<1152x128xbf16, #tpu.memory_space<vmem>>, vector<128x128xbf16>
    %cst_52 = arith.constant dense<0.000000e+00> : vector<128x128xf32>
    %60 = tpu.matmul %58, %59, %cst_52 {dimension_numbers = #tpu.dot_dimension_numbers<[1], [0], [0], [1], [0, 0, 1, 1], [], []>} : vector<128x128xbf16>, vector<128x128xbf16>, vector<128x128xf32> -> vector<128x128xf32>
    %61 = arith.addf %56, %60 : vector<128x128xf32>
    %c2_53 = arith.constant 2 : index
    %c0_54 = arith.constant 0 : index
    %c0_55 = arith.constant 0 : index
    %62 = vector.load %arg10[%c2_53, %c0_54, %c0_55] : memref<10x18x128xbf16, #tpu.memory_space<vmem>>, vector<8x16x128xbf16>
    %63 = vector.shape_cast %62 : vector<8x16x128xbf16> to vector<128x128xbf16>
    %c768 = arith.constant 768 : index
    %c0_56 = arith.constant 0 : index
    %64 = vector.load %arg7[%c768, %c0_56] : memref<1152x128xbf16, #tpu.memory_space<vmem>>, vector<128x128xbf16>
    %cst_57 = arith.constant dense<0.000000e+00> : vector<128x128xf32>
    %65 = tpu.matmul %63, %64, %cst_57 {dimension_numbers = #tpu.dot_dimension_numbers<[1], [0], [0], [1], [0, 0, 1, 1], [], []>} : vector<128x128xbf16>, vector<128x128xbf16>, vector<128x128xf32> -> vector<128x128xf32>
    %66 = arith.addf %61, %65 : vector<128x128xf32>
    %c2_58 = arith.constant 2 : index
    %c1_59 = arith.constant 1 : index
    %c0_60 = arith.constant 0 : index
    %67 = vector.load %arg10[%c2_58, %c1_59, %c0_60] : memref<10x18x128xbf16, #tpu.memory_space<vmem>>, vector<8x16x128xbf16>
    %68 = vector.shape_cast %67 : vector<8x16x128xbf16> to vector<128x128xbf16>
    %c896 = arith.constant 896 : index
    %c0_61 = arith.constant 0 : index
    %69 = vector.load %arg7[%c896, %c0_61] : memref<1152x128xbf16, #tpu.memory_space<vmem>>, vector<128x128xbf16>
    %cst_62 = arith.constant dense<0.000000e+00> : vector<128x128xf32>
    %70 = tpu.matmul %68, %69, %cst_62 {dimension_numbers = #tpu.dot_dimension_numbers<[1], [0], [0], [1], [0, 0, 1, 1], [], []>} : vector<128x128xbf16>, vector<128x128xbf16>, vector<128x128xf32> -> vector<128x128xf32>
    %71 = arith.addf %66, %70 : vector<128x128xf32>
    %c2_63 = arith.constant 2 : index
    %c2_64 = arith.constant 2 : index
    %c0_65 = arith.constant 0 : index
    %72 = vector.load %arg10[%c2_63, %c2_64, %c0_65] : memref<10x18x128xbf16, #tpu.memory_space<vmem>>, vector<8x16x128xbf16>
    %73 = vector.shape_cast %72 : vector<8x16x128xbf16> to vector<128x128xbf16>
    %c1024 = arith.constant 1024 : index
    %c0_66 = arith.constant 0 : index
    %74 = vector.load %arg7[%c1024, %c0_66] : memref<1152x128xbf16, #tpu.memory_space<vmem>>, vector<128x128xbf16>
    %cst_67 = arith.constant dense<0.000000e+00> : vector<128x128xf32>
    %75 = tpu.matmul %73, %74, %cst_67 {dimension_numbers = #tpu.dot_dimension_numbers<[1], [0], [0], [1], [0, 0, 1, 1], [], []>} : vector<128x128xbf16>, vector<128x128xbf16>, vector<128x128xf32> -> vector<128x128xf32>
    %76 = arith.addf %71, %75 : vector<128x128xf32>
    %77 = arith.truncf %76 : vector<128x128xf32> to vector<128x128xbf16>
    %c0_68 = arith.constant 0 : index
    %c0_69 = arith.constant 0 : index
    %c0_70 = arith.constant 0 : index
    %78 = vector.load %arg8[%c0_68, %c0_69, %c0_70] : memref<1x128x128xbf16, #tpu.memory_space<vmem>>, vector<1x128x128xbf16>
    %79 = vector.shape_cast %78 : vector<1x128x128xbf16> to vector<128x128xbf16>
    %80 = vector.shape_cast %77 : vector<128x128xbf16> to vector<1x128x128xbf16>
    tpu.vector_store %arg8[%c0_68, %c0_69, %c0_70], %80 {strides = array<i32>} : memref<1x128x128xbf16, #tpu.memory_space<vmem>>, vector<1x128x128xbf16>,
    %cst_71 = arith.constant dense<0.000000e+00> : vector<128xf32>
    %81 = vector.multi_reduction <add>, %76, %cst_71 [0] : vector<128x128xf32> to vector<128xf32>
    %82 = vector.shape_cast %81 : vector<128xf32> to vector<1x128xf32>
    %83 = arith.mulf %76, %76 : vector<128x128xf32>
    %cst_72 = arith.constant dense<0.000000e+00> : vector<128xf32>
    %84 = vector.multi_reduction <add>, %83, %cst_72 [0] : vector<128x128xf32> to vector<128xf32>
    %85 = vector.shape_cast %84 : vector<128xf32> to vector<1x128xf32>
    %86 = tpu.concatenate %82, %85 in 0 : vector<1x128xf32>, vector<1x128xf32> -> vector<2x128xf32>
    %87 = vector.shape_cast %86 : vector<2x128xf32> to vector<1x2x128xf32>
    %c0_73 = arith.constant 0 : index
    %c0_74 = arith.constant 0 : index
    %c0_75 = arith.constant 0 : index
    %88 = vector.load %arg9[%c0_73, %c0_74, %c0_75] : memref<1x2x128xf32, #tpu.memory_space<vmem>>, vector<1x2x128xf32>
    tpu.vector_store %arg9[%c0_73, %c0_74, %c0_75], %87 {strides = array<i32>} : memref<1x2x128xf32, #tpu.memory_space<vmem>>, vector<1x2x128xf32>,
    return
  }
  func.func @transform_0(%arg0: i32, %arg1: i32) -> (i32, i32, i32, i32) {
    %c0_i32 = arith.constant 0 : i32
    %c0_i32_0 = arith.constant 0 : i32
    %c0_i32_1 = arith.constant 0 : i32
    return %arg0, %arg1, %c0_i32, %c0_i32_0 : i32, i32, i32, i32
  }
  func.func @transform_1(%arg0: i32, %arg1: i32) -> (i32, i32, i32, i32) {
    %c8_i32 = arith.constant 8 : i32
    %0 = arith.muli %arg1, %c8_i32 : i32
    %c1_i32 = arith.constant 1 : i32
    %1 = arith.subi %0, %c1_i32 : i32
    %c0_i32 = arith.constant 0 : i32
    %2 = arith.maxsi %1, %c0_i32 : i32
    %c0_i32_0 = arith.constant 0 : i32
    %c0_i32_1 = arith.constant 0 : i32
    %c0_i32_2 = arith.constant 0 : i32
    return %arg0, %2, %c0_i32_0, %c0_i32_1 : i32, i32, i32, i32
  }
  func.func @transform_2(%arg0: i32, %arg1: i32) -> (i32, i32, i32, i32) {
    %c1_i32 = arith.constant 1 : i32
    %0 = arith.addi %arg1, %c1_i32 : i32
    %c8_i32 = arith.constant 8 : i32
    %1 = arith.muli %0, %c8_i32 : i32
    %c15_i32 = arith.constant 15 : i32
    %2 = arith.minsi %1, %c15_i32 : i32
    %c0_i32 = arith.constant 0 : i32
    %c0_i32_0 = arith.constant 0 : i32
    %c0_i32_1 = arith.constant 0 : i32
    return %arg0, %2, %c0_i32, %c0_i32_0 : i32, i32, i32, i32
  }
  func.func @transform_3(%arg0: i32, %arg1: i32) -> (i32, i32) {
    %c0_i32 = arith.constant 0 : i32
    %c0_i32_0 = arith.constant 0 : i32
    %c0_i32_1 = arith.constant 0 : i32
    return %c0_i32, %c0_i32_0 : i32, i32
  }
  func.func @transform_4(%arg0: i32, %arg1: i32) -> (i32, i32) {
    %c0_i32 = arith.constant 0 : i32
    %c0_i32_0 = arith.constant 0 : i32
    %c0_i32_1 = arith.constant 0 : i32
    return %c0_i32, %c0_i32_0 : i32, i32
  }
  func.func @transform_5(%arg0: i32, %arg1: i32) -> (i32, i32) {
    %c0_i32 = arith.constant 0 : i32
    %c0_i32_0 = arith.constant 0 : i32
    %c0_i32_1 = arith.constant 0 : i32
    return %c0_i32, %c0_i32_0 : i32, i32
  }
  func.func @transform_6(%arg0: i32, %arg1: i32) -> (i32, i32, i32) {
    %c0_i32 = arith.constant 0 : i32
    %c0_i32_0 = arith.constant 0 : i32
    return %arg0, %arg1, %c0_i32 : i32, i32, i32
  }
  func.func @transform_7(%arg0: i32, %arg1: i32) -> (i32, i32, i32) {
    %c2_i32 = arith.constant 2 : i32
    %0 = arith.muli %arg0, %c2_i32 : i32
    %1 = arith.addi %0, %arg1 : i32
    %c0_i32 = arith.constant 0 : i32
    %c0_i32_0 = arith.constant 0 : i32
    %c0_i32_1 = arith.constant 0 : i32
    return %1, %c0_i32, %c0_i32_0 : i32, i32, i32
  }
}

module attributes {stable_mosaic.version = 11 : i64} {
  func.func @_bn_act_conv1x1_stats_kernel(%arg0: i32, %arg1: i32, %arg2: memref<1x256x128xbf16, #tpu.memory_space<vmem>>, %arg3: memref<1x128xf32, #tpu.memory_space<vmem>>, %arg4: memref<1x128xf32, #tpu.memory_space<vmem>>, %arg5: memref<128x128xbf16, #tpu.memory_space<vmem>>, %arg6: memref<1x256x128xbf16, #tpu.memory_space<vmem>>, %arg7: memref<1x2x128xf32, #tpu.memory_space<vmem>>) attributes {dimension_semantics = [#tpu.dimension_semantics<parallel>, #tpu.dimension_semantics<parallel>], iteration_bounds = array<i64: 2, 1>, scalar_prefetch = 0 : i64, scratch_operands = 0 : i64, tpu.core_type = #tpu.core_type<tc>, window_params = [{transform_indices = @transform_0, window_bounds = array<i64: 1, 256, 128>}, {pipeline_mode = #tpu.pipeline_mode<synchronous>, transform_indices = @transform_1, window_bounds = array<i64: 1, 128>}, {pipeline_mode = #tpu.pipeline_mode<synchronous>, transform_indices = @transform_2, window_bounds = array<i64: 1, 128>}, {pipeline_mode = #tpu.pipeline_mode<synchronous>, transform_indices = @transform_3, window_bounds = array<i64: 128, 128>}, {transform_indices = @transform_4, window_bounds = array<i64: 1, 256, 128>}, {transform_indices = @transform_5, window_bounds = array<i64: 1, 2, 128>}]} {
    %c0 = arith.constant 0 : index
    %c0_0 = arith.constant 0 : index
    %c0_1 = arith.constant 0 : index
    %0 = vector.load %arg2[%c0, %c0_0, %c0_1] : memref<1x256x128xbf16, #tpu.memory_space<vmem>>, vector<1x256x128xbf16>
    %1 = vector.shape_cast %0 : vector<1x256x128xbf16> to vector<256x128xbf16>
    %2 = arith.extf %1 : vector<256x128xbf16> to vector<256x128xf32>
    %c0_2 = arith.constant 0 : index
    %c0_3 = arith.constant 0 : index
    %3 = vector.load %arg3[%c0_2, %c0_3] : memref<1x128xf32, #tpu.memory_space<vmem>>, vector<1x128xf32>
    %4 = vector.broadcast %3 : vector<1x128xf32> to vector<256x128xf32>
    %5 = arith.mulf %2, %4 : vector<256x128xf32>
    %c0_4 = arith.constant 0 : index
    %c0_5 = arith.constant 0 : index
    %6 = vector.load %arg4[%c0_4, %c0_5] : memref<1x128xf32, #tpu.memory_space<vmem>>, vector<1x128xf32>
    %7 = vector.broadcast %6 : vector<1x128xf32> to vector<256x128xf32>
    %8 = arith.addf %5, %7 : vector<256x128xf32>
    %cst = arith.constant 0.000000e+00 : f32
    %cst_6 = arith.constant 6.000000e+00 : f32
    %9 = vector.broadcast %cst : f32 to vector<256x128xf32>
    %10 = arith.maximumf %9, %8 : vector<256x128xf32>
    %11 = vector.broadcast %cst_6 : f32 to vector<256x128xf32>
    %12 = arith.minimumf %11, %10 : vector<256x128xf32>
    %13 = arith.truncf %12 : vector<256x128xf32> to vector<256x128xbf16>
    %c0_7 = arith.constant 0 : index
    %c0_8 = arith.constant 0 : index
    %14 = vector.load %arg5[%c0_7, %c0_8] : memref<128x128xbf16, #tpu.memory_space<vmem>>, vector<128x128xbf16>
    %cst_9 = arith.constant dense<0.000000e+00> : vector<256x128xf32>
    %15 = tpu.matmul %13, %14, %cst_9 {dimension_numbers = #tpu.dot_dimension_numbers<[1], [0], [0], [1], [0, 0, 1, 1], [], []>} : vector<256x128xbf16>, vector<128x128xbf16>, vector<256x128xf32> -> vector<256x128xf32>
    %16 = arith.truncf %15 : vector<256x128xf32> to vector<256x128xbf16>
    %c0_10 = arith.constant 0 : index
    %c0_11 = arith.constant 0 : index
    %c0_12 = arith.constant 0 : index
    %17 = vector.load %arg6[%c0_10, %c0_11, %c0_12] : memref<1x256x128xbf16, #tpu.memory_space<vmem>>, vector<1x256x128xbf16>
    %18 = vector.shape_cast %17 : vector<1x256x128xbf16> to vector<256x128xbf16>
    %19 = vector.shape_cast %16 : vector<256x128xbf16> to vector<1x256x128xbf16>
    tpu.vector_store %arg6[%c0_10, %c0_11, %c0_12], %19 {strides = array<i32>} : memref<1x256x128xbf16, #tpu.memory_space<vmem>>, vector<1x256x128xbf16>,
    %cst_13 = arith.constant dense<0.000000e+00> : vector<128xf32>
    %20 = vector.multi_reduction <add>, %15, %cst_13 [0] : vector<256x128xf32> to vector<128xf32>
    %21 = vector.shape_cast %20 : vector<128xf32> to vector<1x128xf32>
    %22 = arith.mulf %15, %15 : vector<256x128xf32>
    %cst_14 = arith.constant dense<0.000000e+00> : vector<128xf32>
    %23 = vector.multi_reduction <add>, %22, %cst_14 [0] : vector<256x128xf32> to vector<128xf32>
    %24 = vector.shape_cast %23 : vector<128xf32> to vector<1x128xf32>
    %25 = tpu.concatenate %21, %24 in 0 : vector<1x128xf32>, vector<1x128xf32> -> vector<2x128xf32>
    %26 = vector.shape_cast %25 : vector<2x128xf32> to vector<1x2x128xf32>
    %c0_15 = arith.constant 0 : index
    %c0_16 = arith.constant 0 : index
    %c0_17 = arith.constant 0 : index
    %27 = vector.load %arg7[%c0_15, %c0_16, %c0_17] : memref<1x2x128xf32, #tpu.memory_space<vmem>>, vector<1x2x128xf32>
    tpu.vector_store %arg7[%c0_15, %c0_16, %c0_17], %26 {strides = array<i32>} : memref<1x2x128xf32, #tpu.memory_space<vmem>>, vector<1x2x128xf32>,
    return
  }
  func.func @transform_0(%arg0: i32, %arg1: i32) -> (i32, i32, i32) {
    %c0_i32 = arith.constant 0 : i32
    %c0_i32_0 = arith.constant 0 : i32
    return %arg0, %arg1, %c0_i32 : i32, i32, i32
  }
  func.func @transform_1(%arg0: i32, %arg1: i32) -> (i32, i32) {
    %c0_i32 = arith.constant 0 : i32
    %c0_i32_0 = arith.constant 0 : i32
    %c0_i32_1 = arith.constant 0 : i32
    return %c0_i32, %c0_i32_0 : i32, i32
  }
  func.func @transform_2(%arg0: i32, %arg1: i32) -> (i32, i32) {
    %c0_i32 = arith.constant 0 : i32
    %c0_i32_0 = arith.constant 0 : i32
    %c0_i32_1 = arith.constant 0 : i32
    return %c0_i32, %c0_i32_0 : i32, i32
  }
  func.func @transform_3(%arg0: i32, %arg1: i32) -> (i32, i32) {
    %c0_i32 = arith.constant 0 : i32
    %c0_i32_0 = arith.constant 0 : i32
    %c0_i32_1 = arith.constant 0 : i32
    return %c0_i32, %c0_i32_0 : i32, i32
  }
  func.func @transform_4(%arg0: i32, %arg1: i32) -> (i32, i32, i32) {
    %c0_i32 = arith.constant 0 : i32
    %c0_i32_0 = arith.constant 0 : i32
    return %arg0, %arg1, %c0_i32 : i32, i32, i32
  }
  func.func @transform_5(%arg0: i32, %arg1: i32) -> (i32, i32, i32) {
    %c1_i32 = arith.constant 1 : i32
    %0 = arith.muli %arg0, %c1_i32 : i32
    %1 = arith.addi %0, %arg1 : i32
    %c0_i32 = arith.constant 0 : i32
    %c0_i32_0 = arith.constant 0 : i32
    %c0_i32_1 = arith.constant 0 : i32
    return %1, %c0_i32, %c0_i32_0 : i32, i32, i32
  }
}

module attributes {stable_mosaic.version = 11 : i64} {
  func.func @_bn_residual_t_kernel(%arg0: i32, %arg1: i32, %arg2: memref<1x256x128xbf16, #tpu.memory_space<vmem>>, %arg3: memref<1x256x128xbf16, #tpu.memory_space<vmem>>, %arg4: memref<1x128xf32, #tpu.memory_space<vmem>>, %arg5: memref<1x128xf32, #tpu.memory_space<vmem>>, %arg6: memref<1x128x256xf32, #tpu.memory_space<vmem>>) attributes {dimension_semantics = [#tpu.dimension_semantics<parallel>, #tpu.dimension_semantics<parallel>], iteration_bounds = array<i64: 2, 1>, scalar_prefetch = 0 : i64, scratch_operands = 0 : i64, tpu.core_type = #tpu.core_type<tc>, window_params = [{transform_indices = @transform_0, window_bounds = array<i64: 1, 256, 128>}, {transform_indices = @transform_1, window_bounds = array<i64: 1, 256, 128>}, {pipeline_mode = #tpu.pipeline_mode<synchronous>, transform_indices = @transform_2, window_bounds = array<i64: 1, 128>}, {pipeline_mode = #tpu.pipeline_mode<synchronous>, transform_indices = @transform_3, window_bounds = array<i64: 1, 128>}, {transform_indices = @transform_4, window_bounds = array<i64: 1, 128, 256>}]} {
    %c0 = arith.constant 0 : index
    %c0_0 = arith.constant 0 : index
    %c0_1 = arith.constant 0 : index
    %0 = vector.load %arg2[%c0, %c0_0, %c0_1] : memref<1x256x128xbf16, #tpu.memory_space<vmem>>, vector<1x256x128xbf16>
    %1 = vector.shape_cast %0 : vector<1x256x128xbf16> to vector<256x128xbf16>
    %2 = arith.extf %1 : vector<256x128xbf16> to vector<256x128xf32>
    %c0_2 = arith.constant 0 : index
    %c0_3 = arith.constant 0 : index
    %3 = vector.load %arg4[%c0_2, %c0_3] : memref<1x128xf32, #tpu.memory_space<vmem>>, vector<1x128xf32>
    %4 = vector.broadcast %3 : vector<1x128xf32> to vector<256x128xf32>
    %5 = arith.mulf %2, %4 : vector<256x128xf32>
    %c0_4 = arith.constant 0 : index
    %c0_5 = arith.constant 0 : index
    %6 = vector.load %arg5[%c0_4, %c0_5] : memref<1x128xf32, #tpu.memory_space<vmem>>, vector<1x128xf32>
    %7 = vector.broadcast %6 : vector<1x128xf32> to vector<256x128xf32>
    %8 = arith.addf %5, %7 : vector<256x128xf32>
    %c0_6 = arith.constant 0 : index
    %c0_7 = arith.constant 0 : index
    %c0_8 = arith.constant 0 : index
    %9 = vector.load %arg3[%c0_6, %c0_7, %c0_8] : memref<1x256x128xbf16, #tpu.memory_space<vmem>>, vector<1x256x128xbf16>
    %10 = vector.shape_cast %9 : vector<1x256x128xbf16> to vector<256x128xbf16>
    %11 = arith.extf %10 : vector<256x128xbf16> to vector<256x128xf32>
    %12 = arith.addf %8, %11 : vector<256x128xf32>
    %cst = arith.constant 0.000000e+00 : f32
    %cst_9 = arith.constant 6.000000e+00 : f32
    %13 = vector.broadcast %cst : f32 to vector<256x128xf32>
    %14 = arith.maximumf %13, %12 : vector<256x128xf32>
    %15 = vector.broadcast %cst_9 : f32 to vector<256x128xf32>
    %16 = arith.minimumf %15, %14 : vector<256x128xf32>
    %17 = tpu.transpose %16, [1, 0] : vector<256x128xf32> -> vector<128x256xf32>
    %c0_10 = arith.constant 0 : index
    %c0_11 = arith.constant 0 : index
    %c0_12 = arith.constant 0 : index
    %18 = vector.load %arg6[%c0_10, %c0_11, %c0_12] : memref<1x128x256xf32, #tpu.memory_space<vmem>>, vector<1x128x256xf32>
    %19 = vector.shape_cast %18 : vector<1x128x256xf32> to vector<128x256xf32>
    %20 = vector.shape_cast %17 : vector<128x256xf32> to vector<1x128x256xf32>
    tpu.vector_store %arg6[%c0_10, %c0_11, %c0_12], %20 {strides = array<i32>} : memref<1x128x256xf32, #tpu.memory_space<vmem>>, vector<1x128x256xf32>,
    return
  }
  func.func @transform_0(%arg0: i32, %arg1: i32) -> (i32, i32, i32) {
    %c0_i32 = arith.constant 0 : i32
    %c0_i32_0 = arith.constant 0 : i32
    return %arg0, %arg1, %c0_i32 : i32, i32, i32
  }
  func.func @transform_1(%arg0: i32, %arg1: i32) -> (i32, i32, i32) {
    %c0_i32 = arith.constant 0 : i32
    %c0_i32_0 = arith.constant 0 : i32
    return %arg0, %arg1, %c0_i32 : i32, i32, i32
  }
  func.func @transform_2(%arg0: i32, %arg1: i32) -> (i32, i32) {
    %c0_i32 = arith.constant 0 : i32
    %c0_i32_0 = arith.constant 0 : i32
    %c0_i32_1 = arith.constant 0 : i32
    return %c0_i32, %c0_i32_0 : i32, i32
  }
  func.func @transform_3(%arg0: i32, %arg1: i32) -> (i32, i32) {
    %c0_i32 = arith.constant 0 : i32
    %c0_i32_0 = arith.constant 0 : i32
    %c0_i32_1 = arith.constant 0 : i32
    return %c0_i32, %c0_i32_0 : i32, i32
  }
  func.func @transform_4(%arg0: i32, %arg1: i32) -> (i32, i32, i32) {
    %c0_i32 = arith.constant 0 : i32
    %c0_i32_0 = arith.constant 0 : i32
    return %arg0, %c0_i32, %arg1 : i32, i32, i32
  }
}

</mosaic_0001>

<bundles_post_ra>
// kernel: bottleneck_forward.4
= control target key start
LH: loop header
LB: loop body
LE: loop exit
PB: predicated region body
PF: predicated region fallthrough
CT: control target
= control target key end

     0   :  { %s1122_s12 = smov 0   ;;  %s1124_s13 = smov 0   ;;  %s1344_s0 = inlined_call_operand.vmem [shape: bf16[2,256,128], index: 0, kind: input, shape index: {}]   ;;  %s1345_s1 = inlined_call_operand.vmem [shape: bf16[128,128], index: 1, kind: input, shape index: {}]   ;;  %s1346_s2 = inlined_call_operand.vmem [shape: bf16[2,256,128], index: 2, kind: output, shape index: {0}]   ;;  %s1347_s3 = inlined_call_operand.vmem [shape: f32[2,2,128], index: 3, kind: output, shape index: {1}]  }
   0x1   :  { %s1126_s14 = smov 0  }
   0x2 LB: > { %s26_s15 = sadd.s32 1, %s1096_s13  ;;  %p805_p0 = scmp.ge.s32.totalorder %s1100_s14, 1  ;;  %s1100_s14 = sphi %s1126_s14, %s14_s14   ;;  %s1096_s13 = sphi %s1124_s13, %s1349_s13   ;;  %s1092_s12 = sphi %s1122_s12, %s1348_s12  }
   0x3   : > { %p28_p1 = scmp.ge.s32.totalorder %s26_s15, 2  ;;  %p163_p2 = scmp.lt.s32.totalorder %s1100_s14, 3 }
   0x5   : > { %s1351_s15 = smov (%p28_p1, %s26_s15), 0  ;;  %p164_p3 = pnand %p805_p0, %p163_p2 }
   0x6   : > { %p201_p4 = scmp.lt.s32.totalorder (!%p164_p3), %s1092_s12, 1 }
   0x7   : > { %167 = sbr.rel (%p164_p3) target bundleno = 292 (0x124), region = 28 }
   0xc   : > { %v934_v0 = vld [vmem:[%s1345_s1 + $0x38] sm:$0xff]  ;;  %v933_v1 = vld [vmem:[%s1345_s1 + $0x30] sm:$0xff]  ;;  %v932_v2 = vld [vmem:[%s1345_s1 + $0x28] sm:$0xff]  ;;  %s1353_s12 = smov (!%p201_p4, %s1092_s12), 1  ;;  %vm677_vm0 = vcmask 1040384  }
   0xd   : > { %418 = vmatpush.bf16.msra.mxu0 %v934_v0  ;;  %1030 = vmatpush.bf16.msra.mxu1 %v934_v0  ;;  %v931_v3 = vld [vmem:[%s1345_s1 + $0x20] sm:$0xff]  ;;  %v930_v4 = vld [vmem:[%s1345_s1 + $0x18] sm:$0xff]  ;;  %v929_v5 = vld [vmem:[%s1345_s1 + $0x10] sm:$0xff]  ;;  %s909_s30 = sshll.u32 %s1353_s12, 7  ;;  %s810_s16 = sshll.u32 %s1353_s12, 1 }
   0xe   : > { %1031 = vmatpush.bf16.msra.mxu2 %v934_v0  ;;  %1032 = vmatpush.bf16.msra.mxu3 %v934_v0  ;;  %v928_v6 = vld [vmem:[%s1345_s1 + $0x8] sm:$0xff]  ;;  %v927_v7 = vld [vmem:[%s1345_s1] sm:$0xff]  ;;  %s1176_s8 = scalar_lea.vmem %s1344_s0, %s909_s30  ;;  %s1203_s11 = scalar_lea.vmem %s1346_s2, %s909_s30 }
   0xf   : > { %v911_v8 = vld [vmem:[%s1176_s8] sm:$0xff]  ;;  %v912_v12 = vld [vmem:[%s1176_s8 + $0x8] sm:$0xff]  ;;  %v913_v16 = vld [vmem:[%s1176_s8 + $0x10] sm:$0xff]  ;;  %s224_s19 = scalar_lea.vmem %s1347_s3, %s810_s16 }
  0x10   : > { %v915_v9 = vld [vmem:[%s1176_s8 + $0x20] sm:$0xff]  ;;  %v916_v13 = vld [vmem:[%s1176_s8 + $0x28] sm:$0xff]  ;;  %v917_v17 = vld [vmem:[%s1176_s8 + $0x30] sm:$0xff] }
  0x11   : > { %419 = vmatpush.bf16.msra.mxu0 %v933_v1  ;;  %1033 = vmatpush.bf16.msra.mxu1 %v933_v1  ;;  %v919_v10 = vld [vmem:[%s1176_s8 + $0x40] sm:$0xff]  ;;  %v920_v14 = vld [vmem:[%s1176_s8 + $0x48] sm:$0xff]  ;;  %v921_v18 = vld [vmem:[%s1176_s8 + $0x50] sm:$0xff] }
  0x12   : > { %1034 = vmatpush.bf16.msra.mxu2 %v933_v1  ;;  %1035 = vmatpush.bf16.msra.mxu3 %v933_v1  ;;  %v923_v11 = vld [vmem:[%s1176_s8 + $0x60] sm:$0xff]  ;;  %v924_v15 = vld [vmem:[%s1176_s8 + $0x68] sm:$0xff]  ;;  %v925_v19 = vld [vmem:[%s1176_s8 + $0x70] sm:$0xff] }
  0x13   : > { %v914_v20 = vld [vmem:[%s1176_s8 + $0x18] sm:$0xff] }
  0x14   : > { %v918_v21 = vld [vmem:[%s1176_s8 + $0x38] sm:$0xff] }
  0x15   : > { %420 = vmatpush.bf16.msra.mxu0 %v932_v2  ;;  %1036 = vmatpush.bf16.msra.mxu1 %v932_v2  ;;  %v922_v22 = vld [vmem:[%s1176_s8 + $0x58] sm:$0xff] }
  0x16   : > { %1037 = vmatpush.bf16.msra.mxu2 %v932_v2  ;;  %1038 = vmatpush.bf16.msra.mxu3 %v932_v2  ;;  %v926_v23 = vld [vmem:[%s1176_s8 + $0x78] sm:$0xff] }
  0x19   : > { %421 = vmatpush.bf16.msra.mxu0 %v931_v3  ;;  %1039 = vmatpush.bf16.msra.mxu1 %v931_v3 }
  0x1a   : > { %1040 = vmatpush.bf16.msra.mxu2 %v931_v3  ;;  %1041 = vmatpush.bf16.msra.mxu3 %v931_v3 }
  0x1d   : > { %422 = vmatpush.bf16.msra.mxu0 %v930_v4  ;;  %1042 = vmatpush.bf16.msra.mxu1 %v930_v4 }
  0x1e   : > { %1043 = vmatpush.bf16.msra.mxu2 %v930_v4  ;;  %1044 = vmatpush.bf16.msra.mxu3 %v930_v4 }
  0x21   : > { %423 = vmatpush.bf16.msra.mxu0 %v929_v5  ;;  %1045 = vmatpush.bf16.msra.mxu1 %v929_v5 }
  0x22   : > { %1046 = vmatpush.bf16.msra.mxu2 %v929_v5  ;;  %1047 = vmatpush.bf16.msra.mxu3 %v929_v5 }
  0x25   : > { %424 = vmatpush.bf16.msra.mxu0 %v928_v6  ;;  %1048 = vmatpush.bf16.msra.mxu1 %v928_v6 }
  0x26   : > { %1049 = vmatpush.bf16.msra.mxu2 %v928_v6  ;;  %1050 = vmatpush.bf16.msra.mxu3 %v928_v6 }
  0x29   : > { %425 = vmatpush.bf16.msra.mxu0 %v927_v7  ;;  %1051 = vmatpush.bf16.msra.mxu1 %v927_v7 }
  0x2a   : > { %1052 = vmatpush.bf16.msra.mxu2 %v927_v7  ;;  %1053 = vmatpush.bf16.msra.mxu3 %v927_v7 }
  0x2c   : > { %426 = vmatmul.bf16.vlgmr.msra.gmra.mxu0 %v911_v8  ;;  %446 = vmatmul.bf16.vlgmr.msra.gmra.mxu1 %v915_v9 }
  0x2d   : > { %466 = vmatmul.bf16.vlgmr.msra.gmra.mxu2 %v919_v10  ;;  %486 = vmatmul.bf16.vlgmr.msra.gmra.mxu3 %v923_v11 }
  0x3c   : > { %431 = vmatmul.bf16.gmra.mxu0 %v912_v12  ;;  %451 = vmatmul.bf16.gmra.mxu1 %v916_v13 }
  0x3d   : > { %471 = vmatmul.bf16.gmra.mxu2 %v920_v14  ;;  %491 = vmatmul.bf16.gmra.mxu3 %v924_v15 }
  0x4c   : > { %436 = vmatmul.bf16.gmra.mxu0 %v913_v16  ;;  %456 = vmatmul.bf16.gmra.mxu1 %v917_v17 }
  0x4d   : > { %476 = vmatmul.bf16.gmra.mxu2 %v921_v18  ;;  %496 = vmatmul.bf16.gmra.mxu3 %v925_v19 }
  0x5c   : > { %441 = vmatmul.bf16.gmra.mxu0 %v914_v20  ;;  %461 = vmatmul.bf16.gmra.mxu1 %v918_v21 }
  0x5d   : > { %481 = vmatmul.bf16.gmra.mxu2 %v922_v22  ;;  %501 = vmatmul.bf16.gmra.mxu3 %v926_v23 }
  0xa9   : > { %v427_v24 = vpop.f32.mrf.mxu0  ;;  %v1194_v25 = vpop.f32.mrf.mxu1 }
  0xaa   : > { %v608_v57 = vmul.f32 %v427_v24, %v427_v24 }
  0xb0   : > { %v1196_v26 = vpop.f32.mrf.mxu2  ;;  %v1209_v31 = vpop.f32.mrf.mxu3 }
  0xb1   : > { %v429_v27 = vpop.f32.mrf.mxu0  ;;  %v1205_v28 = vpop.f32.mrf.mxu1 }
  0xb2   : > { %v938_v29 = vpack.c.bf16 %v429_v27, %v427_v24  ;;  %v958_v30 = vpack.c.bf16 %v1205_v28, %v1194_v25  ;;  %v609_v56 = vmul.f32 %v429_v27, %v429_v27  ;;  %v571_v59 = vadd.f32 %v429_v27, %v427_v24 }
  0xb3   : > { %v616_v27 = vmul.f32 %v1194_v25, %v1194_v25 }
  0xb4   : > { %939 = vst [vmem:[%s1203_s11] sm:$0xff] %v938_v29   ;;  %v640_v60 = vadd.f32 %v609_v56, %v608_v57 }
  0xb5   : > { %1018 = vst [vmem:[%s1203_s11 + $0x20] sm:$0xff] %v958_v30  }
  0xb8   : > { %v1213_v32 = vpop.f32.mrf.mxu2  ;;  %v1219_v36 = vpop.f32.mrf.mxu3 }
  0xb9   : > { %v432_v33 = vpop.f32.mrf.mxu0  ;;  %v1215_v34 = vpop.f32.mrf.mxu1  ;;  %v978_v35 = vpack.c.bf16 %v1213_v32, %v1196_v26  ;;  %v998_v37 = vpack.c.bf16 %v1219_v36, %v1209_v31 }
  0xba   : > { %v610_v58 = vmul.f32 %v432_v33, %v432_v33  ;;  %v572_v62 = vadd.f32 %v571_v59, %v432_v33 }
  0xbb   : > { %1022 = vst [vmem:[%s1203_s11 + $0x40] sm:$0xff] %v978_v35  }
  0xbc   : > { %1026 = vst [vmem:[%s1203_s11 + $0x60] sm:$0xff] %v998_v37   ;;  %v641_v0 = vadd.f32 %v640_v60, %v610_v58 }
  0xc0   : > { %v1225_v38 = vpop.f32.mrf.mxu2  ;;  %v1231_v43 = vpop.f32.mrf.mxu3 }
  0xc1   : > { %v434_v39 = vpop.f32.mrf.mxu0  ;;  %v1227_v40 = vpop.f32.mrf.mxu1 }
  0xc2   : > { %v943_v41 = vpack.c.bf16 %v434_v39, %v432_v33  ;;  %v963_v42 = vpack.c.bf16 %v1227_v40, %v1215_v34  ;;  %v611_v61 = vmul.f32 %v434_v39, %v434_v39  ;;  %v573_v5 = vadd.f32 %v572_v62, %v434_v39 }
  0xc3   : > { %v617_v33 = vmul.f32 %v1205_v28, %v1205_v28  ;;  %v618_v39 = vmul.f32 %v1215_v34, %v1215_v34 }
  0xc4   : > { %1015 = vst [vmem:[%s1203_s11 + $0x8] sm:$0xff] %v943_v41   ;;  %v642_v7 = vadd.f32 %v641_v0, %v611_v61 }
  0xc5   : > { %1019 = vst [vmem:[%s1203_s11 + $0x28] sm:$0xff] %v963_v42  }
  0xc8   : > { %v1235_v44 = vpop.f32.mrf.mxu2  ;;  %v1241_v48 = vpop.f32.mrf.mxu3 }
  0xc9   : > { %v437_v45 = vpop.f32.mrf.mxu0  ;;  %v1237_v46 = vpop.f32.mrf.mxu1  ;;  %v983_v47 = vpack.c.bf16 %v1235_v44, %v1225_v38  ;;  %v1003_v49 = vpack.c.bf16 %v1241_v48, %v1231_v43 }
  0xca   : > { %v612_v1 = vmul.f32 %v437_v45, %v437_v45  ;;  %v574_v10 = vadd.f32 %v573_v5, %v437_v45  ;;  %v625_v5 = vmul.f32 %v1213_v32, %v1213_v32 }
  0xcb   : > { %1023 = vst [vmem:[%s1203_s11 + $0x48] sm:$0xff] %v983_v47  }
  0xcc   : > { %1027 = vst [vmem:[%s1203_s11 + $0x68] sm:$0xff] %v1003_v49   ;;  %v643_v11 = vadd.f32 %v642_v7, %v612_v1 }
  0xd0   : > { %v1247_v50 = vpop.f32.mrf.mxu2  ;;  %v1253_v55 = vpop.f32.mrf.mxu3 }
  0xd1   : > { %v439_v51 = vpop.f32.mrf.mxu0  ;;  %v1249_v52 = vpop.f32.mrf.mxu1 }
  0xd2   : > { %v948_v53 = vpack.c.bf16 %v439_v51, %v437_v45  ;;  %v968_v54 = vpack.c.bf16 %v1249_v52, %v1237_v46  ;;  %v613_v8 = vmul.f32 %v439_v51, %v439_v51  ;;  %v575_v13 = vadd.f32 %v574_v10, %v439_v51 }
  0xd3   : > { %v627_v10 = vmul.f32 %v1235_v44, %v1235_v44 }
  0xd4   : > { %1016 = vst [vmem:[%s1203_s11 + $0x10] sm:$0xff] %v948_v53   ;;  %v644_v14 = vadd.f32 %v643_v11, %v613_v8 }
  0xd5   : > { %1020 = vst [vmem:[%s1203_s11 + $0x30] sm:$0xff] %v968_v54   ;;  %v620_v54 = vmul.f32 %v1237_v46, %v1237_v46 }
  0xd8   : > { %v1257_v63 = vpop.f32.mrf.mxu2  ;;  %v1261_v6 = vpop.f32.mrf.mxu3 }
  0xd9   : > { %v442_v2 = vpop.f32.mrf.mxu0  ;;  %v462_v3 = vpop.f32.mrf.mxu1  ;;  %v988_v4 = vpack.c.bf16 %v1257_v63, %v1247_v50  ;;  %v1008_v9 = vpack.c.bf16 %v1261_v6, %v1253_v55 }
  0xda   : > { %v614_v12 = vmul.f32 %v442_v2, %v442_v2  ;;  %v576_v15 = vadd.f32 %v575_v13, %v442_v2  ;;  %v622_v61 = vmul.f32 %v462_v3, %v462_v3 }
  0xdb   : > { %1024 = vst [vmem:[%s1203_s11 + $0x50] sm:$0xff] %v988_v4  }
  0xdc   : > { %1028 = vst [vmem:[%s1203_s11 + $0x70] sm:$0xff] %v1008_v9   ;;  %v645_v17 = vadd.f32 %v644_v14, %v614_v12 }
  0xe0   : > { %v482_v16 = vpop.f32.mrf.mxu2  ;;  %v1267_v24 = vpop.f32.mrf.mxu3 }
  0xe1   : > { %v444_v18 = vpop.f32.mrf.mxu0  ;;  %v464_v19 = vpop.f32.mrf.mxu1 }
  0xe2   : > { %v953_v20 = vpack.c.bf16 %v444_v18, %v442_v2  ;;  %v577_v21 = vadd.f32 %v576_v15, %v444_v18  ;;  %v615_v22 = vmul.f32 %v444_v18, %v444_v18  ;;  %v973_v23 = vpack.c.bf16 %v464_v19, %v462_v3 }
  0xe3   : > { %v623_v1 = vmul.f32 %v464_v19, %v464_v19  ;;  %v624_v2 = vmul.f32 %v1196_v26, %v1196_v26  ;;  %v629_v15 = vmul.f32 %v1257_v63, %v1257_v63 }
  0xe4   : > { %1017 = vst [vmem:[%s1203_s11 + $0x18] sm:$0xff] %v953_v20   ;;  %v578_v29 = vadd.f32 %v577_v21, %v1194_v25  ;;  %v646_v30 = vadd.f32 %v645_v17, %v615_v22  ;;  %v619_v25 = vmul.f32 %v1227_v40, %v1227_v40 }
  0xe5   : > { %1021 = vst [vmem:[%s1203_s11 + $0x38] sm:$0xff] %v973_v23  }
  0xe6   : > { %v579_v35 = vadd.f32 %v578_v29, %v1205_v28  ;;  %v647_v37 = vadd.f32 %v646_v30, %v616_v27 }
  0xe8   : > { %v580_v41 = vadd.f32 %v579_v35, %v1215_v34  ;;  %v648_v42 = vadd.f32 %v647_v37, %v617_v33  ;;  %v484_v45 = vpop.f32.mrf.mxu2  ;;  %v504_v53 = vpop.f32.mrf.mxu3  ;;  %v621_v34 = vmul.f32 %v1249_v52, %v1249_v52  ;;  %v635_v35 = vmul.f32 %v1241_v48, %v1241_v48 }
  0xe9   : > { %v993_v47 = vpack.c.bf16 %v484_v45, %v482_v16  ;;  %v1013_v28 = vpack.c.bf16 %v504_v53, %v1267_v24  ;;  %v631_v22 = vmul.f32 %v484_v45, %v484_v45 }
  0xea   : > { %v649_v49 = vadd.f32 %v648_v42, %v618_v39  ;;  %v581_v51 = vadd.f32 %v580_v41, %v1227_v40 }
  0xeb   : > { %1025 = vst [vmem:[%s1203_s11 + $0x58] sm:$0xff] %v993_v47  }
  0xec   : > { %v582_v56 = vadd.f32 %v581_v51, %v1237_v46  ;;  %v650_v57 = vadd.f32 %v649_v49, %v619_v25  ;;  %1029 = vst [vmem:[%s1203_s11 + $0x78] sm:$0xff] %v1013_v28   ;;  %v638_v49 = vmul.f32 %v1267_v24, %v1267_v24  ;;  %v639_v28 = vmul.f32 %v504_v53, %v504_v53 }
  0xee   : > { %v583_v58 = vadd.f32 %v582_v56, %v1249_v52  ;;  %v651_v59 = vadd.f32 %v650_v57, %v620_v54  ;;  %v626_v52 = vmul.f32 %v1225_v38, %v1225_v38 }
  0xf0   : > { %v584_v60 = vadd.f32 %v583_v58, %v462_v3  ;;  %v652_v40 = vadd.f32 %v651_v59, %v621_v34 }
  0xf2   : > { %v653_v62 = vadd.f32 %v652_v40, %v622_v61  ;;  %v585_v0 = vadd.f32 %v584_v60, %v464_v19  ;;  %v630_v19 = vmul.f32 %v482_v16, %v482_v16 }
  0xf4   : > { %v586_v4 = vadd.f32 %v585_v0, %v1196_v26  ;;  %v654_v46 = vadd.f32 %v653_v62, %v623_v1  ;;  %v628_v26 = vmul.f32 %v1247_v50, %v1247_v50 }
  0xf6   : > { %v587_v7 = vadd.f32 %v586_v4, %v1213_v32  ;;  %v655_v8 = vadd.f32 %v654_v46, %v624_v2 }
  0xf8   : > { %v588_v3 = vadd.f32 %v587_v7, %v1225_v38  ;;  %v656_v9 = vadd.f32 %v655_v8, %v625_v5 }
  0xfa   : > { %v657_v11 = vadd.f32 %v656_v9, %v626_v52  ;;  %v589_v12 = vadd.f32 %v588_v3, %v1235_v44  ;;  %v632_v44 = vmul.f32 %v1209_v31, %v1209_v31 }
  0xfc   : > { %v590_v13 = vadd.f32 %v589_v12, %v1247_v50  ;;  %v658_v14 = vadd.f32 %v657_v11, %v627_v10  ;;  %v633_v50 = vmul.f32 %v1219_v36, %v1219_v36 }
  0xfe   : > { %v591_v32 = vadd.f32 %v590_v13, %v1257_v63  ;;  %v659_v17 = vadd.f32 %v658_v14, %v628_v26  ;;  %v634_v63 = vmul.f32 %v1231_v43, %v1231_v43 }
 0x100   : > { %v660_v38 = vadd.f32 %v659_v17, %v629_v15  ;;  %v592_v18 = vadd.f32 %v591_v32, %v482_v16 }
 0x102   : > { %v661_v20 = vadd.f32 %v660_v38, %v630_v19  ;;  %v593_v21 = vadd.f32 %v592_v18, %v484_v45  ;;  %v637_v45 = vmul.f32 %v1261_v6, %v1261_v6 }
 0x104   : > { %v594_v23 = vadd.f32 %v593_v21, %v1209_v31  ;;  %v662_v27 = vadd.f32 %v661_v20, %v631_v22  ;;  %v636_v31 = vmul.f32 %v1253_v55, %v1253_v55 }
 0x106   : > { %v595_v29 = vadd.f32 %v594_v23, %v1219_v36  ;;  %v663_v30 = vadd.f32 %v662_v27, %v632_v44 }
 0x108   : > { %v596_v16 = vadd.f32 %v595_v29, %v1231_v43  ;;  %v664_v33 = vadd.f32 %v663_v30, %v633_v50 }
 0x10a   : > { %v665_v37 = vadd.f32 %v664_v33, %v634_v63  ;;  %v597_v39 = vadd.f32 %v596_v16, %v1241_v48 }
 0x10c   : > { %v598_v41 = vadd.f32 %v597_v39, %v1253_v55  ;;  %v666_v42 = vadd.f32 %v665_v37, %v635_v35 }
 0x10e   : > { %v599_v36 = vadd.f32 %v598_v41, %v1261_v6  ;;  %v667_v47 = vadd.f32 %v666_v42, %v636_v31 }
 0x110   : > { %v668_v43 = vadd.f32 %v667_v47, %v637_v45  ;;  %v600_v25 = vadd.f32 %v599_v36, %v1267_v24 }
 0x112   : > { %v669_v48 = vadd.f32 %v668_v43, %v638_v49  ;;  %v601_v51 = vadd.f32 %v600_v25, %v504_v53 }
 0x114   : > { %v602_v54 = vrot.slane %v601_v51, 4  ;;  %v670_v56 = vadd.f32 %v669_v48, %v639_v28 }
 0x116   : > { %v603_v55 = vadd.f32 %v602_v54, %v601_v51  ;;  %v671_v57 = vrot.slane %v670_v56, 4 }
 0x118   : > { %v604_v34 = vrot.slane %v603_v55, 2  ;;  %v672_v58 = vadd.f32 %v671_v57, %v670_v56 }
 0x11a   : > { %v605_v59 = vadd.f32 %v604_v34, %v603_v55  ;;  %v673_v60 = vrot.slane %v672_v58, 2 }
 0x11c   : > { %v606_v6 = vrot.slane %v605_v59, 1  ;;  %v674_v61 = vadd.f32 %v673_v60, %v672_v58 }
 0x11e   : > { %v675_v40 = vrot.slane %v674_v61, 1  ;;  %v607_v24 = vadd.f32 %v606_v6, %v605_v59 }
 0x120   : > { %v676_v62 = vadd.f32 %v675_v40, %v674_v61 }
 0x122   : > { %v678_v53 = vsel %vm677_vm0, %v607_v24, %v676_v62 }
 0x123   : > { %679 = vst [vmem:[%s224_s19] sm:$0x3] %v678_v53 }
 0x124 PF: > { %s14_s14 = sadd.s32 1, %s1100_s14   ;;  %s1348_s12 = smov %s1096_s13 }
 0x125   : > { %p11_p5 = scmp.ge.s32.totalorder %s14_s14, 4   ;;  %s1349_s13 = smov %s1351_s15 }
 0x127   :  { %13 = sbr.rel (!%p11_p5) target bundleno = 2 (0x2), region = 70 }

// kernel: bottleneck_forward.7
= control target key start
LH: loop header
LB: loop body
LE: loop exit
PB: predicated region body
PF: predicated region fallthrough
CT: control target
= control target key end

     0   :  { %s1019_s15 = smov 0   ;;  %s1021_s16 = smov 0   ;;  %s1203_s0 = inlined_call_operand.vmem [shape: bf16[2,256,128], index: 0, kind: input, shape index: {}]   ;;  %s1204_s1 = inlined_call_operand.vmem [shape: bf16[2,256,128], index: 1, kind: input, shape index: {}]   ;;  %s1205_s2 = inlined_call_operand.vmem [shape: f32[1,128], index: 2, kind: input, shape index: {}]   ;;  %s1206_s3 = inlined_call_operand.vmem [shape: f32[1,128], index: 3, kind: input, shape index: {}]   ;;  %s1207_s4 = inlined_call_operand.vmem [shape: f32[2,128,256], index: 4, kind: output, shape index: {}]  }
   0x1   :  { %s1023_s17 = smov 0  }
   0x2 LB: > { %s26_s18 = sadd.s32 1, %s988_s16  ;;  %p774_p0 = scmp.ge.s32.totalorder %s992_s17, 1  ;;  %s992_s17 = sphi %s1023_s17, %s14_s17   ;;  %s988_s16 = sphi %s1021_s16, %s1209_s16   ;;  %s984_s15 = sphi %s1019_s15, %s1208_s15  }
   0x3   : > { %p28_p1 = scmp.ge.s32.totalorder %s26_s18, 2  ;;  %p200_p2 = scmp.lt.s32.totalorder %s992_s17, 3 }
   0x5   : > { %s1211_s18 = smov (%p28_p1, %s26_s18), 0  ;;  %p201_p3 = pnand %p774_p0, %p200_p2 }
   0x6   : > { %p244_p4 = scmp.lt.s32.totalorder (!%p201_p3), %s984_s15, 1 }
   0x7   : > { %204 = sbr.rel (%p201_p3) target bundleno = 316 (0x13c), region = 36 }
   0xc   : > { %s1213_s15 = smov (!%p244_p4, %s984_s15), 1  ;;  %v1053_v0 = vld [vmem:[%s1205_s2] ss:$0 sm:$0xff] }
   0xd   : > { %s783_s19 = sshll.u32 %s1213_s15, 7  ;;  %v1061_v5 = vld [vmem:[%s1206_s3] ss:$0 sm:$0xff]  ;;  %s785_s30 = sshll.u32 %s1213_s15, 8 }
   0xe   : > { %s1043_s22 = scalar_lea.vmem %s1203_s0, %s783_s19  ;;  %s1048_s25 = scalar_lea.vmem %s1204_s1, %s783_s19 }
   0xf   : > { %v921_v1 = vld [vmem:[%s1043_s22 + $0x40] sm:$0xff]   ;;  %v922_v9 = vld [vmem:[%s1043_s22 + $0x48] sm:$0xff]   ;;  %v923_v52 = vld [vmem:[%s1043_s22 + $0x50] sm:$0xff]   ;;  %s1160_s7 = scalar_lea.vmem %s1207_s4, %s785_s30 }
  0x10   : > { %v936_v2 = vld [vmem:[%s1048_s25 + $0x40] sm:$0xff]   ;;  %v820_v4 = vunpack.c.l.bf16 %v921_v1  ;;  %v821_v8 = vunpack.c.h.bf16 %v921_v1  ;;  %v914_v12 = vld [vmem:[%s1043_s22 + $0x8] sm:$0xff]   ;;  %v824_v19 = vunpack.c.l.bf16 %v922_v9  ;;  %v825_v42 = vunpack.c.h.bf16 %v922_v9  ;;  %v915_v53 = vld [vmem:[%s1043_s22 + $0x10] sm:$0xff]  }
  0x11   : > { %v787_v3 = vld [vmem:[%s1043_s22] sm:$0xff]   ;;  %v884_v10 = vunpack.c.l.bf16 %v936_v2  ;;  %v885_v17 = vunpack.c.h.bf16 %v936_v2  ;;  %v792_v20 = vunpack.c.l.bf16 %v914_v12  ;;  %v937_v29 = vld [vmem:[%s1048_s25 + $0x48] sm:$0xff]   ;;  %v793_v45 = vunpack.c.h.bf16 %v914_v12 }
  0x12   : > { %v788_v6 = vunpack.c.l.bf16 %v787_v3  ;;  %v851_v7 = vld [vmem:[%s1048_s25] sm:$0xff]   ;;  %v789_v11 = vunpack.c.h.bf16 %v787_v3  ;;  %v357_v13 = vmul.f32 %v1053_v0, %v820_v4  ;;  %v358_v16 = vmul.f32 %v1053_v0, %v821_v8  ;;  %v929_v35 = vld [vmem:[%s1048_s25 + $0x8] sm:$0xff]   ;;  %v938_v4 = vld [vmem:[%s1048_s25 + $0x50] sm:$0xff]  }
  0x13   : > { %v852_v15 = vunpack.c.l.bf16 %v851_v7  ;;  %v853_v24 = vunpack.c.h.bf16 %v851_v7  ;;  %v359_v28 = vmul.f32 %v1053_v0, %v824_v19  ;;  %v343_v30 = vmul.f32 %v1053_v0, %v792_v20  ;;  %v930_v7 = vld [vmem:[%s1048_s25 + $0x10] sm:$0xff]  }
  0x14   : > { %v341_v14 = vmul.f32 %v1053_v0, %v788_v6  ;;  %v342_v18 = vmul.f32 %v1053_v0, %v789_v11  ;;  %v393_v21 = vadd.f32 %v1061_v5, %v357_v13  ;;  %v394_v23 = vadd.f32 %v1061_v5, %v358_v16 }
  0x15   : > { %v888_v38 = vunpack.c.l.bf16 %v937_v29  ;;  %v395_v39 = vadd.f32 %v1061_v5, %v359_v28  ;;  %v379_v40 = vadd.f32 %v1061_v5, %v343_v30  ;;  %v856_v41 = vunpack.c.l.bf16 %v929_v35 }
  0x16   : > { %v377_v22 = vadd.f32 %v1061_v5, %v341_v14  ;;  %v378_v25 = vadd.f32 %v1061_v5, %v342_v18  ;;  %v489_v26 = vadd.f32 %v884_v10, %v393_v21  ;;  %v490_v33 = vadd.f32 %v885_v17, %v394_v23  ;;  %v916_v23 = vld [vmem:[%s1043_s22 + $0x18] sm:$0xff]  }
  0x17   : > { %v491_v46 = vadd.f32 %v888_v38, %v395_v39  ;;  %v475_v47 = vadd.f32 %v856_v41, %v379_v40  ;;  %v360_v48 = vmul.f32 %v1053_v0, %v825_v42  ;;  %v344_v51 = vmul.f32 %v1053_v0, %v793_v45  ;;  %v939_v38 = vld [vmem:[%s1048_s25 + $0x58] sm:$0xff]  }
  0x18   : > { %v473_v27 = vadd.f32 %v852_v15, %v377_v22  ;;  %v521_v31 = vmax.f32 %v489_v26, 0.0  ;;  %v474_v34 = vadd.f32 %v853_v24, %v378_v25  ;;  %v522_v43 = vmax.f32 %v490_v33, 0.0  ;;  %v924_v22 = vld [vmem:[%s1043_s22 + $0x58] sm:$0xff]  }
  0x19   : > { %v523_v54 = vmax.f32 %v491_v46, 0.0  ;;  %v507_v55 = vmax.f32 %v475_v47, 0.0  ;;  %v396_v56 = vadd.f32 %v1061_v5, %v360_v48  ;;  %v889_v57 = vunpack.c.h.bf16 %v937_v29  ;;  %v931_v39 = vld [vmem:[%s1048_s25 + $0x18] sm:$0xff]  }
  0x1a   : > { %v505_v32 = vmax.f32 %v473_v27, 0.0  ;;  %v553_v36 = vmin.f32 %v521_v31, 6.0  ;;  %v506_v44 = vmax.f32 %v474_v34, 0.0  ;;  %v554_v49 = vmin.f32 %v522_v43, 6.0 }
  0x1b   : > { %v380_v58 = vadd.f32 %v1061_v5, %v344_v51  ;;  %v857_v59 = vunpack.c.h.bf16 %v929_v35  ;;  %v828_v60 = vunpack.c.l.bf16 %v923_v52  ;;  %v796_v61 = vunpack.c.l.bf16 %v915_v53 }
  0x1c   : > { %v537_v37 = vmin.f32 %v505_v32, 6.0  ;;  %601 = vxpose.xlu1.b32.start [1/16] %v553_v36, 128  ;;  %v538_v50 = vmin.f32 %v506_v44, 6.0  ;;  %v555_v62 = vmin.f32 %v523_v54, 6.0  ;;  %v492_v63 = vadd.f32 %v889_v57, %v396_v56  ;;  %v925_v54 = vld [vmem:[%s1043_s22 + $0x60] sm:$0xff]  }
  0x1d   : > { %v539_v1 = vmin.f32 %v507_v55, 6.0  ;;  %v476_v2 = vadd.f32 %v857_v59, %v380_v58  ;;  %v361_v3 = vmul.f32 %v1053_v0, %v828_v60  ;;  %v345_v6 = vmul.f32 %v1053_v0, %v796_v61  ;;  %v917_v55 = vld [vmem:[%s1043_s22 + $0x20] sm:$0xff]  }
  0x1e   : > { %569 = vxpose.xlu0.b32.start [1/16] %v537_v37, 128  ;;  %v524_v8 = vmax.f32 %v492_v63, 0.0  ;;  %v892_v9 = vunpack.c.l.bf16 %v938_v4  ;;  %v860_v10 = vunpack.c.l.bf16 %v930_v7  ;;  %v829_v11 = vunpack.c.h.bf16 %v923_v52 }
  0x1f   : > { %v508_v12 = vmax.f32 %v476_v2, 0.0  ;;  %v397_v13 = vadd.f32 %v1061_v5, %v361_v3  ;;  %v381_v14 = vadd.f32 %v1061_v5, %v345_v6  ;;  %v797_v15 = vunpack.c.h.bf16 %v915_v53 }
  0x20   : > { %v556_v16 = vmin.f32 %v524_v8, 6.0  ;;  %v362_v17 = vmul.f32 %v1053_v0, %v829_v11  ;;  %v893_v24 = vunpack.c.h.bf16 %v938_v4  ;;  %v861_v25 = vunpack.c.h.bf16 %v930_v7  ;;  %v940_v8 = vld [vmem:[%s1048_s25 + $0x60] sm:$0xff]  }
  0x21   : > { %v540_v18 = vmin.f32 %v508_v12, 6.0  ;;  %v493_v19 = vadd.f32 %v892_v9, %v397_v13  ;;  %v477_v20 = vadd.f32 %v860_v10, %v381_v14  ;;  %v346_v21 = vmul.f32 %v1053_v0, %v797_v15  ;;  %v932_v9 = vld [vmem:[%s1048_s25 + $0x20] sm:$0xff]  }
  0x22   : > { %v832_v26 = vunpack.c.l.bf16 %v924_v22  ;;  %v800_v27 = vunpack.c.l.bf16 %v916_v23  ;;  %v398_v30 = vadd.f32 %v1061_v5, %v362_v17  ;;  %v896_v41 = vunpack.c.l.bf16 %v939_v38 }
  0x23   : > { %v525_v28 = vmax.f32 %v493_v19, 0.0  ;;  %v509_v29 = vmax.f32 %v477_v20, 0.0  ;;  %v382_v31 = vadd.f32 %v1061_v5, %v346_v21  ;;  %v864_v43 = vunpack.c.l.bf16 %v931_v39 }
  0x24   : > { %602 = vxpose.xlu1.b32.cont [2/16] %v554_v49, 128  ;;  %v363_v32 = vmul.f32 %v1053_v0, %v832_v26  ;;  %v347_v33 = vmul.f32 %v1053_v0, %v800_v27  ;;  %v494_v36 = vadd.f32 %v893_v24, %v398_v30  ;;  %v833_v46 = vunpack.c.h.bf16 %v924_v22  ;;  %v926_v24 = vld [vmem:[%s1043_s22 + $0x68] sm:$0xff]  }
  0x25   : > { %v557_v34 = vmin.f32 %v525_v28, 6.0  ;;  %v541_v35 = vmin.f32 %v509_v29, 6.0  ;;  %v478_v37 = vadd.f32 %v861_v25, %v382_v31  ;;  %v801_v47 = vunpack.c.h.bf16 %v916_v23  ;;  %v918_v25 = vld [vmem:[%s1043_s22 + $0x28] sm:$0xff]  }
  0x26   : > { %570 = vxpose.xlu0.b32.cont [2/16] %v538_v50, 128  ;;  %v399_v40 = vadd.f32 %v1061_v5, %v363_v32  ;;  %v383_v42 = vadd.f32 %v1061_v5, %v347_v33  ;;  %v526_v44 = vmax.f32 %v494_v36, 0.0  ;;  %v364_v52 = vmul.f32 %v1053_v0, %v833_v46 }
  0x27   : > { %v510_v45 = vmax.f32 %v478_v37, 0.0  ;;  %v348_v53 = vmul.f32 %v1053_v0, %v801_v47  ;;  %v836_v58 = vunpack.c.l.bf16 %v925_v54  ;;  %v804_v59 = vunpack.c.l.bf16 %v917_v55 }
  0x28   : > { %v495_v48 = vadd.f32 %v896_v41, %v399_v40  ;;  %v479_v49 = vadd.f32 %v864_v43, %v383_v42  ;;  %v558_v50 = vmin.f32 %v526_v44, 6.0  ;;  %v400_v60 = vadd.f32 %v1061_v5, %v364_v52  ;;  %v941_v40 = vld [vmem:[%s1048_s25 + $0x68] sm:$0xff]  }
  0x29   : > { %v542_v51 = vmin.f32 %v510_v45, 6.0  ;;  %v897_v61 = vunpack.c.h.bf16 %v939_v38  ;;  %v865_v63 = vunpack.c.h.bf16 %v931_v39  ;;  %v349_v2 = vmul.f32 %v1053_v0, %v804_v59  ;;  %v933_v41 = vld [vmem:[%s1048_s25 + $0x28] sm:$0xff]  }
  0x2a   : > { %v527_v56 = vmax.f32 %v495_v48, 0.0  ;;  %v511_v57 = vmax.f32 %v479_v49, 0.0  ;;  %v900_v11 = vunpack.c.l.bf16 %v940_v8  ;;  %v868_v13 = vunpack.c.l.bf16 %v932_v9 }
  0x2b   : > { %v496_v6 = vadd.f32 %v897_v61, %v400_v60  ;;  %v385_v12 = vadd.f32 %v1061_v5, %v349_v2  ;;  %v805_v17 = vunpack.c.h.bf16 %v917_v55  ;;  %v840_v28 = vunpack.c.l.bf16 %v926_v24 }
  0x2c   : > { %603 = vxpose.xlu1.b32.cont [3/16] %v555_v62, 128  ;;  %v384_v62 = vadd.f32 %v1061_v5, %v348_v53  ;;  %v559_v3 = vmin.f32 %v527_v56, 6.0  ;;  %v543_v4 = vmin.f32 %v511_v57, 6.0  ;;  %v808_v29 = vunpack.c.l.bf16 %v918_v25  ;;  %v927_v56 = vld [vmem:[%s1043_s22 + $0x70] sm:$0xff]  }
  0x2d   : > { %v528_v14 = vmax.f32 %v496_v6, 0.0  ;;  %v481_v19 = vadd.f32 %v868_v13, %v385_v12  ;;  %v350_v23 = vmul.f32 %v1053_v0, %v805_v17  ;;  %v901_v31 = vunpack.c.h.bf16 %v940_v8  ;;  %v919_v57 = vld [vmem:[%s1043_s22 + $0x30] sm:$0xff]  }
  0x2e   : > { %571 = vxpose.xlu0.b32.cont [3/16] %v539_v1, 128  ;;  %v365_v1 = vmul.f32 %v1053_v0, %v836_v58  ;;  %v480_v7 = vadd.f32 %v865_v63, %v384_v62  ;;  %v869_v33 = vunpack.c.h.bf16 %v932_v9  ;;  %v904_v43 = vunpack.c.l.bf16 %v941_v40 }
  0x2f   : > { %v560_v20 = vmin.f32 %v528_v14, 6.0  ;;  %v513_v27 = vmax.f32 %v481_v19, 0.0  ;;  %v386_v32 = vadd.f32 %v1061_v5, %v350_v23  ;;  %v872_v45 = vunpack.c.l.bf16 %v933_v41 }
  0x30   : > { %v401_v10 = vadd.f32 %v1061_v5, %v365_v1  ;;  %v512_v15 = vmax.f32 %v480_v7, 0.0  ;;  %v841_v48 = vunpack.c.h.bf16 %v926_v24  ;;  %v809_v49 = vunpack.c.h.bf16 %v918_v25 }
  0x31   : > { %v545_v37 = vmin.f32 %v513_v27, 6.0  ;;  %v482_v39 = vadd.f32 %v869_v33, %v386_v32  ;;  %v844_v60 = vunpack.c.l.bf16 %v927_v56  ;;  %v812_v61 = vunpack.c.l.bf16 %v919_v57  ;;  %v920_v27 = vld [vmem:[%s1043_s22 + $0x38] sm:$0xff]  }
  0x32   : > { %v544_v21 = vmin.f32 %v512_v15, 6.0  ;;  %v352_v55 = vmul.f32 %v1053_v0, %v809_v49  ;;  %v905_v63 = vunpack.c.h.bf16 %v941_v40  ;;  %v873_v2 = vunpack.c.h.bf16 %v933_v41 }
  0x33   : > { %v514_v47 = vmax.f32 %v482_v39, 0.0  ;;  %v813_v19 = vunpack.c.h.bf16 %v919_v57 }
  0x34   : > { %604 = vxpose.xlu1.b32.cont [4/16] %v556_v16, 128  ;;  %v837_v16 = vunpack.c.h.bf16 %v925_v54  ;;  %v368_v54 = vmul.f32 %v1053_v0, %v841_v48  ;;  %v388_v1 = vadd.f32 %v1061_v5, %v352_v55 }
  0x35   : > { %v546_v53 = vmin.f32 %v514_v47, 6.0  ;;  %v354_v25 = vmul.f32 %v1053_v0, %v813_v19 }
  0x36   : > { %572 = vxpose.xlu0.b32.cont [4/16] %v540_v18, 128  ;;  %v497_v18 = vadd.f32 %v900_v11, %v401_v10  ;;  %v366_v22 = vmul.f32 %v1053_v0, %v837_v16  ;;  %v404_v62 = vadd.f32 %v1061_v5, %v368_v54  ;;  %v484_v9 = vadd.f32 %v873_v2, %v388_v1  ;;  %v942_v10 = vld [vmem:[%s1048_s25 + $0x70] sm:$0xff]  }
  0x37   : > { %v934_v11 = vld [vmem:[%s1048_s25 + $0x30] sm:$0xff]   ;;  %v908_v13 = vunpack.c.l.bf16 %v942_v10  ;;  %v909_v33 = vunpack.c.h.bf16 %v942_v10 }
  0x38   : > { %v529_v26 = vmax.f32 %v497_v18, 0.0  ;;  %v402_v30 = vadd.f32 %v1061_v5, %v366_v22  ;;  %v500_v8 = vadd.f32 %v905_v63, %v404_v62  ;;  %v876_v15 = vunpack.c.l.bf16 %v934_v11 }
  0x39   : > { %v516_v17 = vmax.f32 %v484_v9, 0.0  ;;  %v845_v18 = vunpack.c.h.bf16 %v927_v56 }
  0x3a   : > { %v561_v36 = vmin.f32 %v529_v26, 6.0  ;;  %v498_v38 = vadd.f32 %v901_v31, %v402_v30  ;;  %v532_v16 = vmax.f32 %v500_v8, 0.0  ;;  %v928_v26 = vld [vmem:[%s1043_s22 + $0x78] sm:$0xff]   ;;  %v816_v31 = vunpack.c.l.bf16 %v920_v27 }
  0x3b   : > { %v548_v23 = vmin.f32 %v516_v17, 6.0  ;;  %v370_v24 = vmul.f32 %v1053_v0, %v845_v18  ;;  %v848_v30 = vunpack.c.l.bf16 %v928_v26 }
  0x3c   : > { %605 = vxpose.xlu1.b32.cont [5/16] %v557_v34, 128  ;;  %v367_v34 = vmul.f32 %v1053_v0, %v840_v28  ;;  %v530_v46 = vmax.f32 %v498_v38, 0.0  ;;  %v564_v22 = vmin.f32 %v532_v16, 6.0 }
  0x3d   : > { %v406_v32 = vadd.f32 %v1061_v5, %v370_v24 }
  0x3e   : > { %573 = vxpose.xlu0.b32.cont [5/16] %v541_v35, 128  ;;  %v351_v35 = vmul.f32 %v1053_v0, %v808_v29  ;;  %v403_v42 = vadd.f32 %v1061_v5, %v367_v34  ;;  %v562_v52 = vmin.f32 %v530_v46, 6.0  ;;  %v390_v34 = vadd.f32 %v1061_v5, %v354_v25 }
  0x3f   : > { %v502_v40 = vadd.f32 %v909_v33, %v406_v32 }
  0x40   : > { %v387_v44 = vadd.f32 %v1061_v5, %v351_v35  ;;  %v877_v35 = vunpack.c.h.bf16 %v934_v11 }
  0x41   : > { %v534_v48 = vmax.f32 %v502_v40, 0.0 }
  0x42   : > { %v486_v41 = vadd.f32 %v877_v35, %v390_v34 }
  0x43   : > { %v566_v54 = vmin.f32 %v534_v48, 6.0 }
  0x44   : > { %606 = vxpose.xlu1.b32.cont [6/16] %v558_v50, 128  ;;  %v499_v50 = vadd.f32 %v904_v43, %v403_v42  ;;  %v943_v42 = vld [vmem:[%s1048_s25 + $0x78] sm:$0xff]   ;;  %v518_v49 = vmax.f32 %v486_v41, 0.0 }
  0x45   : > { %v935_v43 = vld [vmem:[%s1048_s25 + $0x38] sm:$0xff]  }
  0x46   : > { %574 = vxpose.xlu0.b32.cont [6/16] %v542_v51, 128  ;;  %v483_v51 = vadd.f32 %v872_v45, %v387_v44  ;;  %v531_v58 = vmax.f32 %v499_v50, 0.0  ;;  %v912_v45 = vunpack.c.l.bf16 %v943_v42  ;;  %v880_v47 = vunpack.c.l.bf16 %v935_v43 }
  0x47   : > { %v849_v50 = vunpack.c.h.bf16 %v928_v26  ;;  %v550_v55 = vmin.f32 %v518_v49, 6.0  ;;  %v881_v63 = vunpack.c.h.bf16 %v935_v43 }
  0x48   : > { %v515_v59 = vmax.f32 %v483_v51, 0.0  ;;  %v563_v6 = vmin.f32 %v531_v58, 6.0  ;;  %v817_v51 = vunpack.c.h.bf16 %v920_v27 }
  0x49   : > { %v372_v56 = vmul.f32 %v1053_v0, %v849_v50 }
  0x4a   : > { %v547_v7 = vmin.f32 %v515_v59, 6.0  ;;  %v356_v57 = vmul.f32 %v1053_v0, %v817_v51 }
  0x4c   : > { %607 = vxpose.xlu1.b32.cont [7/16] %v559_v3, 128  ;;  %v369_v3 = vmul.f32 %v1053_v0, %v844_v60  ;;  %v408_v60 = vadd.f32 %v1061_v5, %v372_v56  ;;  %v392_v62 = vadd.f32 %v1061_v5, %v356_v57 }
  0x4e   : > { %575 = vxpose.xlu0.b32.cont [7/16] %v543_v4, 128  ;;  %v353_v4 = vmul.f32 %v1053_v0, %v812_v61  ;;  %v405_v12 = vadd.f32 %v1061_v5, %v369_v3  ;;  %v913_v61 = vunpack.c.h.bf16 %v943_v42 }
  0x50   : > { %v389_v14 = vadd.f32 %v1061_v5, %v353_v4  ;;  %v504_v3 = vadd.f32 %v913_v61, %v408_v60  ;;  %v488_v4 = vadd.f32 %v881_v63, %v392_v62 }
  0x54   : > { %608 = vxpose.xlu1.b32.cont [8/16] %v560_v20, 128  ;;  %v501_v20 = vadd.f32 %v908_v13, %v405_v12 }
  0x56   : > { %576 = vxpose.xlu0.b32.cont [8/16] %v544_v21, 128  ;;  %v485_v21 = vadd.f32 %v876_v15, %v389_v14  ;;  %v533_v28 = vmax.f32 %v501_v20, 0.0 }
  0x58   : > { %v517_v29 = vmax.f32 %v485_v21, 0.0  ;;  %v565_v38 = vmin.f32 %v533_v28, 6.0 }
  0x5a   : > { %v549_v39 = vmin.f32 %v517_v29, 6.0 }
  0x5c   : > { %609 = vxpose.xlu1.b32.cont [9/16] %v561_v36, 128  ;;  %v371_v36 = vmul.f32 %v1053_v0, %v848_v30 }
  0x5e   : > { %577 = vxpose.xlu0.b32.cont [9/16] %v545_v37, 128  ;;  %v355_v37 = vmul.f32 %v1053_v0, %v816_v31  ;;  %v407_v44 = vadd.f32 %v1061_v5, %v371_v36 }
  0x60   : > { %v391_v46 = vadd.f32 %v1061_v5, %v355_v37 }
  0x64   : > { %610 = vxpose.xlu1.b32.cont [10/16] %v562_v52, 128  ;;  %v503_v52 = vadd.f32 %v912_v45, %v407_v44 }
  0x66   : > { %578 = vxpose.xlu0.b32.cont [10/16] %v546_v53, 128  ;;  %v487_v53 = vadd.f32 %v880_v47, %v391_v46  ;;  %v535_v58 = vmax.f32 %v503_v52, 0.0 }
  0x68   : > { %v519_v59 = vmax.f32 %v487_v53, 0.0  ;;  %v567_v1 = vmin.f32 %v535_v58, 6.0 }
  0x6a   : > { %v551_v2 = vmin.f32 %v519_v59, 6.0 }
  0x6c   : > { %611 = vxpose.xlu1.b32.cont [11/16] %v563_v6, 128  ;;  %v536_v6 = vmax.f32 %v504_v3, 0.0 }
  0x6e   : > { %579 = vxpose.xlu0.b32.cont [11/16] %v547_v7, 128  ;;  %v520_v7 = vmax.f32 %v488_v4, 0.0  ;;  %v568_v0 = vmin.f32 %v536_v6, 6.0 }
  0x70   : > { %v552_v8 = vmin.f32 %v520_v7, 6.0 }
  0x74   : > { %612 = vxpose.xlu1.b32.cont [12/16] %v564_v22, 128 }
  0x76   : > { %580 = vxpose.xlu0.b32.cont [12/16] %v548_v23, 128 }
  0x7c   : > { %613 = vxpose.xlu1.b32.cont [13/16] %v565_v38, 128 }
  0x7e   : > { %581 = vxpose.xlu0.b32.cont [13/16] %v549_v39, 128 }
  0x84   : > { %614 = vxpose.xlu1.b32.cont [14/16] %v566_v54, 128 }
  0x86   : > { %582 = vxpose.xlu0.b32.cont [14/16] %v550_v55, 128 }
  0x8c   : > { %615 = vxpose.xlu1.b32.cont [15/16] %v567_v1, 128 }
  0x8e   : > { %583 = vxpose.xlu0.b32.cont [15/16] %v551_v2, 128 }
  0x94   : > { %616 = vxpose.xlu1.b32.end [16/16] %v568_v0, 128 }
  0x96   : > { %584 = vxpose.xlu0.b32.end [16/16] %v552_v8, 128 }
  0xc0   : > { %v617_v5 = vpop.trf.xlu1 }
  0xc1   : > { %634 = vst [vmem:[%s1160_s7 + $0x8] sm:$0xff] %v617_v5 }
  0xc2   : > { %v585_v9 = vpop.trf.xlu0 }
  0xc3   : > { %633 = vst [vmem:[%s1160_s7] sm:$0xff] %v585_v9 }
  0xc8   : > { %v618_v10 = vpop.trf.xlu1 }
  0xc9   : > { %636 = vst [vmem:[%s1160_s7 + $0x18] sm:$0xff] %v618_v10 }
  0xca   : > { %v586_v11 = vpop.trf.xlu0 }
  0xcb   : > { %635 = vst [vmem:[%s1160_s7 + $0x10] sm:$0xff] %v586_v11 }
  0xd0   : > { %v619_v12 = vpop.trf.xlu1 }
  0xd1   : > { %638 = vst [vmem:[%s1160_s7 + $0x28] sm:$0xff] %v619_v12 }
  0xd2   : > { %v587_v13 = vpop.trf.xlu0 }
  0xd3   : > { %637 = vst [vmem:[%s1160_s7 + $0x20] sm:$0xff] %v587_v13 }
  0xd8   : > { %v620_v14 = vpop.trf.xlu1 }
  0xd9   : > { %640 = vst [vmem:[%s1160_s7 + $0x38] sm:$0xff] %v620_v14 }
  0xda   : > { %v588_v15 = vpop.trf.xlu0 }
  0xdb   : > { %639 = vst [vmem:[%s1160_s7 + $0x30] sm:$0xff] %v588_v15 }
  0xe0   : > { %v621_v16 = vpop.trf.xlu1 }
  0xe1   : > { %642 = vst [vmem:[%s1160_s7 + $0x48] sm:$0xff] %v621_v16 }
  0xe2   : > { %v589_v17 = vpop.trf.xlu0 }
  0xe3   : > { %641 = vst [vmem:[%s1160_s7 + $0x40] sm:$0xff] %v589_v17 }
  0xe8   : > { %v622_v18 = vpop.trf.xlu1 }
  0xe9   : > { %644 = vst [vmem:[%s1160_s7 + $0x58] sm:$0xff] %v622_v18 }
  0xea   : > { %v590_v19 = vpop.trf.xlu0 }
  0xeb   : > { %643 = vst [vmem:[%s1160_s7 + $0x50] sm:$0xff] %v590_v19 }
  0xf0   : > { %v623_v20 = vpop.trf.xlu1 }
  0xf1   : > { %646 = vst [vmem:[%s1160_s7 + $0x68] sm:$0xff] %v623_v20 }
  0xf2   : > { %v591_v21 = vpop.trf.xlu0 }
  0xf3   : > { %645 = vst [vmem:[%s1160_s7 + $0x60] sm:$0xff] %v591_v21 }
  0xf8   : > { %v624_v22 = vpop.trf.xlu1 }
  0xf9   : > { %648 = vst [vmem:[%s1160_s7 + $0x78] sm:$0xff] %v624_v22 }
  0xfa   : > { %v592_v23 = vpop.trf.xlu0 }
  0xfb   : > { %647 = vst [vmem:[%s1160_s7 + $0x70] sm:$0xff] %v592_v23 }
 0x100   : > { %v625_v24 = vpop.trf.xlu1 }
 0x101   : > { %650 = vst [vmem:[%s1160_s7 + $0x88] sm:$0xff] %v625_v24 }
 0x102   : > { %v593_v25 = vpop.trf.xlu0 }
 0x103   : > { %649 = vst [vmem:[%s1160_s7 + $0x80] sm:$0xff] %v593_v25 }
 0x108   : > { %v626_v26 = vpop.trf.xlu1 }
 0x109   : > { %652 = vst [vmem:[%s1160_s7 + $0x98] sm:$0xff] %v626_v26 }
 0x10a   : > { %v594_v27 = vpop.trf.xlu0 }
 0x10b   : > { %651 = vst [vmem:[%s1160_s7 + $0x90] sm:$0xff] %v594_v27 }
 0x110   : > { %v627_v28 = vpop.trf.xlu1 }
 0x111   : > { %654 = vst [vmem:[%s1160_s7 + $0xa8] sm:$0xff] %v627_v28 }
 0x112   : > { %v595_v29 = vpop.trf.xlu0 }
 0x113   : > { %653 = vst [vmem:[%s1160_s7 + $0xa0] sm:$0xff] %v595_v29 }
 0x118   : > { %v628_v30 = vpop.trf.xlu1 }
 0x119   : > { %656 = vst [vmem:[%s1160_s7 + $0xb8] sm:$0xff] %v628_v30 }
 0x11a   : > { %v596_v31 = vpop.trf.xlu0 }
 0x11b   : > { %655 = vst [vmem:[%s1160_s7 + $0xb0] sm:$0xff] %v596_v31 }
 0x120   : > { %v629_v32 = vpop.trf.xlu1 }
 0x121   : > { %658 = vst [vmem:[%s1160_s7 + $0xc8] sm:$0xff] %v629_v32 }
 0x122   : > { %v597_v33 = vpop.trf.xlu0 }
 0x123   : > { %657 = vst [vmem:[%s1160_s7 + $0xc0] sm:$0xff] %v597_v33 }
 0x128   : > { %v630_v34 = vpop.trf.xlu1 }
 0x129   : > { %660 = vst [vmem:[%s1160_s7 + $0xd8] sm:$0xff] %v630_v34 }
 0x12a   : > { %v598_v35 = vpop.trf.xlu0 }
 0x12b   : > { %659 = vst [vmem:[%s1160_s7 + $0xd0] sm:$0xff] %v598_v35 }
 0x130   : > { %v631_v36 = vpop.trf.xlu1 }
 0x131   : > { %662 = vst [vmem:[%s1160_s7 + $0xe8] sm:$0xff] %v631_v36 }
 0x132   : > { %v599_v37 = vpop.trf.xlu0 }
 0x133   : > { %661 = vst [vmem:[%s1160_s7 + $0xe0] sm:$0xff] %v599_v37 }
 0x138   : > { %v632_v38 = vpop.trf.xlu1 }
 0x139   : > { %664 = vst [vmem:[%s1160_s7 + $0xf8] sm:$0xff] %v632_v38 }
 0x13a   : > { %v600_v39 = vpop.trf.xlu0 }
 0x13b   : > { %663 = vst [vmem:[%s1160_s7 + $0xf0] sm:$0xff] %v600_v39 }
 0x13c PF: > { %s14_s17 = sadd.s32 1, %s992_s17   ;;  %s1208_s15 = smov %s988_s16 }
 0x13d   : > { %p11_p5 = scmp.ge.s32.totalorder %s14_s17, 4   ;;  %s1209_s16 = smov %s1211_s18 }
 0x13f   :  { %13 = sbr.rel (!%p11_p5) target bundleno = 2 (0x2), region = 69 }

// kernel: bottleneck_forward.6
= control target key start
LH: loop header
LB: loop body
LE: loop exit
PB: predicated region body
PF: predicated region fallthrough
CT: control target
= control target key end

     0   :  { %s1275_s18 = smov 0   ;;  %s1277_s19 = smov 0   ;;  %s1567_s0 = inlined_call_operand.vmem [shape: bf16[2,256,128], index: 0, kind: input, shape index: {}]   ;;  %s1568_s1 = inlined_call_operand.vmem [shape: f32[1,128], index: 1, kind: input, shape index: {}]   ;;  %s1569_s2 = inlined_call_operand.vmem [shape: f32[1,128], index: 2, kind: input, shape index: {}]   ;;  %s1570_s3 = inlined_call_operand.vmem [shape: bf16[128,128], index: 3, kind: input, shape index: {}]   ;;  %s1571_s4 = inlined_call_operand.vmem [shape: bf16[2,256,128], index: 4, kind: output, shape index: {0}]   ;;  %s1572_s5 = inlined_call_operand.vmem [shape: f32[2,2,128], index: 5, kind: output, shape index: {1}]  }
   0x1   :  { %s1279_s20 = smov 0  }
   0x2 LB: > { %s28_s21 = sadd.s32 1, %s1239_s19  ;;  %p947_p0 = scmp.ge.s32.totalorder %s1243_s20, 1  ;;  %s1243_s20 = sphi %s1279_s20, %s16_s20   ;;  %s1239_s19 = sphi %s1277_s19, %s1574_s19   ;;  %s1235_s18 = sphi %s1275_s18, %s1573_s18  }
   0x3   : > { %p30_p1 = scmp.ge.s32.totalorder %s28_s21, 2  ;;  %p213_p2 = scmp.lt.s32.totalorder %s1243_s20, 3 }
   0x5   : > { %s1576_s21 = smov (%p30_p1, %s28_s21), 0  ;;  %p214_p3 = pnand %p947_p0, %p213_p2 }
   0x6   : > { %p255_p4 = scmp.lt.s32.totalorder (!%p214_p3), %s1235_s18, 1 }
   0x7   : > { %217 = sbr.rel (%p214_p3) target bundleno = 292 (0x124), region = 36 }
   0xc   : > { %v996_v0 = vld [vmem:[%s1570_s3 + $0x38] sm:$0xff]  ;;  %v995_v1 = vld [vmem:[%s1570_s3 + $0x30] sm:$0xff]  ;;  %s1578_s18 = smov (!%p255_p4, %s1235_s18), 1  ;;  %v994_v2 = vld [vmem:[%s1570_s3 + $0x28] sm:$0xff]  ;;  %vm819_vm0 = vcmask 1040384  }
   0xd   : > { %560 = vmatpush.bf16.msra.mxu0 %v996_v0  ;;  %1171 = vmatpush.bf16.msra.mxu1 %v996_v0  ;;  %s987_s26 = sshll.u32 %s1578_s18, 7  ;;  %v1317_v7 = vld [vmem:[%s1568_s1] ss:$0 sm:$0xff]  ;;  %v992_v20 = vld [vmem:[%s1570_s3 + $0x18] sm:$0xff]  ;;  %v991_v27 = vld [vmem:[%s1570_s3 + $0x10] sm:$0xff] }
   0xe   : > { %1172 = vmatpush.bf16.msra.mxu2 %v996_v0  ;;  %1173 = vmatpush.bf16.msra.mxu3 %v996_v0  ;;  %s1307_s29 = scalar_lea.vmem %s1567_s0, %s987_s26  ;;  %v993_v12 = vld [vmem:[%s1570_s3 + $0x20] sm:$0xff]  ;;  %v990_v34 = vld [vmem:[%s1570_s3 + $0x8] sm:$0xff]  ;;  %s1426_s28 = scalar_lea.vmem %s1571_s4, %s987_s26 }
   0xf   : > { %v998_v3 = vld [vmem:[%s1307_s29] sm:$0xff]   ;;  %v1141_v33 = vld [vmem:[%s1307_s29 + $0x8] sm:$0xff]   ;;  %s952_s26 = sshll.u32 %s1578_s18, 1 }
  0x10   : > { %v1144_v4 = vld [vmem:[%s1307_s29 + $0x20] sm:$0xff]   ;;  %v999_v5 = vunpack.c.l.bf16 %v998_v3  ;;  %v1000_v6 = vunpack.c.h.bf16 %v998_v3  ;;  %v1145_v37 = vld [vmem:[%s1307_s29 + $0x28] sm:$0xff]   ;;  %v1003_v42 = vunpack.c.l.bf16 %v1141_v33  ;;  %v1004_v43 = vunpack.c.h.bf16 %v1141_v33  ;;  %s278_s6 = scalar_lea.vmem %s1572_s5, %s952_s26 }
  0x11   : > { %561 = vmatpush.bf16.msra.mxu0 %v995_v1  ;;  %1174 = vmatpush.bf16.msra.mxu1 %v995_v1  ;;  %v1148_v8 = vld [vmem:[%s1307_s29 + $0x40] sm:$0xff]   ;;  %v1015_v9 = vunpack.c.l.bf16 %v1144_v4  ;;  %v1016_v10 = vunpack.c.h.bf16 %v1144_v4  ;;  %v1149_v38 = vld [vmem:[%s1307_s29 + $0x48] sm:$0xff]   ;;  %v1019_v49 = vunpack.c.l.bf16 %v1145_v37  ;;  %v1020_v50 = vunpack.c.h.bf16 %v1145_v37 }
  0x12   : > { %1175 = vmatpush.bf16.msra.mxu2 %v995_v1  ;;  %1176 = vmatpush.bf16.msra.mxu3 %v995_v1  ;;  %v1031_v11 = vunpack.c.l.bf16 %v1148_v8  ;;  %v1032_v13 = vunpack.c.h.bf16 %v1148_v8  ;;  %v348_v14 = vmul.f32 %v1317_v7, %v999_v5  ;;  %v349_v15 = vmul.f32 %v1317_v7, %v1000_v6  ;;  %v1328_v16 = vld [vmem:[%s1569_s2] ss:$0 sm:$0xff] }
  0x13   : > { %v356_v17 = vmul.f32 %v1317_v7, %v1015_v9  ;;  %v357_v18 = vmul.f32 %v1317_v7, %v1016_v10  ;;  %v1152_v39 = vld [vmem:[%s1307_s29 + $0x60] sm:$0xff]   ;;  %v1035_v51 = vunpack.c.l.bf16 %v1149_v38  ;;  %v1036_v54 = vunpack.c.h.bf16 %v1149_v38 }
  0x14   : > { %v364_v19 = vmul.f32 %v1317_v7, %v1031_v11  ;;  %v365_v21 = vmul.f32 %v1317_v7, %v1032_v13  ;;  %v384_v22 = vadd.f32 %v1328_v16, %v348_v14  ;;  %v385_v23 = vadd.f32 %v1328_v16, %v349_v15  ;;  %v989_v52 = vld [vmem:[%s1570_s3] sm:$0xff]  ;;  %v1142_v13 = vld [vmem:[%s1307_s29 + $0x10] sm:$0xff]  }
  0x15   : > { %562 = vmatpush.bf16.msra.mxu0 %v994_v2  ;;  %1177 = vmatpush.bf16.msra.mxu1 %v994_v2  ;;  %v392_v24 = vadd.f32 %v1328_v16, %v356_v17  ;;  %v393_v25 = vadd.f32 %v1328_v16, %v357_v18  ;;  %v1047_v46 = vunpack.c.l.bf16 %v1152_v39  ;;  %v1048_v47 = vunpack.c.h.bf16 %v1152_v39 }
  0x16   : > { %1178 = vmatpush.bf16.msra.mxu2 %v994_v2  ;;  %1179 = vmatpush.bf16.msra.mxu3 %v994_v2  ;;  %v400_v26 = vadd.f32 %v1328_v16, %v364_v19  ;;  %v401_v28 = vadd.f32 %v1328_v16, %v365_v21  ;;  %v416_v29 = vmax.f32 %v384_v22, 0.0  ;;  %v417_v30 = vmax.f32 %v385_v23, 0.0 }
  0x17   : > { %v424_v31 = vmax.f32 %v392_v24, 0.0  ;;  %v425_v32 = vmax.f32 %v393_v25, 0.0  ;;  %v372_v55 = vmul.f32 %v1317_v7, %v1047_v46  ;;  %v373_v56 = vmul.f32 %v1317_v7, %v1048_v47  ;;  %v1146_v24 = vld [vmem:[%s1307_s29 + $0x30] sm:$0xff]  }
  0x18   : > { %v432_v35 = vmax.f32 %v400_v26, 0.0  ;;  %v433_v36 = vmax.f32 %v401_v28, 0.0  ;;  %v448_v40 = vmin.f32 %v416_v29, 6.0  ;;  %v449_v41 = vmin.f32 %v417_v30, 6.0  ;;  %v1153_v26 = vld [vmem:[%s1307_s29 + $0x68] sm:$0xff]   ;;  %v1150_v30 = vld [vmem:[%s1307_s29 + $0x50] sm:$0xff]  }
  0x19   : > { %563 = vmatpush.bf16.msra.mxu0 %v993_v12  ;;  %1180 = vmatpush.bf16.msra.mxu1 %v993_v12  ;;  %v456_v44 = vmin.f32 %v424_v31, 6.0  ;;  %v457_v45 = vmin.f32 %v425_v32, 6.0  ;;  %v350_v57 = vmul.f32 %v1317_v7, %v1003_v42  ;;  %v351_v58 = vmul.f32 %v1317_v7, %v1004_v43 }
  0x1a   : > { %1181 = vmatpush.bf16.msra.mxu2 %v993_v12  ;;  %1182 = vmatpush.bf16.msra.mxu3 %v993_v12  ;;  %v464_v48 = vmin.f32 %v432_v35, 6.0  ;;  %v465_v53 = vmin.f32 %v433_v36, 6.0  ;;  %v480_v59 = vpack.c.bf16 %v449_v41, %v448_v40  ;;  %v408_v60 = vadd.f32 %v1328_v16, %v372_v55 }
  0x1b   : > { %v409_v61 = vadd.f32 %v1328_v16, %v373_v56  ;;  %v484_v62 = vpack.c.bf16 %v457_v45, %v456_v44  ;;  %v358_v63 = vmul.f32 %v1317_v7, %v1019_v49  ;;  %v359_v0 = vmul.f32 %v1317_v7, %v1020_v50 }
  0x1c   : > { %v366_v1 = vmul.f32 %v1317_v7, %v1035_v51  ;;  %v488_v2 = vpack.c.bf16 %v465_v53, %v464_v48  ;;  %v367_v3 = vmul.f32 %v1317_v7, %v1036_v54  ;;  %v440_v4 = vmax.f32 %v408_v60, 0.0 }
  0x1d   : > { %564 = vmatpush.bf16.msra.mxu0 %v992_v20  ;;  %1183 = vmatpush.bf16.msra.mxu1 %v992_v20  ;;  %v441_v5 = vmax.f32 %v409_v61, 0.0  ;;  %v386_v6 = vadd.f32 %v1328_v16, %v350_v57  ;;  %v387_v8 = vadd.f32 %v1328_v16, %v351_v58  ;;  %v394_v11 = vadd.f32 %v1328_v16, %v358_v63 }
  0x1e   : > { %1184 = vmatpush.bf16.msra.mxu2 %v992_v20  ;;  %1185 = vmatpush.bf16.msra.mxu3 %v992_v20  ;;  %v472_v9 = vmin.f32 %v440_v4, 6.0  ;;  %v395_v12 = vadd.f32 %v1328_v16, %v359_v0  ;;  %v402_v14 = vadd.f32 %v1328_v16, %v366_v1  ;;  %v403_v15 = vadd.f32 %v1328_v16, %v367_v3 }
  0x1f   : > { %v473_v10 = vmin.f32 %v441_v5, 6.0  ;;  %v418_v18 = vmax.f32 %v386_v6, 0.0  ;;  %v419_v19 = vmax.f32 %v387_v8, 0.0  ;;  %v1007_v20 = vunpack.c.l.bf16 %v1142_v13 }
  0x20   : > { %v426_v21 = vmax.f32 %v394_v11, 0.0  ;;  %v427_v22 = vmax.f32 %v395_v12, 0.0  ;;  %v434_v23 = vmax.f32 %v402_v14, 0.0  ;;  %v435_v25 = vmax.f32 %v403_v15, 0.0  ;;  %v1147_v15 = vld [vmem:[%s1307_s29 + $0x38] sm:$0xff]  }
  0x21   : > { %565 = vmatpush.bf16.msra.mxu0 %v991_v27  ;;  %1186 = vmatpush.bf16.msra.mxu1 %v991_v27  ;;  %v492_v17 = vpack.c.bf16 %v473_v10, %v472_v9  ;;  %v451_v28 = vmin.f32 %v419_v19, 6.0  ;;  %v1008_v29 = vunpack.c.h.bf16 %v1142_v13  ;;  %v1051_v31 = vunpack.c.l.bf16 %v1153_v26  ;;  %v1143_v9 = vld [vmem:[%s1307_s29 + $0x18] sm:$0xff]  }
  0x22   : > { %1187 = vmatpush.bf16.msra.mxu2 %v991_v27  ;;  %1188 = vmatpush.bf16.msra.mxu3 %v991_v27  ;;  %v450_v27 = vmin.f32 %v418_v18, 6.0  ;;  %v352_v32 = vmul.f32 %v1317_v7, %v1007_v20  ;;  %v1023_v33 = vunpack.c.l.bf16 %v1146_v24  ;;  %v1052_v35 = vunpack.c.h.bf16 %v1153_v26  ;;  %v1151_v19 = vld [vmem:[%s1307_s29 + $0x58] sm:$0xff]  }
  0x23   : > { %v458_v36 = vmin.f32 %v426_v21, 6.0  ;;  %v459_v37 = vmin.f32 %v427_v22, 6.0  ;;  %v466_v38 = vmin.f32 %v434_v23, 6.0  ;;  %v374_v39 = vmul.f32 %v1317_v7, %v1051_v31 }
  0x24   : > { %v467_v40 = vmin.f32 %v435_v25, 6.0  ;;  %v1039_v41 = vunpack.c.l.bf16 %v1150_v30  ;;  %v1040_v42 = vunpack.c.h.bf16 %v1150_v30  ;;  %v375_v43 = vmul.f32 %v1317_v7, %v1052_v35 }
  0x25   : > { %566 = vmatpush.bf16.msra.mxu0 %v990_v34  ;;  %1189 = vmatpush.bf16.msra.mxu1 %v990_v34  ;;  %v353_v44 = vmul.f32 %v1317_v7, %v1008_v29  ;;  %v410_v45 = vadd.f32 %v1328_v16, %v374_v39  ;;  %v360_v46 = vmul.f32 %v1317_v7, %v1023_v33  ;;  %v1011_v18 = vunpack.c.l.bf16 %v1143_v9  ;;  %v1155_v29 = vld [vmem:[%s1307_s29 + $0x78] sm:$0xff]  }
  0x26   : > { %1190 = vmatpush.bf16.msra.mxu2 %v990_v34  ;;  %1191 = vmatpush.bf16.msra.mxu3 %v990_v34  ;;  %v1024_v34 = vunpack.c.h.bf16 %v1146_v24  ;;  %v411_v48 = vadd.f32 %v1328_v16, %v375_v43  ;;  %v481_v49 = vpack.c.bf16 %v451_v28, %v450_v27  ;;  %v485_v50 = vpack.c.bf16 %v459_v37, %v458_v36 }
  0x27   : > { %v388_v51 = vadd.f32 %v1328_v16, %v352_v32  ;;  %v489_v53 = vpack.c.bf16 %v467_v40, %v466_v38  ;;  %v368_v54 = vmul.f32 %v1317_v7, %v1039_v41  ;;  %v369_v55 = vmul.f32 %v1317_v7, %v1040_v42 }
  0x28   : > { %v361_v47 = vmul.f32 %v1317_v7, %v1024_v34  ;;  %v443_v56 = vmax.f32 %v411_v48, 0.0  ;;  %v389_v57 = vadd.f32 %v1328_v16, %v353_v44  ;;  %v1012_v24 = vunpack.c.h.bf16 %v1143_v9 }
  0x29   : > { %567 = vmatpush.bf16.msra.mxu0 %v989_v52  ;;  %1192 = vmatpush.bf16.msra.mxu1 %v989_v52  ;;  %v404_v63 = vadd.f32 %v1328_v16, %v368_v54  ;;  %v405_v0 = vadd.f32 %v1328_v16, %v369_v55  ;;  %v1027_v25 = vunpack.c.l.bf16 %v1147_v15  ;;  %v1028_v26 = vunpack.c.h.bf16 %v1147_v15 }
  0x2a   : > { %1193 = vmatpush.bf16.msra.mxu2 %v989_v52  ;;  %1194 = vmatpush.bf16.msra.mxu3 %v989_v52  ;;  %v442_v52 = vmax.f32 %v410_v45, 0.0  ;;  %v397_v60 = vadd.f32 %v1328_v16, %v361_v47  ;;  %v475_v61 = vmin.f32 %v443_v56, 6.0  ;;  %v421_v3 = vmax.f32 %v389_v57, 0.0 }
  0x2b   : > { %v436_v13 = vmax.f32 %v404_v63, 0.0  ;;  %v437_v14 = vmax.f32 %v405_v0, 0.0  ;;  %v1043_v32 = vunpack.c.l.bf16 %v1151_v19  ;;  %v1044_v33 = vunpack.c.h.bf16 %v1151_v19 }
  0x2c   : > { %568 = vmatmul.bf16.vlgmr.msra.gmra.mxu0 %v480_v59  ;;  %588 = vmatmul.bf16.vlgmr.msra.gmra.mxu1 %v484_v62  ;;  %v474_v58 = vmin.f32 %v442_v52, 6.0  ;;  %v396_v59 = vadd.f32 %v1328_v16, %v360_v46  ;;  %v420_v62 = vmax.f32 %v388_v51, 0.0  ;;  %v429_v8 = vmax.f32 %v397_v60, 0.0 }
  0x2d   : > { %608 = vmatmul.bf16.vlgmr.msra.gmra.mxu2 %v488_v2  ;;  %628 = vmatmul.bf16.vlgmr.msra.gmra.mxu3 %v492_v17  ;;  %v1154_v2 = vld [vmem:[%s1307_s29 + $0x70] sm:$0xff]   ;;  %v453_v17 = vmin.f32 %v421_v3, 6.0  ;;  %v468_v30 = vmin.f32 %v436_v13, 6.0  ;;  %v469_v31 = vmin.f32 %v437_v14, 6.0  ;;  %v354_v35 = vmul.f32 %v1317_v7, %v1011_v18 }
  0x2e   : > { %v493_v1 = vpack.c.bf16 %v475_v61, %v474_v58  ;;  %v1055_v4 = vunpack.c.l.bf16 %v1154_v2  ;;  %v1056_v5 = vunpack.c.h.bf16 %v1154_v2  ;;  %v428_v6 = vmax.f32 %v396_v59, 0.0 }
  0x2f   : > { %v452_v12 = vmin.f32 %v420_v62, 6.0  ;;  %v461_v23 = vmin.f32 %v429_v8, 6.0  ;;  %v1059_v38 = vunpack.c.l.bf16 %v1155_v29  ;;  %v1060_v39 = vunpack.c.h.bf16 %v1155_v29 }
  0x30   : > { %v376_v10 = vmul.f32 %v1317_v7, %v1055_v4  ;;  %v377_v11 = vmul.f32 %v1317_v7, %v1056_v5  ;;  %v460_v22 = vmin.f32 %v428_v6, 6.0  ;;  %v355_v41 = vmul.f32 %v1317_v7, %v1012_v24 }
  0x31   : > { %v482_v34 = vpack.c.bf16 %v453_v17, %v452_v12  ;;  %v362_v42 = vmul.f32 %v1317_v7, %v1027_v25  ;;  %v363_v43 = vmul.f32 %v1317_v7, %v1028_v26  ;;  %v490_v44 = vpack.c.bf16 %v469_v31, %v468_v30 }
  0x32   : > { %v412_v20 = vadd.f32 %v1328_v16, %v376_v10  ;;  %v413_v21 = vadd.f32 %v1328_v16, %v377_v11  ;;  %v486_v40 = vpack.c.bf16 %v461_v23, %v460_v22  ;;  %v370_v45 = vmul.f32 %v1317_v7, %v1043_v32 }
  0x33   : > { %v371_v46 = vmul.f32 %v1317_v7, %v1044_v33  ;;  %v390_v47 = vadd.f32 %v1328_v16, %v354_v35  ;;  %v391_v51 = vadd.f32 %v1328_v16, %v355_v41  ;;  %v398_v52 = vadd.f32 %v1328_v16, %v362_v42 }
  0x34   : > { %v444_v27 = vmax.f32 %v412_v20, 0.0  ;;  %v445_v28 = vmax.f32 %v413_v21, 0.0  ;;  %v406_v54 = vadd.f32 %v1328_v16, %v370_v45 }
  0x35   : > { %v407_v55 = vadd.f32 %v1328_v16, %v371_v46  ;;  %v422_v58 = vmax.f32 %v390_v47, 0.0  ;;  %v430_v59 = vmax.f32 %v398_v52, 0.0 }
  0x36   : > { %v476_v36 = vmin.f32 %v444_v27, 6.0  ;;  %v477_v37 = vmin.f32 %v445_v28, 6.0  ;;  %v438_v61 = vmax.f32 %v406_v54, 0.0 }
  0x37   : > { %v439_v62 = vmax.f32 %v407_v55, 0.0  ;;  %v462_v3 = vmin.f32 %v430_v59, 6.0 }
  0x38   : > { %v494_v48 = vpack.c.bf16 %v477_v37, %v476_v36  ;;  %v470_v5 = vmin.f32 %v438_v61, 6.0 }
  0x39   : > { %v471_v6 = vmin.f32 %v439_v62, 6.0 }
  0x3c   : > { %573 = vmatmul.bf16.gmra.mxu0 %v481_v49  ;;  %593 = vmatmul.bf16.gmra.mxu1 %v485_v50  ;;  %v378_v49 = vmul.f32 %v1317_v7, %v1059_v38  ;;  %v379_v50 = vmul.f32 %v1317_v7, %v1060_v39  ;;  %v423_v7 = vmax.f32 %v391_v51, 0.0 }
  0x3d   : > { %613 = vmatmul.bf16.gmra.mxu2 %v489_v53  ;;  %633 = vmatmul.bf16.gmra.mxu3 %v493_v1  ;;  %v399_v53 = vadd.f32 %v1328_v16, %v363_v43  ;;  %v454_v1 = vmin.f32 %v422_v58, 6.0 }
  0x3e   : > { %v414_v56 = vadd.f32 %v1328_v16, %v378_v49  ;;  %v415_v57 = vadd.f32 %v1328_v16, %v379_v50  ;;  %v455_v2 = vmin.f32 %v423_v7, 6.0  ;;  %v491_v16 = vpack.c.bf16 %v471_v6, %v470_v5 }
  0x3f   : > { %v431_v60 = vmax.f32 %v399_v53, 0.0 }
  0x40   : > { %v446_v63 = vmax.f32 %v414_v56, 0.0  ;;  %v447_v0 = vmax.f32 %v415_v57, 0.0  ;;  %v483_v10 = vpack.c.bf16 %v455_v2, %v454_v1 }
  0x41   : > { %v463_v4 = vmin.f32 %v431_v60, 6.0 }
  0x42   : > { %v478_v8 = vmin.f32 %v446_v63, 6.0  ;;  %v479_v9 = vmin.f32 %v447_v0, 6.0 }
  0x43   : > { %v487_v11 = vpack.c.bf16 %v463_v4, %v462_v3 }
  0x44   : > { %v495_v12 = vpack.c.bf16 %v479_v9, %v478_v8 }
  0x4c   : > { %578 = vmatmul.bf16.gmra.mxu0 %v482_v34  ;;  %598 = vmatmul.bf16.gmra.mxu1 %v486_v40 }
  0x4d   : > { %618 = vmatmul.bf16.gmra.mxu2 %v490_v44  ;;  %638 = vmatmul.bf16.gmra.mxu3 %v494_v48 }
  0x5c   : > { %583 = vmatmul.bf16.gmra.mxu0 %v483_v10  ;;  %603 = vmatmul.bf16.gmra.mxu1 %v487_v11 }
  0x5d   : > { %623 = vmatmul.bf16.gmra.mxu2 %v491_v16  ;;  %643 = vmatmul.bf16.gmra.mxu3 %v495_v12 }
  0xa9   : > { %v569_v13 = vpop.f32.mrf.mxu0  ;;  %v1417_v14 = vpop.f32.mrf.mxu1 }
  0xaa   : > { %v750_v47 = vmul.f32 %v569_v13, %v569_v13 }
  0xb0   : > { %v1419_v15 = vpop.f32.mrf.mxu2  ;;  %v1432_v21 = vpop.f32.mrf.mxu3 }
  0xb1   : > { %v571_v17 = vpop.f32.mrf.mxu0  ;;  %v1428_v18 = vpop.f32.mrf.mxu1 }
  0xb2   : > { %v1064_v19 = vpack.c.bf16 %v571_v17, %v569_v13  ;;  %v1084_v20 = vpack.c.bf16 %v1428_v18, %v1417_v14  ;;  %v751_v46 = vmul.f32 %v571_v17, %v571_v17  ;;  %v713_v49 = vadd.f32 %v571_v17, %v569_v13 }
  0xb3   : > { %v758_v17 = vmul.f32 %v1417_v14, %v1417_v14 }
  0xb4   : > { %1065 = vst [vmem:[%s1426_s28] sm:$0xff] %v1064_v19   ;;  %v782_v50 = vadd.f32 %v751_v46, %v750_v47 }
  0xb5   : > { %1159 = vst [vmem:[%s1426_s28 + $0x20] sm:$0xff] %v1084_v20  }
  0xb8   : > { %v1436_v22 = vpop.f32.mrf.mxu2  ;;  %v1442_v26 = vpop.f32.mrf.mxu3 }
  0xb9   : > { %v574_v23 = vpop.f32.mrf.mxu0  ;;  %v1438_v24 = vpop.f32.mrf.mxu1  ;;  %v1104_v25 = vpack.c.bf16 %v1436_v22, %v1419_v15  ;;  %v1124_v27 = vpack.c.bf16 %v1442_v26, %v1432_v21 }
  0xba   : > { %v752_v48 = vmul.f32 %v574_v23, %v574_v23  ;;  %v714_v52 = vadd.f32 %v713_v49, %v574_v23 }
  0xbb   : > { %1163 = vst [vmem:[%s1426_s28 + $0x40] sm:$0xff] %v1104_v25  }
  0xbc   : > { %1167 = vst [vmem:[%s1426_s28 + $0x60] sm:$0xff] %v1124_v27   ;;  %v783_v54 = vadd.f32 %v782_v50, %v752_v48 }
  0xc0   : > { %v1448_v28 = vpop.f32.mrf.mxu2  ;;  %v1454_v33 = vpop.f32.mrf.mxu3 }
  0xc1   : > { %v576_v29 = vpop.f32.mrf.mxu0  ;;  %v1450_v30 = vpop.f32.mrf.mxu1 }
  0xc2   : > { %v1069_v31 = vpack.c.bf16 %v576_v29, %v574_v23  ;;  %v1089_v32 = vpack.c.bf16 %v1450_v30, %v1438_v24  ;;  %v753_v51 = vmul.f32 %v576_v29, %v576_v29  ;;  %v715_v7 = vadd.f32 %v714_v52, %v576_v29 }
  0xc3   : > { %v759_v23 = vmul.f32 %v1428_v18, %v1428_v18  ;;  %v760_v29 = vmul.f32 %v1438_v24, %v1438_v24 }
  0xc4   : > { %1156 = vst [vmem:[%s1426_s28 + $0x8] sm:$0xff] %v1069_v31   ;;  %v784_v60 = vadd.f32 %v783_v54, %v753_v51 }
  0xc5   : > { %1160 = vst [vmem:[%s1426_s28 + $0x28] sm:$0xff] %v1089_v32  }
  0xc8   : > { %v1458_v34 = vpop.f32.mrf.mxu2  ;;  %v1464_v38 = vpop.f32.mrf.mxu3 }
  0xc9   : > { %v579_v35 = vpop.f32.mrf.mxu0  ;;  %v1460_v36 = vpop.f32.mrf.mxu1  ;;  %v1109_v37 = vpack.c.bf16 %v1458_v34, %v1448_v28  ;;  %v1129_v39 = vpack.c.bf16 %v1464_v38, %v1454_v33 }
  0xca   : > { %v754_v55 = vmul.f32 %v579_v35, %v579_v35  ;;  %v716_v63 = vadd.f32 %v715_v7, %v579_v35  ;;  %v767_v7 = vmul.f32 %v1436_v22, %v1436_v22 }
  0xcb   : > { %1164 = vst [vmem:[%s1426_s28 + $0x48] sm:$0xff] %v1109_v37  }
  0xcc   : > { %1168 = vst [vmem:[%s1426_s28 + $0x68] sm:$0xff] %v1129_v39   ;;  %v785_v0 = vadd.f32 %v784_v60, %v754_v55 }
  0xd0   : > { %v1470_v40 = vpop.f32.mrf.mxu2  ;;  %v1476_v45 = vpop.f32.mrf.mxu3 }
  0xd1   : > { %v581_v41 = vpop.f32.mrf.mxu0  ;;  %v1472_v42 = vpop.f32.mrf.mxu1 }
  0xd2   : > { %v1074_v43 = vpack.c.bf16 %v581_v41, %v579_v35  ;;  %v1094_v44 = vpack.c.bf16 %v1472_v42, %v1460_v36  ;;  %v755_v61 = vmul.f32 %v581_v41, %v581_v41  ;;  %v717_v2 = vadd.f32 %v716_v63, %v581_v41 }
  0xd3   : > { %v769_v63 = vmul.f32 %v1458_v34, %v1458_v34 }
  0xd4   : > { %1157 = vst [vmem:[%s1426_s28 + $0x10] sm:$0xff] %v1074_v43   ;;  %v786_v3 = vadd.f32 %v785_v0, %v755_v61 }
  0xd5   : > { %1161 = vst [vmem:[%s1426_s28 + $0x30] sm:$0xff] %v1094_v44   ;;  %v762_v44 = vmul.f32 %v1460_v36, %v1460_v36 }
  0xd8   : > { %v1480_v53 = vpop.f32.mrf.mxu2  ;;  %v1484_v59 = vpop.f32.mrf.mxu3 }
  0xd9   : > { %v584_v56 = vpop.f32.mrf.mxu0  ;;  %v604_v57 = vpop.f32.mrf.mxu1  ;;  %v1114_v58 = vpack.c.bf16 %v1480_v53, %v1470_v40  ;;  %v1134_v62 = vpack.c.bf16 %v1484_v59, %v1476_v45 }
  0xda   : > { %v756_v1 = vmul.f32 %v584_v56, %v584_v56  ;;  %v718_v4 = vadd.f32 %v717_v2, %v584_v56  ;;  %v764_v51 = vmul.f32 %v604_v57, %v604_v57 }
  0xdb   : > { %1165 = vst [vmem:[%s1426_s28 + $0x50] sm:$0xff] %v1114_v58  }
  0xdc   : > { %1169 = vst [vmem:[%s1426_s28 + $0x70] sm:$0xff] %v1134_v62   ;;  %v787_v6 = vadd.f32 %v786_v3, %v756_v1 }
  0xe0   : > { %v624_v5 = vpop.f32.mrf.mxu2  ;;  %v1490_v13 = vpop.f32.mrf.mxu3 }
  0xe1   : > { %v586_v8 = vpop.f32.mrf.mxu0  ;;  %v606_v9 = vpop.f32.mrf.mxu1 }
  0xe2   : > { %v1079_v10 = vpack.c.bf16 %v586_v8, %v584_v56  ;;  %v719_v11 = vadd.f32 %v718_v4, %v586_v8  ;;  %v757_v16 = vmul.f32 %v586_v8, %v586_v8  ;;  %v1099_v12 = vpack.c.bf16 %v606_v9, %v604_v57 }
  0xe3   : > { %v765_v55 = vmul.f32 %v606_v9, %v606_v9  ;;  %v766_v56 = vmul.f32 %v1419_v15, %v1419_v15  ;;  %v771_v4 = vmul.f32 %v1480_v53, %v1480_v53 }
  0xe4   : > { %1158 = vst [vmem:[%s1426_s28 + $0x18] sm:$0xff] %v1079_v10   ;;  %v720_v19 = vadd.f32 %v719_v11, %v1417_v14  ;;  %v788_v20 = vadd.f32 %v787_v6, %v757_v16  ;;  %v761_v14 = vmul.f32 %v1450_v30, %v1450_v30 }
  0xe5   : > { %1162 = vst [vmem:[%s1426_s28 + $0x38] sm:$0xff] %v1099_v12  }
  0xe6   : > { %v721_v25 = vadd.f32 %v720_v19, %v1428_v18  ;;  %v789_v27 = vadd.f32 %v788_v20, %v758_v17 }
  0xe8   : > { %v722_v31 = vadd.f32 %v721_v25, %v1438_v24  ;;  %v790_v32 = vadd.f32 %v789_v27, %v759_v23  ;;  %v626_v35 = vpop.f32.mrf.mxu2  ;;  %v646_v43 = vpop.f32.mrf.mxu3  ;;  %v763_v24 = vmul.f32 %v1472_v42, %v1472_v42  ;;  %v777_v25 = vmul.f32 %v1464_v38, %v1464_v38 }
  0xe9   : > { %v1119_v37 = vpack.c.bf16 %v626_v35, %v624_v5  ;;  %v1139_v18 = vpack.c.bf16 %v646_v43, %v1490_v13  ;;  %v773_v16 = vmul.f32 %v626_v35, %v626_v35 }
  0xea   : > { %v791_v39 = vadd.f32 %v790_v32, %v760_v29  ;;  %v723_v41 = vadd.f32 %v722_v31, %v1450_v30 }
  0xeb   : > { %1166 = vst [vmem:[%s1426_s28 + $0x58] sm:$0xff] %v1119_v37  }
  0xec   : > { %v724_v46 = vadd.f32 %v723_v41, %v1460_v36  ;;  %v792_v47 = vadd.f32 %v791_v39, %v761_v14  ;;  %1170 = vst [vmem:[%s1426_s28 + $0x78] sm:$0xff] %v1139_v18   ;;  %v780_v39 = vmul.f32 %v1490_v13, %v1490_v13  ;;  %v781_v18 = vmul.f32 %v646_v43, %v646_v43 }
  0xee   : > { %v725_v48 = vadd.f32 %v724_v46, %v1472_v42  ;;  %v793_v49 = vadd.f32 %v792_v47, %v762_v44  ;;  %v768_v42 = vmul.f32 %v1448_v28, %v1448_v28 }
  0xf0   : > { %v726_v50 = vadd.f32 %v725_v48, %v604_v57  ;;  %v794_v30 = vadd.f32 %v793_v49, %v763_v24 }
  0xf2   : > { %v795_v52 = vadd.f32 %v794_v30, %v764_v51  ;;  %v727_v54 = vadd.f32 %v726_v50, %v606_v9  ;;  %v772_v9 = vmul.f32 %v624_v5, %v624_v5 }
  0xf4   : > { %v728_v58 = vadd.f32 %v727_v54, %v1419_v15  ;;  %v796_v36 = vadd.f32 %v795_v52, %v765_v55  ;;  %v770_v15 = vmul.f32 %v1470_v40, %v1470_v40 }
  0xf6   : > { %v729_v60 = vadd.f32 %v728_v58, %v1436_v22  ;;  %v797_v61 = vadd.f32 %v796_v36, %v766_v56 }
  0xf8   : > { %v730_v57 = vadd.f32 %v729_v60, %v1448_v28  ;;  %v798_v62 = vadd.f32 %v797_v61, %v767_v7 }
  0xfa   : > { %v799_v0 = vadd.f32 %v798_v62, %v768_v42  ;;  %v731_v1 = vadd.f32 %v730_v57, %v1458_v34  ;;  %v774_v34 = vmul.f32 %v1432_v21, %v1432_v21 }
  0xfc   : > { %v732_v2 = vadd.f32 %v731_v1, %v1470_v40  ;;  %v800_v3 = vadd.f32 %v799_v0, %v769_v63  ;;  %v775_v40 = vmul.f32 %v1442_v26, %v1442_v26 }
  0xfe   : > { %v733_v22 = vadd.f32 %v732_v2, %v1480_v53  ;;  %v801_v6 = vadd.f32 %v800_v3, %v770_v15  ;;  %v776_v53 = vmul.f32 %v1454_v33, %v1454_v33 }
 0x100   : > { %v802_v28 = vadd.f32 %v801_v6, %v771_v4  ;;  %v734_v8 = vadd.f32 %v733_v22, %v624_v5 }
 0x102   : > { %v803_v10 = vadd.f32 %v802_v28, %v772_v9  ;;  %v735_v11 = vadd.f32 %v734_v8, %v626_v35  ;;  %v779_v35 = vmul.f32 %v1484_v59, %v1484_v59 }
 0x104   : > { %v736_v12 = vadd.f32 %v735_v11, %v1432_v21  ;;  %v804_v17 = vadd.f32 %v803_v10, %v773_v16  ;;  %v778_v21 = vmul.f32 %v1476_v45, %v1476_v45 }
 0x106   : > { %v737_v19 = vadd.f32 %v736_v12, %v1442_v26  ;;  %v805_v20 = vadd.f32 %v804_v17, %v774_v34 }
 0x108   : > { %v738_v5 = vadd.f32 %v737_v19, %v1454_v33  ;;  %v806_v23 = vadd.f32 %v805_v20, %v775_v40 }
 0x10a   : > { %v807_v27 = vadd.f32 %v806_v23, %v776_v53  ;;  %v739_v29 = vadd.f32 %v738_v5, %v1464_v38 }
 0x10c   : > { %v740_v31 = vadd.f32 %v739_v29, %v1476_v45  ;;  %v808_v32 = vadd.f32 %v807_v27, %v777_v25 }
 0x10e   : > { %v741_v26 = vadd.f32 %v740_v31, %v1484_v59  ;;  %v809_v37 = vadd.f32 %v808_v32, %v778_v21 }
 0x110   : > { %v810_v33 = vadd.f32 %v809_v37, %v779_v35  ;;  %v742_v14 = vadd.f32 %v741_v26, %v1490_v13 }
 0x112   : > { %v811_v38 = vadd.f32 %v810_v33, %v780_v39  ;;  %v743_v41 = vadd.f32 %v742_v14, %v646_v43 }
 0x114   : > { %v744_v44 = vrot.slane %v743_v41, 4  ;;  %v812_v46 = vadd.f32 %v811_v38, %v781_v18 }
 0x116   : > { %v745_v45 = vadd.f32 %v744_v44, %v743_v41  ;;  %v813_v47 = vrot.slane %v812_v46, 4 }
 0x118   : > { %v746_v24 = vrot.slane %v745_v45, 2  ;;  %v814_v48 = vadd.f32 %v813_v47, %v812_v46 }
 0x11a   : > { %v747_v49 = vadd.f32 %v746_v24, %v745_v45  ;;  %v815_v50 = vrot.slane %v814_v48, 2 }
 0x11c   : > { %v748_v59 = vrot.slane %v747_v49, 1  ;;  %v816_v51 = vadd.f32 %v815_v50, %v814_v48 }
 0x11e   : > { %v817_v30 = vrot.slane %v816_v51, 1  ;;  %v749_v13 = vadd.f32 %v748_v59, %v747_v49 }
 0x120   : > { %v818_v52 = vadd.f32 %v817_v30, %v816_v51 }
 0x122   : > { %v820_v43 = vsel %vm819_vm0, %v749_v13, %v818_v52 }
 0x123   : > { %821 = vst [vmem:[%s278_s6] sm:$0x3] %v820_v43 }
 0x124 PF: > { %s16_s20 = sadd.s32 1, %s1243_s20   ;;  %s1573_s18 = smov %s1239_s19 }
 0x125   : > { %p13_p5 = scmp.ge.s32.totalorder %s16_s20, 4   ;;  %s1574_s19 = smov %s1576_s21 }
 0x127   :  { %15 = sbr.rel (!%p13_p5) target bundleno = 2 (0x2), region = 78 }

// kernel: bottleneck_forward.5
= control target key start
LH: loop header
LB: loop body
LE: loop exit
PB: predicated region body
PF: predicated region fallthrough
CT: control target
= control target key end

     0   :  { %s4463_s24 = smov 0   ;;  %s4465_s25 = smov 0   ;;  %s5551_s0 = inlined_call_operand.vmem [shape: bf16[2,16,16,128], index: 0, kind: input, shape index: {}, may-alias: {0,1,2}]   ;;  %s5552_s1 = inlined_call_operand.vmem [shape: bf16[2,16,16,128], index: 1, kind: input, shape index: {}, may-alias: {0,1,2}]   ;;  %s5553_s2 = inlined_call_operand.vmem [shape: bf16[2,16,16,128], index: 2, kind: input, shape index: {}, may-alias: {0,1,2}]   ;;  %s5554_s3 = inlined_call_operand.vmem [shape: f32[1,128], index: 3, kind: input, shape index: {}]   ;;  %s5555_s4 = inlined_call_operand.vmem [shape: f32[1,128], index: 4, kind: input, shape index: {}]   ;;  %s5556_s5 = inlined_call_operand.vmem [shape: bf16[1152,128], index: 5, kind: input, shape index: {}]   ;;  %s5557_s6 = inlined_call_operand.vmem [shape: bf16[2,256,128], index: 6, kind: output, shape index: {0}]   ;;  %s5558_s7 = inlined_call_operand.vmem [shape: f32[4,2,128], index: 7, kind: output, shape index: {1}]  }
   0x1   :  { %s4467_s26 = smov 0   ;;  %s4469_s27 = smov 0  }
   0x2   :  { %s4471_s28 = smov 0  }
   0x3 LB: > { %s27_s29 = sadd.s32 1, %s4411_s26  ;;  %s30_s30 = sadd.s32 1, %s4415_s27  ;;  %s4419_s28 = sphi %s4471_s28, %s18_s28   ;;  %s4415_s27 = sphi %s4469_s27, %s5576_s27   ;;  %s4411_s26 = sphi %s4467_s26, %s5575_s26   ;;  %s4407_s25 = sphi %s4465_s25, %s5574_s25   ;;  %s4403_s24 = sphi %s4463_s24, %s5573_s24  }
   0x4   : > { %p28_p0 = scmp.ge.s32.totalorder %s27_s29, 2  ;;  %p3672_p1 = scmp.ge.s32.totalorder %s4419_s28, 1 }
   0x5   : > { %p330_p2 = scmp.lt.s32.totalorder %s4419_s28, 5 }
   0x6   : > { %s5578_s29 = smov (%p28_p0, %s27_s29), 0  ;;  %s5580_s30 = smov (!%p28_p0, %s30_s30), %s4415_s27 }
   0x7   : > { %p331_p3 = pnand %p3672_p1, %p330_p2  ;;  %p32_p4 = scmp.ge.s32.totalorder %s5580_s30, 2 }
   0x8   : > { %s3673_s8 = sshll.u32 (!%p331_p3), %s4403_s24, 3  ;;  %p404_p5 = scmp.lt.s32.totalorder (!%p331_p3), %s4407_s25, 1 }
   0x9   : > { %s5582_s30 = smov (%p32_p4, %s5580_s30), 0  ;;  %334 = sbr.rel (%p331_p3) target bundleno = 625 (0x271), region = 44 }
   0xa   : > { %p406_p6 = scmp.lt.s32.totalorder (!%p331_p3), %s3673_s8, 15  ;;  %s3678_s9 = sadd.s32 (!%p331_p3), 4294967295, %s3673_s8 }
   0xb   : > { %p416_p7 = scmp.gt.s32.totalorder (!%p331_p3), %s3678_s9, 0  ;;  %p3679_p8 = scmp.lt.s32.totalorder (!%p331_p3), %s3678_s9, 15 }
   0xc   : > { %s4120_s15 = sadd.s32 (!%p331_p3), 8, %s3673_s8  ;;  %s3694_s21 = sshll.u32 (!%p331_p3), %s4403_s24, 4 }
   0xd   : > { %p4503_p9 = scmp.lt.s32.totalorder (!%p331_p3), %s4120_s15, 15  ;;  %p4538_p10 = scmp.lt.s32.totalorder (!%p331_p3), %s3694_s21, 31 }
   0xe   : > { %s405_s10 = scalar_select %p404_p5, %s4407_s25, 1  ;;  %v4516_v0 = vld [vmem:[%s5554_s3] ss:$0 sm:$0xff]  ;;  %vm751_vm0 = vcmask 1043456   ;;  %vm752_vm1 = vsmask.f32 7938 }
   0xf   : > { %s407_s11 = scalar_select %p406_p6, %s3673_s8, 15  ;;  %v4526_v5 = vld [vmem:[%s5555_s4] ss:$0 sm:$0xff]  ;;  %vm587_vm2 = vsmask.f32 256  ;;  %vm758_vm4 = vcmask 1040384   ;;  %vm4586_vm5 = vmand %vm751_vm0, %vm752_vm1 }
  0x10   : > { %s4500_s12 = sshll.u32 %s405_s10, 5  ;;  %s5584_s15 = smov (!%p4503_p9, %s4120_s15), 15  ;;  %vm588_vm3 = vsmask.f32 4368  ;;  %v754_v59 = vld [vmem:[#allocation2 + $0xc] sm:$0xf]  ;;  %vm4598_vm7 = vmand %vm758_vm4, %vm587_vm2 }
  0x11   : > { %s3674_s13 = sshll.u32 %s407_s11, 1  ;;  %s5588_s15 = smov (!%p4503_p9, %s5584_s15), 15  ;;  %vm4592_vm6 = vmor %vm587_vm2, %vm588_vm3 }
  0x12   : > { %s410_s14 = sadd.s32 %s4500_s12, %s3674_s13  ;;  %s5590_s21 = smov (!%p4538_p10, %s3694_s21), 31 }
  0x13   : > { %s3676_s16 = sshll.u32 %s410_s14, 2  ;;  %p3699_p12 = scmp.le.s32.totalorder %s4403_s24, 0 }
  0x14   : > { %s4510_s20 = scalar_lea.vmem %s5551_s0, %s3676_s16  ;;  %s3691_s16 = sshll.u32 %s5588_s15, 1 }
  0x15   : > { %s417_s8 = scalar_select %p416_p7, %s3678_s9, 0  ;;  %v4218_v1 = vld [vmem:[%s4510_s20] sm:$0xff]   ;;  %v4297_v2 = vld [vmem:[%s4510_s20 + $0x8] sm:$0xff]   ;;  %v4298_v3 = vld [vmem:[%s4510_s20 + $0x10] sm:$0xff]  }
  0x16   : > { %v4219_v4 = vunpack.c.l.bf16 %v4218_v1  ;;  %v4220_v6 = vunpack.c.h.bf16 %v4218_v1  ;;  %v4223_v7 = vunpack.c.l.bf16 %v4297_v2  ;;  %v4224_v8 = vunpack.c.h.bf16 %v4297_v2  ;;  %v4299_v9 = vld [vmem:[%s4510_s20 + $0x18] sm:$0xff]   ;;  %s441_s18 = sadd.s32 %s3691_s16, %s4500_s12  ;;  %s454_s16 = sadd.s32 %s4500_s12, %s5590_s21 }
  0x17   : > { %s5586_s8 = smov (!%p3679_p8, %s417_s8), 15  ;;  %v4227_v10 = vunpack.c.l.bf16 %v4298_v3  ;;  %v4228_v11 = vunpack.c.h.bf16 %v4298_v3  ;;  %v4231_v12 = vunpack.c.l.bf16 %v4299_v9  ;;  %v4232_v13 = vunpack.c.h.bf16 %v4299_v9  ;;  %s4561_s23 = sshll.u32 %s441_s18, 2 }
  0x18   : > { %v504_v14 = vmul.f32 %v4516_v0, %v4219_v4  ;;  %v505_v15 = vmul.f32 %v4516_v0, %v4220_v6  ;;  %v506_v16 = vmul.f32 %v4516_v0, %v4223_v7  ;;  %v507_v17 = vmul.f32 %v4516_v0, %v4224_v8  ;;  %s3684_s13 = sshll.u32 %s5586_s8, 1  ;;  %s443_s11 = scalar_lea.vmem %s5553_s2, %s4561_s23  ;;  %v760_v4 = vld [vmem:[#allocation2 + $0x14] sm:$0x1] }
  0x19   : > { %v508_v18 = vmul.f32 %v4516_v0, %v4227_v10  ;;  %v509_v19 = vmul.f32 %v4516_v0, %v4228_v11  ;;  %v510_v20 = vmul.f32 %v4516_v0, %v4231_v12  ;;  %v511_v21 = vmul.f32 %v4516_v0, %v4232_v13  ;;  %s424_s14 = sadd.s32 %s3684_s13, %s4500_s12  ;;  %s3697_s13 = sshll.u32 %s4407_s25, 1 }
  0x1a   : > { %v523_v22 = vadd.f32 %v4526_v5, %v504_v14  ;;  %v524_v23 = vadd.f32 %v4526_v5, %v505_v15  ;;  %v525_v24 = vadd.f32 %v4526_v5, %v506_v16  ;;  %v526_v25 = vadd.f32 %v4526_v5, %v507_v17  ;;  %s3686_s17 = sshll.u32 %s424_s14, 2  ;;  %s459_s14 = sadd.s32 %s4403_s24, %s3697_s13  ;;  %v763_v17 = vld [vmem:[#allocation2 + $0x18] sm:$0xf] }
  0x1b   : > { %v527_v26 = vadd.f32 %v4526_v5, %v508_v18  ;;  %v528_v27 = vadd.f32 %v4526_v5, %v509_v19  ;;  %v529_v28 = vadd.f32 %v4526_v5, %v510_v20  ;;  %v530_v29 = vadd.f32 %v4526_v5, %v511_v21  ;;  %s4559_s22 = scalar_lea.vmem %s5552_s1, %s3686_s17  ;;  %p460_p11 = scmp.lt.s32.totalorder %s459_s14, 3  ;;  %v767_v18 = vld [vmem:[#allocation2 + $0x20] sm:$0x1] }
  0x1c   : > { %v539_v30 = vmax.f32 %v523_v22, 0.0  ;;  %v540_v31 = vmax.f32 %v524_v23, 0.0  ;;  %v541_v32 = vmax.f32 %v525_v24, 0.0  ;;  %v542_v33 = vmax.f32 %v526_v25, 0.0  ;;  %s3696_s25 = sshll.u32 %s454_s16, 2 }
  0x1d   : > { %v543_v34 = vmax.f32 %v527_v26, 0.0  ;;  %v544_v35 = vmax.f32 %v528_v27, 0.0  ;;  %v545_v36 = vmax.f32 %v529_v28, 0.0  ;;  %v546_v37 = vmax.f32 %v530_v29, 0.0  ;;  %s4581_s18 = scalar_lea.vmem %s5557_s6, %s3696_s25  ;;  %s5592_s14 = smov (!%p460_p11, %s459_s14), 3 }
  0x1e   : > { %v555_v38 = vmin.f32 %v539_v30, 6.0  ;;  %v556_v39 = vmin.f32 %v540_v31, 6.0  ;;  %v557_v40 = vmin.f32 %v541_v32, 6.0  ;;  %v558_v41 = vmin.f32 %v542_v33, 6.0  ;;  %s3698_s12 = sshll.u32 %s5592_s14, 1  ;;  %v4300_v33 = vld [vmem:[%s4510_s20 + $0x20] sm:$0xff]  }
  0x1f   : > { %v559_v42 = vmin.f32 %v543_v34, 6.0  ;;  %v560_v43 = vmin.f32 %v544_v35, 6.0  ;;  %v561_v44 = vmin.f32 %v545_v36, 6.0  ;;  %v562_v45 = vmin.f32 %v546_v37, 6.0  ;;  %s4605_s19 = scalar_lea.vmem %s5558_s7, %s3698_s12  ;;  %v770_v27 = vld [vmem:[#allocation2 + $0x24] sm:$0xf] }
  0x20   : > { %v571_v46 = vpack.c.bf16 %v555_v38, %v555_v38  ;;  %v572_v47 = vpack.c.bf16 %v556_v39, %v556_v39  ;;  %v573_v48 = vpack.c.bf16 %v557_v40, %v557_v40  ;;  %v574_v49 = vpack.c.bf16 %v558_v41, %v558_v41  ;;  %v774_v32 = vld [vmem:[#allocation2 + $0x2c] sm:$0x1] }
  0x21   : > { %v575_v50 = vpack.c.bf16 %v559_v42, %v559_v42  ;;  %v576_v51 = vpack.c.bf16 %v560_v43, %v560_v43  ;;  %v4574_v52 = vpack.c.bf16 %v561_v44, %v561_v44  ;;  %v4576_v53 = vpack.c.bf16 %v562_v45, %v562_v45  ;;  %v4301_v38 = vld [vmem:[%s4510_s20 + $0x28] sm:$0xff]  }
  0x22   : > { %v591_v54 = vshrl.u32 %v571_v46, 16  ;;  %v594_v55 = vshll.u32 %v571_v46, 16  ;;  %v599_v56 = vshrl.u32 %v572_v47, 16  ;;  %v602_v57 = vshll.u32 %v572_v47, 16 }
  0x23   : > { %v608_v60 = vshrl.u32 %v573_v48, 16  ;;  %v611_v61 = vshll.u32 %v573_v48, 16  ;;  %v616_v62 = vshrl.u32 %v574_v49, 16  ;;  %v619_v63 = vshll.u32 %v574_v49, 16  ;;  %v777_v49 = vld [vmem:[#allocation2 + $0x30] sm:$0xf] }
  0x24   : > { %v593_v1 = vrot.slane %v591_v54, 7  ;;  %v601_v3 = vrot.slane %v599_v56, 7  ;;  %v625_v6 = vshrl.u32 %v575_v50, 16  ;;  %v628_v7 = vshll.u32 %v575_v50, 16 }
  0x25   : > { %v610_v9 = vrot.slane %v608_v60, 7  ;;  %v618_v10 = vrot.slane %v616_v62, 7  ;;  %v633_v11 = vshrl.u32 %v576_v51, 16  ;;  %v636_v12 = vshll.u32 %v576_v51, 16 }
  0x26   : > { %v596_v13 = vor.u32 %v594_v55, %v593_v1  ;;  %v597_v14 = vrot.slane %v593_v1, 4  ;;  %v604_v15 = vor.u32 %v602_v57, %v601_v3  ;;  %v606_v16 = vrot.slane %v601_v3, 4  ;;  %v781_v55 = vld [vmem:[#allocation2 + $0x38] sm:$0x1] }
  0x27   : > { %v613_v19 = vor.u32 %v611_v61, %v610_v9  ;;  %v614_v20 = vrot.slane %v610_v9, 4  ;;  %v621_v21 = vor.u32 %v619_v63, %v618_v10  ;;  %v623_v22 = vrot.slane %v618_v10, 4 }
  0x28   : > { %v755_v23 = vsel %vm4586_vm5, %v596_v13, %v754_v59  ;;  %v605_v24 = vsel %vm4592_vm6, %v597_v14, %v604_v15  ;;  %v761_v25 = vsel %vm4598_vm7, %v606_v16, %v760_v4  ;;  %v627_v26 = vrot.slane %v625_v6, 7  ;;  %v4303_v6 = vld [vmem:[%s4510_s20 + $0x38] sm:$0xff]  }
  0x29   : > { %756 = vst [vmem:[#allocation2 + $0xc] sm:$0xf] %v755_v23  ;;  %v764_v28 = vsel %vm4586_vm5, %v613_v19, %v763_v17  ;;  %v622_v29 = vsel %vm4592_vm6, %v614_v20, %v621_v21  ;;  %v768_v30 = vsel %vm4598_vm7, %v623_v22, %v767_v18  ;;  %v635_v31 = vrot.slane %v633_v11, 7 }
  0x2a   : > { %757 = vst [vmem:[#allocation2 + $0x10] sm:$0xf] %v605_v24  ;;  %v630_v34 = vor.u32 %v628_v7, %v627_v26  ;;  %v631_v35 = vrot.slane %v627_v26, 4  ;;  %v642_v36 = vshrl.u32 %v4574_v52, 16  ;;  %v645_v37 = vshll.u32 %v4574_v52, 16  ;;  %v4302_v52 = vld [vmem:[%s4510_s20 + $0x30] sm:$0xff]  }
  0x2b   : > { %762 = vst [vmem:[#allocation2 + $0x14] sm:$0x1] %v761_v25  ;;  %v638_v39 = vor.u32 %v636_v12, %v635_v31  ;;  %v640_v40 = vrot.slane %v635_v31, 4  ;;  %v650_v41 = vshrl.u32 %v4576_v53, 16  ;;  %v653_v42 = vshll.u32 %v4576_v53, 16 }
  0x2c   : > { %765 = vst [vmem:[#allocation2 + $0x18] sm:$0xf] %v764_v28  ;;  %v771_v43 = vsel %vm4586_vm5, %v630_v34, %v770_v27  ;;  %v644_v44 = vrot.slane %v642_v36, 7  ;;  %v4235_v45 = vunpack.c.l.bf16 %v4300_v33  ;;  %v4236_v46 = vunpack.c.h.bf16 %v4300_v33 }
  0x2d   : > { %766 = vst [vmem:[#allocation2 + $0x1c] sm:$0xf] %v622_v29  ;;  %v639_v47 = vsel %vm4592_vm6, %v631_v35, %v638_v39  ;;  %v775_v48 = vsel %vm4598_vm7, %v640_v40, %v774_v32  ;;  %v652_v50 = vrot.slane %v650_v41, 7  ;;  %v4239_v51 = vunpack.c.l.bf16 %v4301_v38 }
  0x2e   : > { %769 = vst [vmem:[#allocation2 + $0x20] sm:$0x1] %v768_v30  ;;  %v647_v53 = vor.u32 %v645_v37, %v644_v44  ;;  %v648_v54 = vrot.slane %v644_v44, 4  ;;  %v512_v56 = vmul.f32 %v4516_v0, %v4235_v45  ;;  %v513_v57 = vmul.f32 %v4516_v0, %v4236_v46  ;;  %v784_v45 = vld [vmem:[#allocation2 + $0x3c] sm:$0xf] }
  0x2f   : > { %772 = vst [vmem:[#allocation2 + $0x24] sm:$0xf] %v771_v43  ;;  %v655_v59 = vor.u32 %v653_v42, %v652_v50  ;;  %v657_v60 = vrot.slane %v652_v50, 4  ;;  %v514_v61 = vmul.f32 %v4516_v0, %v4239_v51  ;;  %v4240_v62 = vunpack.c.h.bf16 %v4301_v38 }
  0x30   : > { %773 = vst [vmem:[#allocation2 + $0x28] sm:$0xf] %v639_v47  ;;  %v778_v63 = vsel %vm4586_vm5, %v647_v53, %v777_v49  ;;  %v531_v1 = vadd.f32 %v4526_v5, %v512_v56  ;;  %v532_v3 = vadd.f32 %v4526_v5, %v513_v57  ;;  %v4243_v4 = vunpack.c.l.bf16 %v4302_v52  ;;  %v788_v49 = vld [vmem:[#allocation2 + $0x44] sm:$0x1] }
  0x31   : > { %776 = vst [vmem:[#allocation2 + $0x2c] sm:$0x1] %v775_v48  ;;  %v656_v7 = vsel %vm4592_vm6, %v648_v54, %v655_v59  ;;  %v782_v9 = vsel %vm4598_vm7, %v657_v60, %v781_v55  ;;  %v533_v10 = vadd.f32 %v4526_v5, %v514_v61  ;;  %v515_v11 = vmul.f32 %v4516_v0, %v4240_v62  ;;  %v791_v59 = vld [vmem:[#allocation2 + $0x48] sm:$0xf] }
  0x32   : > { %779 = vst [vmem:[#allocation2 + $0x30] sm:$0xf] %v778_v63  ;;  %v547_v12 = vmax.f32 %v531_v1, 0.0  ;;  %v548_v13 = vmax.f32 %v532_v3, 0.0  ;;  %v516_v14 = vmul.f32 %v4516_v0, %v4243_v4  ;;  %v4244_v15 = vunpack.c.h.bf16 %v4302_v52 }
  0x33   : > { %780 = vst [vmem:[#allocation2 + $0x34] sm:$0xf] %v656_v7  ;;  %v549_v16 = vmax.f32 %v533_v10, 0.0  ;;  %v534_v17 = vadd.f32 %v4526_v5, %v515_v11  ;;  %v4247_v18 = vunpack.c.l.bf16 %v4303_v6  ;;  %v4248_v19 = vunpack.c.h.bf16 %v4303_v6  ;;  %v795_v6 = vld [vmem:[#allocation2 + $0x50] sm:$0x1] }
  0x34   : > { %783 = vst [vmem:[#allocation2 + $0x38] sm:$0x1] %v782_v9  ;;  %v563_v20 = vmin.f32 %v547_v12, 6.0  ;;  %v564_v21 = vmin.f32 %v548_v13, 6.0  ;;  %v535_v22 = vadd.f32 %v4526_v5, %v516_v14  ;;  %v517_v23 = vmul.f32 %v4516_v0, %v4244_v15  ;;  %v798_v13 = vld [vmem:[#allocation2 + $0x54] sm:$0xf] }
  0x35   : > { %v565_v24 = vmin.f32 %v549_v16, 6.0  ;;  %v550_v25 = vmax.f32 %v534_v17, 0.0  ;;  %v518_v26 = vmul.f32 %v4516_v0, %v4247_v18  ;;  %v519_v27 = vmul.f32 %v4516_v0, %v4248_v19 }
  0x36   : > { %v579_v28 = vpack.c.bf16 %v563_v20, %v563_v20  ;;  %v580_v29 = vpack.c.bf16 %v564_v21, %v564_v21  ;;  %v551_v30 = vmax.f32 %v535_v22, 0.0  ;;  %v536_v31 = vadd.f32 %v4526_v5, %v517_v23 }
  0x37   : > { %v581_v32 = vpack.c.bf16 %v565_v24, %v565_v24  ;;  %v566_v33 = vmin.f32 %v550_v25, 6.0  ;;  %v537_v34 = vadd.f32 %v4526_v5, %v518_v26  ;;  %v538_v35 = vadd.f32 %v4526_v5, %v519_v27 }
  0x38   : > { %v659_v36 = vshrl.u32 %v579_v28, 16  ;;  %v662_v37 = vshll.u32 %v579_v28, 16  ;;  %v667_v38 = vshrl.u32 %v580_v29, 16  ;;  %v670_v39 = vshll.u32 %v580_v29, 16 }
  0x39   : > { %v676_v40 = vshrl.u32 %v581_v32, 16  ;;  %v679_v41 = vshll.u32 %v581_v32, 16  ;;  %v582_v42 = vpack.c.bf16 %v566_v33, %v566_v33  ;;  %v567_v43 = vmin.f32 %v551_v30, 6.0  ;;  %v802_v32 = vld [vmem:[#allocation2 + $0x5c] sm:$0x1] }
  0x3a   : > { %v661_v44 = vrot.slane %v659_v36, 7  ;;  %v669_v46 = vrot.slane %v667_v38, 7  ;;  %v552_v47 = vmax.f32 %v536_v31, 0.0  ;;  %v553_v48 = vmax.f32 %v537_v34, 0.0  ;;  %v805_v33 = vld [vmem:[#allocation2 + $0x60] sm:$0xf] }
  0x3b   : > { %v678_v50 = vrot.slane %v676_v40, 7  ;;  %v684_v51 = vshrl.u32 %v582_v42, 16  ;;  %v687_v52 = vshll.u32 %v582_v42, 16  ;;  %v583_v53 = vpack.c.bf16 %v567_v43, %v567_v43 }
  0x3c   : > { %v664_v54 = vor.u32 %v662_v37, %v661_v44  ;;  %v665_v55 = vrot.slane %v661_v44, 4  ;;  %v672_v56 = vor.u32 %v670_v39, %v669_v46  ;;  %v674_v57 = vrot.slane %v669_v46, 4  ;;  %v809_v44 = vld [vmem:[#allocation2 + $0x68] sm:$0x1] }
  0x3d   : > { %v681_v60 = vor.u32 %v679_v41, %v678_v50  ;;  %v682_v61 = vrot.slane %v678_v50, 4  ;;  %v686_v62 = vrot.slane %v684_v51, 7  ;;  %v693_v63 = vshrl.u32 %v583_v53, 16 }
  0x3e   : > { %v785_v1 = vsel %vm4586_vm5, %v664_v54, %v784_v45  ;;  %v673_v3 = vsel %vm4592_vm6, %v665_v55, %v672_v56  ;;  %v789_v4 = vsel %vm4598_vm7, %v674_v57, %v788_v49  ;;  %v696_v7 = vshll.u32 %v583_v53, 16 }
  0x3f   : > { %786 = vst [vmem:[#allocation2 + $0x3c] sm:$0xf] %v785_v1  ;;  %v792_v9 = vsel %vm4586_vm5, %v681_v60, %v791_v59  ;;  %v689_v10 = vor.u32 %v687_v52, %v686_v62  ;;  %v691_v11 = vrot.slane %v686_v62, 4  ;;  %v695_v12 = vrot.slane %v693_v63, 7 }
  0x40   : > { %787 = vst [vmem:[#allocation2 + $0x40] sm:$0xf] %v673_v3  ;;  %v568_v14 = vmin.f32 %v552_v47, 6.0  ;;  %v569_v15 = vmin.f32 %v553_v48, 6.0  ;;  %v554_v16 = vmax.f32 %v538_v35, 0.0 }
  0x41   : > { %790 = vst [vmem:[#allocation2 + $0x44] sm:$0x1] %v789_v4  ;;  %v690_v17 = vsel %vm4592_vm6, %v682_v61, %v689_v10  ;;  %v796_v18 = vsel %vm4598_vm7, %v691_v11, %v795_v6  ;;  %v698_v19 = vor.u32 %v696_v7, %v695_v12  ;;  %v699_v29 = vrot.slane %v695_v12, 4 }
  0x42   : > { %793 = vst [vmem:[#allocation2 + $0x48] sm:$0xf] %v792_v9  ;;  %v584_v20 = vpack.c.bf16 %v568_v14, %v568_v14  ;;  %v585_v21 = vpack.c.bf16 %v569_v15, %v569_v15  ;;  %v570_v22 = vmin.f32 %v554_v16, 6.0 }
  0x43   : > { %794 = vst [vmem:[#allocation2 + $0x4c] sm:$0xf] %v690_v17  ;;  %v799_v23 = vsel %vm4586_vm5, %v698_v19, %v798_v13 }
  0x44   : > { %797 = vst [vmem:[#allocation2 + $0x50] sm:$0x1] %v796_v18  ;;  %v701_v24 = vshrl.u32 %v584_v20, 16  ;;  %v704_v25 = vshll.u32 %v584_v20, 16  ;;  %v710_v26 = vshrl.u32 %v585_v21, 16  ;;  %v713_v27 = vshll.u32 %v585_v21, 16 }
  0x45   : > { %800 = vst [vmem:[#allocation2 + $0x54] sm:$0xf] %v799_v23  ;;  %v586_v28 = vpack.c.bf16 %v570_v22, %v570_v22 }
  0x46   : > { %v703_v30 = vrot.slane %v701_v24, 7  ;;  %v712_v31 = vrot.slane %v710_v26, 7 }
  0x47   : > { %v718_v34 = vshrl.u32 %v586_v28, 16  ;;  %v721_v35 = vshll.u32 %v586_v28, 16 }
  0x48   : > { %v706_v36 = vor.u32 %v704_v25, %v703_v30  ;;  %v708_v37 = vrot.slane %v703_v30, 4  ;;  %v715_v38 = vor.u32 %v713_v27, %v712_v31  ;;  %v716_v39 = vrot.slane %v712_v31, 4 }
  0x49   : > { %v720_v40 = vrot.slane %v718_v34, 7 }
  0x4a   : > { %v707_v41 = vsel %vm4592_vm6, %v699_v29, %v706_v36  ;;  %v803_v42 = vsel %vm4598_vm7, %v708_v37, %v802_v32  ;;  %v806_v43 = vsel %vm4586_vm5, %v715_v38, %v805_v33 }
  0x4b   : > { %801 = vst [vmem:[#allocation2 + $0x58] sm:$0xf] %v707_v41  ;;  %v723_v45 = vor.u32 %v721_v35, %v720_v40  ;;  %v725_v46 = vrot.slane %v720_v40, 4  ;;  %815 = sbr.rel (%p3699_p12) target bundleno = 103 (0x67), region = 48 }
  0x4c   : > { %804 = vst [vmem:[#allocation2 + $0x5c] sm:$0x1] %v803_v42 }
  0x4d   : > { %807 = vst [vmem:[#allocation2 + $0x60] sm:$0xf] %v806_v43  ;;  %v724_v47 = vsel %vm4592_vm6, %v716_v39, %v723_v45  ;;  %v810_v48 = vsel %vm4598_vm7, %v725_v46, %v809_v44 }
  0x4e   : > { %808 = vst [vmem:[#allocation2 + $0x64] sm:$0xf] %v724_v47 }
  0x4f   : > { %811 = vst [vmem:[#allocation2 + $0x68] sm:$0x1] %v810_v48 }
  0x50   : > { %v4250_v49 = vld [vmem:[%s4559_s22] sm:$0xff]   ;;  %v854_v10 = vld [vmem:[#allocation2 + $0x8] sm:$0x1] }
  0x51   : > { %v4251_v50 = vunpack.c.l.bf16 %v4250_v49  ;;  %v4252_v51 = vunpack.c.h.bf16 %v4250_v49  ;;  %v850_v9 = vld [vmem:[#allocation2] sm:$0xf] }
  0x53   : > { %v820_v52 = vmul.f32 %v4516_v0, %v4251_v50  ;;  %v821_v53 = vmul.f32 %v4516_v0, %v4252_v51 }
  0x55   : > { %v822_v54 = vadd.f32 %v4526_v5, %v820_v52  ;;  %v823_v55 = vadd.f32 %v4526_v5, %v821_v53 }
  0x57   : > { %v824_v56 = vmax.f32 %v822_v54, 0.0  ;;  %v825_v57 = vmax.f32 %v823_v55, 0.0 }
  0x59   : > { %v826_v59 = vmin.f32 %v824_v56, 6.0  ;;  %v827_v60 = vmin.f32 %v825_v57, 6.0 }
  0x5b   : > { %v828_v61 = vpack.c.bf16 %v826_v59, %v826_v59  ;;  %v829_v62 = vpack.c.bf16 %v827_v60, %v827_v60 }
  0x5d   : > { %v831_v63 = vshrl.u32 %v828_v61, 16  ;;  %v834_v1 = vshll.u32 %v828_v61, 16  ;;  %v839_v3 = vshrl.u32 %v829_v62, 16  ;;  %v842_v4 = vshll.u32 %v829_v62, 16 }
  0x5f   : > { %v833_v6 = vrot.slane %v831_v63, 7  ;;  %v841_v7 = vrot.slane %v839_v3, 7 }
  0x61   : > { %v836_v11 = vor.u32 %v834_v1, %v833_v6  ;;  %v837_v12 = vrot.slane %v833_v6, 4  ;;  %v844_v13 = vor.u32 %v842_v4, %v841_v7  ;;  %v846_v14 = vrot.slane %v841_v7, 4 }
  0x63   : > { %v851_v15 = vsel %vm4586_vm5, %v836_v11, %v850_v9  ;;  %v845_v16 = vsel %vm4592_vm6, %v837_v12, %v844_v13  ;;  %v855_v17 = vsel %vm4598_vm7, %v846_v14, %v854_v10 }
  0x64   : > { %852 = vst [vmem:[#allocation2] sm:$0xf] %v851_v15 }
  0x65   : > { %853 = vst [vmem:[#allocation2 + $0x4] sm:$0xf] %v845_v16 }
  0x66   : > { %856 = vst [vmem:[#allocation2 + $0x8] sm:$0x1] %v855_v17 }
  0x67 PF: > { %p3700_p13 = scmp.ne.s32.totalorder %s4403_s24, 0 }
  0x69   : > { %860 = sbr.rel (%p3700_p13) target bundleno = 114 (0x72), region = 52 }
  0x6e   : > { %v861_v18 = vld [vmem:[#allocation2] sm:$0xf]  ;;  %v865_v19 = vld [vmem:[#allocation2 + $0x8] sm:$0x1]  ;;  %v4421_v21 = vmov 0  }
  0x6f   : > { %v862_v20 = vsel %vm4586_vm5, 0, %v861_v18  ;;  %864 = vst [vmem:[#allocation2 + $0x4] sm:$0xf] %v4421_v21  ;;  %v866_v22 = vsel %vm4598_vm7, 0, %v865_v19 }
  0x70   : > { %863 = vst [vmem:[#allocation2] sm:$0xf] %v862_v20 }
  0x71   : > { %867 = vst [vmem:[#allocation2 + $0x8] sm:$0x1] %v866_v22 }
  0x72 PF: > { %p3701_p0 = scmp.ge.s32.totalorder %s4403_s24, 1 }
  0x74   : > { %871 = sbr.rel (%p3701_p0) target bundleno = 144 (0x90), region = 56 }
  0x79   : > { %v4254_v23 = vld [vmem:[%s443_s11] sm:$0xff]   ;;  %v907_v42 = vld [vmem:[#allocation2 + $0x6c] sm:$0xf]  ;;  %v911_v43 = vld [vmem:[#allocation2 + $0x74] sm:$0x1] }
  0x7a   : > { %v4255_v24 = vunpack.c.l.bf16 %v4254_v23  ;;  %v4256_v25 = vunpack.c.h.bf16 %v4254_v23 }
  0x7c   : > { %v876_v26 = vmul.f32 %v4516_v0, %v4255_v24  ;;  %v877_v27 = vmul.f32 %v4516_v0, %v4256_v25 }
  0x7e   : > { %v878_v28 = vadd.f32 %v4526_v5, %v876_v26  ;;  %v879_v29 = vadd.f32 %v4526_v5, %v877_v27 }
  0x80   : > { %v880_v30 = vmax.f32 %v878_v28, 0.0  ;;  %v881_v31 = vmax.f32 %v879_v29, 0.0 }
  0x82   : > { %v882_v32 = vmin.f32 %v880_v30, 6.0  ;;  %v883_v33 = vmin.f32 %v881_v31, 6.0 }
  0x84   : > { %v884_v34 = vpack.c.bf16 %v882_v32, %v882_v32  ;;  %v885_v35 = vpack.c.bf16 %v883_v33, %v883_v33 }
  0x86   : > { %v887_v36 = vshrl.u32 %v884_v34, 16  ;;  %v890_v37 = vshll.u32 %v884_v34, 16  ;;  %v895_v38 = vshrl.u32 %v885_v35, 16  ;;  %v898_v39 = vshll.u32 %v885_v35, 16 }
  0x88   : > { %v889_v40 = vrot.slane %v887_v36, 7  ;;  %v897_v41 = vrot.slane %v895_v38, 7 }
  0x8a   : > { %v892_v44 = vor.u32 %v890_v37, %v889_v40  ;;  %v893_v0 = vrot.slane %v889_v40, 4  ;;  %v900_v45 = vor.u32 %v898_v39, %v897_v41  ;;  %v902_v46 = vrot.slane %v897_v41, 4 }
  0x8c   : > { %v908_v5 = vsel %vm4586_vm5, %v892_v44, %v907_v42  ;;  %v901_v47 = vsel %vm4592_vm6, %v893_v0, %v900_v45  ;;  %v912_v48 = vsel %vm4598_vm7, %v902_v46, %v911_v43 }
  0x8d   : > { %909 = vst [vmem:[#allocation2 + $0x6c] sm:$0xf] %v908_v5 }
  0x8e   : > { %910 = vst [vmem:[#allocation2 + $0x70] sm:$0xf] %v901_v47 }
  0x8f   : > { %913 = vst [vmem:[#allocation2 + $0x74] sm:$0x1] %v912_v48 }
  0x90 PF: > { %p3702_p1 = scmp.ne.s32.totalorder %s4403_s24, 1 }
  0x92   : > { %917 = sbr.rel (%p3702_p1) target bundleno = 155 (0x9b), region = 60 }
  0x97   : > { %v919_v49 = vld [vmem:[#allocation2 + $0x6c] sm:$0xf]  ;;  %v923_v50 = vld [vmem:[#allocation2 + $0x74] sm:$0x1]  ;;  %v4422_v52 = vmov 0  }
  0x98   : > { %v920_v51 = vsel %vm4586_vm5, 0, %v919_v49  ;;  %922 = vst [vmem:[#allocation2 + $0x70] sm:$0xf] %v4422_v52  ;;  %v924_v2 = vsel %vm4598_vm7, 0, %v923_v50 }
  0x99   : > { %921 = vst [vmem:[#allocation2 + $0x6c] sm:$0xf] %v920_v51 }
  0x9a   : > { %925 = vst [vmem:[#allocation2 + $0x74] sm:$0x1] %v924_v2 }
  0x9b PF: > { %v4144_v53 = vld [vmem:[%s5556_s5 + $0x78] sm:$0xff]  ;;  %v4143_v54 = vld [vmem:[%s5556_s5 + $0x70] sm:$0xff]  ;;  %vm4727_vm8 = vmand %vm758_vm4, %vm752_vm1  ;;  %vm1027_vm9 = vsmask.f32 3328  ;;  %vm1028_vm10 = vsmask.f32 7440 }
  0x9c   : > { %4311 = vmatpush.bf16.msra.mxu1 %v4144_v53  ;;  %4312 = vmatpush.bf16.msra.mxu2 %v4144_v53  ;;  %v932_v58 = vld [vmem:[#allocation2 + $0x18] sm:$0x1]  ;;  %v963_v57 = vld [vmem:[#allocation2 + $0x20] sm:$0x1]  ;;  %v4731_v59 = vld [vmem:[#allocation2 + $0x1c] sm:$0xf] }
  0x9d   : > { %4313 = vmatpush.bf16.msra.mxu3 %v4144_v53  ;;  %1318 = vmatpush.bf16.msra.mxu0 %v4144_v53  ;;  %v933_v55 = vsel %vm4598_vm7, 0, %v932_v58  ;;  %v4142_v60 = vld [vmem:[%s5556_s5 + $0x68] sm:$0xff]  ;;  %v964_v61 = vsel %vm4727_vm8, 0, %v963_v57  ;;  %v1088_v62 = vshll.u32 %v4731_v59, 16  ;;  %v1092_v63 = vshrl.u32 %v4731_v59, 16  ;;  %v4141_v17 = vld [vmem:[%s5556_s5 + $0x60] sm:$0xff]  ;;  %vm4773_vm11 = vmor %vm1027_vm9, %vm1028_vm10 }
  0x9e   : > { %934 = vst [vmem:[#allocation2 + $0x18] sm:$0x1] %v933_v55  ;;  %v938_v1 = vld [vmem:[#allocation2 + $0x30] sm:$0x1]  ;;  %v969_v3 = vld [vmem:[#allocation2 + $0x38] sm:$0x1] }
  0x9f   : > { %965 = vst [vmem:[#allocation2 + $0x20] sm:$0x1] %v964_v61  ;;  %v4740_v4 = vrot.slane %v1088_v62, 5  ;;  %v1094_v6 = vrot.slane %v1092_v63, 4  ;;  %v939_v7 = vsel %vm4598_vm7, 0, %v938_v1  ;;  %v970_v9 = vsel %vm4727_vm8, 0, %v969_v3 }
  0xa0   : > { %4314 = vmatpush.bf16.msra.mxu1 %v4143_v54  ;;  %4315 = vmatpush.bf16.msra.mxu2 %v4143_v54  ;;  %v4746_v10 = vld [vmem:[#allocation2 + $0x34] sm:$0xf]  ;;  %940 = vst [vmem:[#allocation2 + $0x30] sm:$0x1] %v939_v7  ;;  %v944_v13 = vld [vmem:[#allocation2 + $0x48] sm:$0x1] }
  0xa1   : > { %4316 = vmatpush.bf16.msra.mxu3 %v4143_v54  ;;  %1319 = vmatpush.bf16.msra.mxu0 %v4143_v54  ;;  %v1136_v11 = vshll.u32 %v4746_v10, 16  ;;  %v1140_v12 = vshrl.u32 %v4746_v10, 16  ;;  %v1095_v14 = vor.u32 %v1094_v6, %v4740_v4  ;;  %971 = vst [vmem:[#allocation2 + $0x38] sm:$0x1] %v970_v9  ;;  %v945_v15 = vsel %vm4598_vm7, 0, %v944_v13  ;;  %v4140_v27 = vld [vmem:[%s5556_s5 + $0x58] sm:$0xff] }
  0xa2   : > { %v975_v16 = vld [vmem:[#allocation2 + $0x50] sm:$0x1]  ;;  %946 = vst [vmem:[#allocation2 + $0x48] sm:$0x1] %v945_v15  ;;  %v1000_v21 = vld [vmem:[#allocation2 + $0x4c] sm:$0xf] }
  0xa3   : > { %v4756_v18 = vrot.slane %v1136_v11, 5  ;;  %v1142_v19 = vrot.slane %v1140_v12, 4  ;;  %v976_v20 = vsel %vm4727_vm8, 0, %v975_v16  ;;  %v1184_v24 = vshll.u32 %v1000_v21, 16  ;;  %v926_v26 = vld [vmem:[#allocation2] sm:$0x1] }
  0xa4   : > { %4317 = vmatpush.bf16.msra.mxu1 %v4142_v60  ;;  %4318 = vmatpush.bf16.msra.mxu2 %v4142_v60  ;;  %977 = vst [vmem:[#allocation2 + $0x50] sm:$0x1] %v976_v20  ;;  %v1188_v25 = vshrl.u32 %v1000_v21, 16  ;;  %v1096_v31 = vrot.slane %v1095_v14, 4  ;;  %v927_v32 = vsel %vm4598_vm7, 0, %v926_v26  ;;  %v4139_v54 = vld [vmem:[%s5556_s5 + $0x50] sm:$0xff] }
  0xa5   : > { %4319 = vmatpush.bf16.msra.mxu3 %v4142_v60  ;;  %1320 = vmatpush.bf16.msra.mxu0 %v4142_v60  ;;  %v991_v22 = vld [vmem:[#allocation2 + $0x18] sm:$0xf]  ;;  %v1143_v23 = vor.u32 %v1142_v19, %v4756_v18  ;;  %v4769_v35 = vrot.slane %v1184_v24, 5  ;;  %928 = vst [vmem:[#allocation2] sm:$0x1] %v927_v32  ;;  %v4138_v16 = vld [vmem:[%s5556_s5 + $0x48] sm:$0xff] }
  0xa6   : > { %v4764_v28 = vld [vmem:[#allocation2 + $0x20] sm:$0x1]  ;;  %v1079_v29 = vshrl.u32 %v991_v22, 16  ;;  %v1082_v30 = vshll.u32 %v991_v22, 16  ;;  %v1190_v36 = vrot.slane %v1188_v25, 4  ;;  %vm1536_vm12 = vcmask 1042432  }
  0xa7   : > { %v1098_v33 = vshll.u32 %v4764_v28, 16  ;;  %v1144_v34 = vrot.slane %v1143_v23, 4  ;;  %v995_v40 = vld [vmem:[#allocation2 + $0x30] sm:$0xf]  ;;  %v957_v41 = vld [vmem:[#allocation2 + $0x8] sm:$0x1] }
  0xa8   : > { %4320 = vmatpush.bf16.msra.mxu1 %v4141_v17  ;;  %4321 = vmatpush.bf16.msra.mxu2 %v4141_v17  ;;  %v1081_v38 = vrot.slane %v1079_v29, 4  ;;  %v1084_v39 = vrot.slane %v1082_v30, 5  ;;  %v4777_v43 = vld [vmem:[#allocation2 + $0x38] sm:$0x1]  ;;  %v1127_v44 = vshrl.u32 %v995_v40, 16  ;;  %v1130_v0 = vshll.u32 %v995_v40, 16 }
  0xa9   : > { %4322 = vmatpush.bf16.msra.mxu3 %v4141_v17  ;;  %1321 = vmatpush.bf16.msra.mxu0 %v4141_v17  ;;  %v1100_v42 = vrot.slane %v1098_v33, 5  ;;  %v1191_v45 = vor.u32 %v1190_v36, %v4769_v35  ;;  %v1146_v5 = vshll.u32 %v4777_v43, 16  ;;  %v999_v47 = vld [vmem:[#allocation2 + $0x48] sm:$0xf]  ;;  %v958_v48 = vsel %vm4727_vm8, 0, %v957_v41  ;;  %v4137_v29 = vld [vmem:[%s5556_s5 + $0x40] sm:$0xff] }
  0xaa   : > { %v1085_v46 = vor.u32 %v1084_v39, %v1081_v38  ;;  %v4783_v49 = vld [vmem:[#allocation2 + $0x4] sm:$0xf]  ;;  %v1129_v51 = vrot.slane %v1127_v44, 4  ;;  %v1132_v52 = vrot.slane %v1130_v0, 5  ;;  %v1175_v53 = vshrl.u32 %v999_v47, 16  ;;  %v4152_v0 = vld [vmem:[%s5556_s5 + $0xb8] sm:$0xff] }
  0xab   : > { %v1101_v50 = vsel %vm4773_vm11, %v1096_v31, %v1100_v42  ;;  %v1025_v2 = vld [vmem:[#allocation2 + $0x50] sm:$0x1]  ;;  %v1148_v57 = vrot.slane %v1146_v5, 5  ;;  %v1178_v60 = vshll.u32 %v999_v47, 16  ;;  %959 = vst [vmem:[#allocation2 + $0x8] sm:$0x1] %v958_v48 }
  0xac   : > { %4323 = vmatpush.bf16.msra.mxu1 %v4140_v27  ;;  %4324 = vmatpush.bf16.msra.mxu2 %v4140_v27  ;;  %v1086_v58 = vrot.slane %v1085_v46, 4  ;;  %v4790_v55 = vunpack.c.l.b16 %v1101_v50  ;;  %v1133_v61 = vor.u32 %v1132_v52, %v1129_v51  ;;  %v1177_v62 = vrot.slane %v1175_v53, 4  ;;  %v987_v9 = vld [vmem:[#allocation2] sm:$0xf]  ;;  %v935_v21 = vld [vmem:[#allocation2 + $0x24] sm:$0x1] }
  0xad   : > { %4325 = vmatpush.bf16.msra.mxu3 %v4140_v27  ;;  %1322 = vmatpush.bf16.msra.mxu0 %v4140_v27  ;;  %v1192_v63 = vrot.slane %v1191_v45, 4  ;;  %v1194_v1 = vshll.u32 %v1025_v2, 16  ;;  %v1149_v6 = vsel %vm4773_vm11, %v1144_v34, %v1148_v57  ;;  %v1180_v7 = vrot.slane %v1178_v60, 5  ;;  %v966_v26 = vld [vmem:[#allocation2 + $0x2c] sm:$0x1]  ;;  %v4136_v48 = vld [vmem:[%s5556_s5 + $0x38] sm:$0xff] }
  0xae   : > { %v1091_v3 = vsel %vm4773_vm11, %v1086_v58, %v4740_v4  ;;  %v1040_v11 = vshll.u32 %v4783_v49, 16  ;;  %v1134_v13 = vrot.slane %v1133_v61, 4  ;;  %v4800_v14 = vunpack.c.l.b16 %v1149_v6  ;;  %v4815_v27 = vld [vmem:[#allocation2 + $0x28] sm:$0xf]  ;;  %v941_v34 = vld [vmem:[#allocation2 + $0x3c] sm:$0x1] }
  0xaf   : > { %v4798_v12 = vunpack.c.l.b16 %v1091_v3  ;;  %v1196_v15 = vrot.slane %v1194_v1, 5  ;;  %v1181_v4 = vor.u32 %v1180_v7, %v1177_v62  ;;  %v1031_v17 = vshrl.u32 %v987_v9, 16  ;;  %v4840_v5 = vld [vmem:[#allocation2 + $0x40] sm:$0xf]  ;;  %v947_v52 = vld [vmem:[#allocation2 + $0x54] sm:$0x1] }
  0xb0   : > { %4326 = vmatpush.bf16.msra.mxu1 %v4139_v54  ;;  %4327 = vmatpush.bf16.msra.mxu2 %v4139_v54  ;;  %v1034_v19 = vshll.u32 %v987_v9, 16  ;;  %v4805_v20 = vrot.slane %v1040_v11, 5  ;;  %v1139_v23 = vsel %vm4773_vm11, %v1134_v13, %v4756_v18  ;;  %v1044_v25 = vshrl.u32 %v4783_v49, 16  ;;  %v972_v18 = vld [vmem:[#allocation2 + $0x44] sm:$0x1]  ;;  %v4168_v61 = vld [vmem:[%s5556_s5 + $0xf8] sm:$0xff] }
  0xb1   : > { %4328 = vmatpush.bf16.msra.mxu3 %v4139_v54  ;;  %1323 = vmatpush.bf16.msra.mxu0 %v4139_v54  ;;  %v1256_v22 = vpack.c.b16 %v4790_v55, %v4798_v12  ;;  %v1197_v24 = vsel %vm4773_vm11, %v1192_v63, %v1196_v15  ;;  %v4820_v30 = vunpack.c.l.b16 %v1139_v23  ;;  %v1182_v31 = vrot.slane %v1181_v4, 4  ;;  %v978_v57 = vld [vmem:[#allocation2 + $0x5c] sm:$0x1]  ;;  %v4151_v6 = vld [vmem:[%s5556_s5 + $0xb0] sm:$0xff]  ;;  %v4150_v55 = vld [vmem:[%s5556_s5 + $0xa8] sm:$0xff] }
  0xb2   : > { %v4822_v32 = vunpack.c.l.b16 %v1197_v24  ;;  %v1033_v33 = vrot.slane %v1031_v17, 4  ;;  %v4824_v36 = vld [vmem:[#allocation2 + $0x8] sm:$0x1]  ;;  %v1036_v38 = vrot.slane %v1034_v19, 5  ;;  %v1046_v39 = vrot.slane %v1044_v25, 4  ;;  %v4176_v1 = vld [vmem:[%s5556_s5 + $0x138] sm:$0xff] }
  0xb3   : > { %v936_v40 = vsel %vm4598_vm7, 0, %v935_v21  ;;  %v967_v41 = vsel %vm4727_vm8, 0, %v966_v26  ;;  %v1258_v42 = vpack.c.b16 %v4800_v14, %v4820_v30  ;;  %v1187_v44 = vsel %vm4773_vm11, %v1182_v31, %v4769_v35  ;;  %v4878_v17 = vld [vmem:[#allocation2 + $0x58] sm:$0xf]  ;;  %v929_v19 = vld [vmem:[#allocation2 + $0xc] sm:$0x1] }
  0xb4   : > { %4329 = vmatpush.bf16.msra.mxu1 %v4138_v16  ;;  %4330 = vmatpush.bf16.msra.mxu2 %v4138_v16  ;;  %v1050_v45 = vshll.u32 %v4824_v36, 16  ;;  %937 = vst [vmem:[#allocation2 + $0x24] sm:$0x1] %v936_v40  ;;  %v1112_v46 = vshll.u32 %v4815_v27, 16  ;;  %v1250_v47 = vunpack.c.l.b16 %v1187_v44  ;;  %v1037_v50 = vor.u32 %v1036_v38, %v1033_v33  ;;  %v960_v26 = vld [vmem:[#allocation2 + $0x14] sm:$0x1] }
  0xb5   : > { %4331 = vmatpush.bf16.msra.mxu3 %v4138_v16  ;;  %1324 = vmatpush.bf16.msra.mxu0 %v4138_v16  ;;  %v1047_v35 = vor.u32 %v1046_v39, %v4805_v20  ;;  %968 = vst [vmem:[#allocation2 + $0x2c] sm:$0x1] %v967_v41  ;;  %v1116_v51 = vshrl.u32 %v4815_v27, 16  ;;  %v942_v54 = vsel %vm4598_vm7, 0, %v941_v34  ;;  %v973_v58 = vsel %vm4727_vm8, 0, %v972_v18  ;;  %v4135_v16 = vld [vmem:[%s5556_s5 + $0x30] sm:$0xff] }
  0xb6   : > { %v1052_v2 = vrot.slane %v1050_v45, 5  ;;  %v4847_v53 = vrot.slane %v1112_v46, 5  ;;  %v1260_v60 = vpack.c.b16 %v4822_v32, %v1250_v47  ;;  %v1038_v62 = vrot.slane %v1037_v50, 4  ;;  %943 = vst [vmem:[#allocation2 + $0x3c] sm:$0x1] %v942_v54  ;;  %v4134_v45 = vld [vmem:[%s5556_s5 + $0x28] sm:$0xff] }
  0xb7   : > { %v1048_v63 = vrot.slane %v1047_v35, 4  ;;  %v1118_v3 = vrot.slane %v1116_v51, 4  ;;  %974 = vst [vmem:[#allocation2 + $0x44] sm:$0x1] %v973_v58  ;;  %v1160_v7 = vshll.u32 %v4840_v5, 16  ;;  %v1164_v9 = vshrl.u32 %v4840_v5, 16 }
  0xb8   : > { %4332 = vmatpush.bf16.msra.mxu1 %v4137_v29  ;;  %4333 = vmatpush.bf16.msra.mxu2 %v4137_v29  ;;  %v948_v11 = vsel %vm4598_vm7, 0, %v947_v52  ;;  %v979_v13 = vsel %vm4727_vm8, 0, %v978_v57  ;;  %v1043_v14 = vsel %vm4773_vm11, %v1038_v62, %v4805_v20  ;;  %v4175_v20 = vld [vmem:[%s5556_s5 + $0x130] sm:$0xff]  ;;  %v1208_v32 = vshll.u32 %v4878_v17, 16  ;;  %v4174_v35 = vld [vmem:[%s5556_s5 + $0x128] sm:$0xff] }
  0xb9   : > { %4334 = vmatpush.bf16.msra.mxu3 %v4137_v29  ;;  %1325 = vmatpush.bf16.msra.mxu0 %v4137_v29  ;;  %v1053_v15 = vsel %vm4773_vm11, %v1048_v63, %v1052_v2  ;;  %v1119_v4 = vor.u32 %v1118_v3, %v4847_v53  ;;  %949 = vst [vmem:[#allocation2 + $0x54] sm:$0x1] %v948_v11  ;;  %v1238_v21 = vunpack.c.l.b16 %v1043_v14  ;;  %v4883_v24 = vrot.slane %v1160_v7, 5  ;;  %v4167_v29 = vld [vmem:[%s5556_s5 + $0xf0] sm:$0xff]  ;;  %v4166_v63 = vld [vmem:[%s5556_s5 + $0xe8] sm:$0xff]  ;;  %v4149_v11 = vld [vmem:[%s5556_s5 + $0xa0] sm:$0xff] }
  0xba   : > { %v1239_v23 = vunpack.c.l.b16 %v1053_v15  ;;  %v1166_v25 = vrot.slane %v1164_v9, 4  ;;  %980 = vst [vmem:[#allocation2 + $0x5c] sm:$0x1] %v979_v13  ;;  %v1212_v33 = vshrl.u32 %v4878_v17, 16  ;;  %v930_v34 = vsel %vm4598_vm7, 0, %v929_v19 }
  0xbb   : > { %1336 = vmatmul.bf16.vlgmr.msra.gmra.mxu1 %v1256_v22  ;;  %1346 = vmatmul.bf16.vlgmr.msra.gmra.mxu2 %v1258_v42  ;;  %v993_v30 = vld [vmem:[#allocation2 + $0x24] sm:$0xf]  ;;  %v1120_v31 = vrot.slane %v1119_v4, 4  ;;  %931 = vst [vmem:[#allocation2 + $0xc] sm:$0x1] %v930_v34  ;;  %v4902_v41 = vrot.slane %v1208_v32, 5 }
  0xbc   : > { %1691 = vmatpush.bf16.msrb.mxu2 %v4152_v0  ;;  %1463 = vmatpush.bf16.msrb.mxu1 %v4136_v48  ;;  %v1254_v18 = vpack.c.b16 %v1239_v23, %v1238_v21  ;;  %v4898_v12 = vld [vmem:[#allocation2 + $0x2c] sm:$0x1]  ;;  %v1103_v22 = vshrl.u32 %v993_v30, 16  ;;  %v1106_v38 = vshll.u32 %v993_v30, 16  ;;  %v1167_v39 = vor.u32 %v1166_v25, %v4883_v24  ;;  %v4906_v0 = vld [vmem:[#allocation2 + $0x10] sm:$0xf] }
  0xbd   : > { %1356 = vmatmul.bf16.vlgmr.msra.gmra.mxu3 %v1260_v60  ;;  %2261 = vmatpush.bf16.msrb.mxu0 %v4176_v1  ;;  %v1122_v40 = vshll.u32 %v4898_v12, 16  ;;  %v1214_v42 = vrot.slane %v1212_v33, 4  ;;  %v961_v44 = vsel %vm4727_vm8, 0, %v960_v26  ;;  %v997_v48 = vld [vmem:[#allocation2 + $0x3c] sm:$0xf]  ;;  %v1064_v62 = vshll.u32 %v4906_v0, 16 }
  0xbe   : > { %1884 = vmatpush.bf16.msrb.mxu3 %v4168_v61  ;;  %1326 = vmatmul.bf16.vlgmr.msra.gmra.mxu0 %v1254_v18  ;;  %v1105_v46 = vrot.slane %v1103_v22, 4  ;;  %v1108_v47 = vrot.slane %v1106_v38, 5  ;;  %v1168_v50 = vrot.slane %v1167_v39, 4  ;;  %v4914_v52 = vld [vmem:[#allocation2 + $0x44] sm:$0x1]  ;;  %v1151_v2 = vshrl.u32 %v997_v48, 16 }
  0xbf   : > { %v1124_v51 = vrot.slane %v1122_v40, 5  ;;  %v1154_v54 = vshll.u32 %v997_v48, 16  ;;  %v1215_v58 = vor.u32 %v1214_v42, %v4902_v41  ;;  %v1170_v60 = vshll.u32 %v4914_v52, 16  ;;  %962 = vst [vmem:[#allocation2 + $0x14] sm:$0x1] %v961_v44  ;;  %v4133_v4 = vld [vmem:[%s5556_s5 + $0x20] sm:$0xff] }
  0xc0   : > { %1692 = vmatpush.bf16.msrb.mxu2 %v4151_v6  ;;  %1464 = vmatpush.bf16.msrb.mxu1 %v4135_v16  ;;  %v1109_v57 = vor.u32 %v1108_v47, %v1105_v46  ;;  %v1001_v61 = vld [vmem:[#allocation2 + $0x54] sm:$0xf]  ;;  %v1153_v3 = vrot.slane %v1151_v2, 4  ;;  %v4173_v26 = vld [vmem:[%s5556_s5 + $0x120] sm:$0xff]  ;;  %v1068_v42 = vshrl.u32 %v4906_v0, 16  ;;  %v1066_v48 = vrot.slane %v1064_v62, 5 }
  0xc1   : > { %2262 = vmatpush.bf16.msrb.mxu0 %v4175_v20  ;;  %v1125_v1 = vsel %vm4773_vm11, %v1120_v31, %v1124_v51  ;;  %v1156_v6 = vrot.slane %v1154_v54, 5  ;;  %v4924_v7 = vld [vmem:[#allocation2 + $0x5c] sm:$0x1]  ;;  %v1199_v9 = vshrl.u32 %v1001_v61, 16  ;;  %v1172_v15 = vrot.slane %v1170_v60, 5  ;;  %v4165_v33 = vld [vmem:[%s5556_s5 + $0xe0] sm:$0xff] }
  0xc2   : > { %1885 = vmatpush.bf16.msrb.mxu3 %v4167_v29  ;;  %v1110_v13 = vrot.slane %v1109_v57, 4  ;;  %v1245_v14 = vunpack.c.l.b16 %v1125_v1  ;;  %v1202_v16 = vshll.u32 %v1001_v61, 16  ;;  %v1216_v23 = vrot.slane %v1215_v58, 4  ;;  %v989_v25 = vld [vmem:[#allocation2 + $0xc] sm:$0xf]  ;;  %v4132_v51 = vld [vmem:[%s5556_s5 + $0x18] sm:$0xff] }
  0xc3   : > { %v1157_v19 = vor.u32 %v1156_v6, %v1153_v3  ;;  %v1201_v21 = vrot.slane %v1199_v9, 4  ;;  %v1218_v20 = vshll.u32 %v4924_v7, 16  ;;  %v1173_v30 = vsel %vm4773_vm11, %v1168_v50, %v1172_v15  ;;  %v4164_v2 = vld [vmem:[%s5556_s5 + $0xd8] sm:$0xff]  ;;  %v1512_v58 = vld [vmem:[#allocation2] sm:$0xe]  ;;  %v4147_v6 = vld [vmem:[%s5556_s5 + $0x90] sm:$0xff] }
  0xc4   : > { %1693 = vmatpush.bf16.msrb.mxu2 %v4150_v55  ;;  %1465 = vmatpush.bf16.msrb.mxu1 %v4134_v45  ;;  %v1115_v29 = vsel %vm4773_vm11, %v1110_v13, %v4847_v53  ;;  %v1204_v31 = vrot.slane %v1202_v16, 5  ;;  %v1055_v32 = vshrl.u32 %v989_v25, 16  ;;  %v1249_v55 = vunpack.c.l.b16 %v1173_v30  ;;  %v4148_v53 = vld [vmem:[%s5556_s5 + $0x98] sm:$0xff]  ;;  %v1949_v62 = vld [vmem:[#allocation2 + $0xc] sm:$0xf] }
  0xc5   : > { %2263 = vmatpush.bf16.msrb.mxu0 %v4174_v35  ;;  %v1244_v34 = vunpack.c.l.b16 %v1115_v29  ;;  %v1158_v18 = vrot.slane %v1157_v19, 4  ;;  %v1220_v22 = vrot.slane %v1218_v20, 5  ;;  %v1058_v40 = vshll.u32 %v989_v25, 16  ;;  %v4172_v61 = vld [vmem:[%s5556_s5 + $0x118] sm:$0xff]  ;;  %v4972_v15 = vld [vmem:[#allocation2 + $0x10] sm:$0xf] }
  0xc6   : > { %1886 = vmatpush.bf16.msrb.mxu3 %v4166_v63  ;;  %v1205_v38 = vor.u32 %v1204_v31, %v1201_v21  ;;  %v1057_v39 = vrot.slane %v1055_v32, 4  ;;  %v4953_v47 = vld [vmem:[#allocation2 + $0x14] sm:$0x1]  ;;  %v1070_v57 = vrot.slane %v1068_v42, 4  ;;  %v1541_v9 = vrot.slane %v4783_v49, 5  ;;  %v4162_v42 = vld [vmem:[%s5556_s5 + $0xc8] sm:$0xff] }
  0xc7   : > { %v1257_v44 = vpack.c.b16 %v1245_v14, %v1244_v34  ;;  %v1163_v45 = vsel %vm4773_vm11, %v1158_v18, %v4883_v24  ;;  %v1221_v46 = vsel %vm4773_vm11, %v1216_v23, %v1220_v22  ;;  %v1060_v54 = vrot.slane %v1058_v40, 5  ;;  %v4163_v20 = vld [vmem:[%s5556_s5 + $0xd0] sm:$0xff] }
  0xc8   : > { %1694 = vmatpush.bf16.msrb.mxu2 %v4149_v11  ;;  %1466 = vmatpush.bf16.msrb.mxu1 %v4133_v4  ;;  %v1248_v50 = vunpack.c.l.b16 %v1163_v45  ;;  %v1206_v35 = vrot.slane %v1205_v38, 4  ;;  %v1253_v24 = vunpack.c.l.b16 %v1221_v46  ;;  %v1074_v60 = vshll.u32 %v4953_v47, 16  ;;  %v4171_v25 = vld [vmem:[%s5556_s5 + $0x110] sm:$0xff] }
  0xc9   : > { %2264 = vmatpush.bf16.msrb.mxu0 %v4173_v26  ;;  %v1061_v3 = vor.u32 %v1060_v54, %v1057_v39  ;;  %v1071_v13 = vor.u32 %v1070_v57, %v1066_v48  ;;  %vm1537_vm13 = vcmask 1046532   ;;  %v3799_v4 = vrot.slane %v1512_v58, 9  ;;  %v4995_v32 = vld [vmem:[#allocation2 + $0x14] sm:$0x1]  ;;  %v4200_v54 = vld [vmem:[%s5556_s5 + $0x1b8] sm:$0xff]  ;;  %v4129_v58 = vld [vmem:[%s5556_s5] sm:$0xff] }
  0xca   : > { %1887 = vmatpush.bf16.msrb.mxu3 %v4165_v33  ;;  %v1259_v63 = vpack.c.b16 %v1249_v55, %v1248_v50  ;;  %v1211_v1 = vsel %vm4773_vm11, %v1206_v35, %v4902_v41  ;;  %v1076_v14 = vrot.slane %v1074_v60, 5  ;;  %v4131_v41 = vld [vmem:[%s5556_s5 + $0x10] sm:$0xff]  ;;  %v1544_v19 = vrot.slane %v4824_v36, 5  ;;  %v4146_v36 = vld [vmem:[%s5556_s5 + $0x88] sm:$0xff]  ;;  %vm4991_vm14 = vmor %vm1536_vm12, %vm1537_vm13 }
  0xcb   : > { %1341 = vmatmul.bf16.gmra.mxu1 %v1257_v44  ;;  %v1252_v11 = vunpack.c.l.b16 %v1211_v1  ;;  %v1062_v16 = vrot.slane %v1061_v3, 4  ;;  %v1974_v21 = vshrl.u32 %v1949_v62, 16  ;;  %v1072_v49 = vrot.slane %v1071_v13, 4  ;;  %v4170_v44 = vld [vmem:[%s5556_s5 + $0x108] sm:$0xff]  ;;  %v5039_v13 = vld [vmem:[#allocation2 + $0x1c] sm:$0xf] }
  0xcc   : > { %1695 = vmatpush.bf16.msrb.mxu2 %v4148_v53  ;;  %1467 = vmatpush.bf16.msrb.mxu1 %v4132_v51  ;;  %v1543_v26 = vrot.slane %v1541_v9, 4  ;;  %v1977_v29 = vshll.u32 %v1949_v62, 16  ;;  %v1983_v34 = vshll.u32 %v4972_v15, 16  ;;  %v4130_v53 = vld [vmem:[%s5556_s5 + $0x8] sm:$0xff]  ;;  %v1987_v40 = vshrl.u32 %v4972_v15, 16  ;;  %v4145_v51 = vld [vmem:[%s5556_s5 + $0x80] sm:$0xff] }
  0xcd   : > { %1351 = vmatmul.bf16.gmra.mxu2 %v1259_v63  ;;  %v1261_v23 = vpack.c.b16 %v1253_v24, %v1252_v11  ;;  %2265 = vmatpush.bf16.msrb.mxu0 %v4172_v61  ;;  %v1067_v30 = vsel %vm4773_vm11, %v1062_v16, %v1066_v48  ;;  %v1976_v33 = vrot.slane %v1974_v21, 4  ;;  %v1077_v18 = vsel %vm4773_vm11, %v1072_v49, %v1076_v14  ;;  %v1952_v61 = vld [vmem:[#allocation2 + $0x18] sm:$0xf]  ;;  %v4161_v62 = vld [vmem:[%s5556_s5 + $0xc0] sm:$0xff] }
  0xce   : > { %1888 = vmatpush.bf16.msrb.mxu3 %v4164_v2  ;;  %v1240_v55 = vunpack.c.l.b16 %v1067_v30  ;;  %v1979_v22 = vrot.slane %v1977_v29, 5  ;;  %v1241_v38 = vunpack.c.l.b16 %v1077_v18  ;;  %v5003_v39 = vrot.slane %v1983_v34, 5  ;;  %v4169_v63 = vld [vmem:[%s5556_s5 + $0x100] sm:$0xff]  ;;  %v4184_v11 = vld [vmem:[%s5556_s5 + $0x178] sm:$0xff]  ;;  %v4207_v30 = vld [vmem:[%s5556_s5 + $0x1f0] sm:$0xff] }
  0xcf   : > { %1361 = vmatmul.bf16.gmra.mxu3 %v1261_v23  ;;  %v1542_v45 = vsel %vm4991_vm14, %v3799_v4, %v1541_v9  ;;  %v1545_v46 = vsel %vm4991_vm14, %v1543_v26, %v1544_v19  ;;  %v1993_v50 = vshll.u32 %v4995_v32, 16  ;;  %v1989_v2 = vrot.slane %v1987_v40, 4  ;;  %v4208_v9 = vld [vmem:[%s5556_s5 + $0x1f8] sm:$0xff]  ;;  %v4121_v14 = vld [vmem:[#allocation2] sm:$0xff]  ;;  %v4153_v18 = vld [vmem:[#allocation2 + $0xc] sm:$0xff] }
  0xd0   : > { %1696 = vmatpush.bf16.msrb.mxu2 %v4147_v6  ;;  %1468 = vmatpush.bf16.msrb.mxu1 %v4131_v41  ;;  %v1980_v48 = vor.u32 %v1979_v22, %v1976_v33  ;;  %v1255_v35 = vpack.c.b16 %v1241_v38, %v1240_v55  ;;  %v1611_v24 = vunpack.c.l.b16 %v1542_v45  ;;  %v1612_v57 = vunpack.c.l.b16 %v1545_v46  ;;  %v4216_v16 = vld [vmem:[%s5556_s5 + $0x238] sm:$0xff]  ;;  %v1513_v41 = vld [vmem:[#allocation2 + $0xc] sm:$0xe] }
  0xd1   : > { %2266 = vmatpush.bf16.msrb.mxu0 %v4171_v25  ;;  %v1990_v60 = vor.u32 %v1989_v2, %v5003_v39  ;;  %v1995_v3 = vrot.slane %v1993_v50, 5  ;;  %v1548_v4 = vrot.slane %v4906_v0, 5  ;;  %v1998_v19 = vshrl.u32 %v1952_v61, 16  ;;  %v4199_v25 = vld [vmem:[%s5556_s5 + $0x1b0] sm:$0xff]  ;;  %v1514_v33 = vld [vmem:[#allocation2 + $0x18] sm:$0xe] }
  0xd2   : > { %1889 = vmatpush.bf16.msrb.mxu3 %v4163_v20  ;;  %1331 = vmatmul.bf16.gmra.mxu0 %v1255_v35  ;;  %v1981_v1 = vrot.slane %v1980_v48, 4  ;;  %v1627_v21 = vpack.c.b16 %v1612_v57, %v1611_v24  ;;  %v2001_v23 = vshll.u32 %v1952_v61, 16  ;;  %v2007_v26 = vshll.u32 %v5039_v13, 16 }
  0xd3   : > { %v1991_v6 = vrot.slane %v1990_v60, 4  ;;  %v2011_v0 = vshrl.u32 %v5039_v13, 16  ;;  %v3800_v29 = vrot.slane %v1513_v41, 9  ;;  %v1555_v34 = vrot.slane %v4731_v59, 5 }
  0xd4   : > { %1697 = vmatpush.bf16.msrb.mxu2 %v4146_v36  ;;  %1469 = vmatpush.bf16.msrb.mxu1 %v4130_v53  ;;  %v1986_v49 = vsel %vm4773_vm11, %v1981_v1, %v5003_v39  ;;  %v4183_v36 = vld [vmem:[%s5556_s5 + $0x170] sm:$0xff]  ;;  %v1550_v55 = vrot.slane %v1548_v4, 4  ;;  %v1551_v22 = vrot.slane %v4953_v47, 5  ;;  %v2000_v38 = vrot.slane %v1998_v19, 4  ;;  %v5069_v47 = vld [vmem:[#allocation2 + $0x20] sm:$0x1] }
  0xd5   : > { %2267 = vmatpush.bf16.msrb.mxu0 %v4170_v44  ;;  %v1996_v20 = vsel %vm4773_vm11, %v1991_v6, %v1995_v3  ;;  %v4215_v53 = vld [vmem:[%s5556_s5 + $0x230] sm:$0xff]  ;;  %v3801_v39 = vrot.slane %v1514_v33, 9  ;;  %v2181_v40 = vunpack.c.l.b16 %v1986_v49  ;;  %v1557_v44 = vrot.slane %v1555_v34, 4  ;;  %v4206_v6 = vld [vmem:[%s5556_s5 + $0x1e8] sm:$0xff] }
  0xd6   : > { %1890 = vmatpush.bf16.msrb.mxu3 %v4162_v42  ;;  %v2182_v42 = vunpack.c.l.b16 %v1996_v20  ;;  %v1558_v45 = vrot.slane %v4764_v28, 5  ;;  %v2003_v59 = vrot.slane %v2001_v23, 5  ;;  %v2009_v46 = vrot.slane %v2007_v26, 5  ;;  %v4198_v28 = vld [vmem:[%s5556_s5 + $0x1a8] sm:$0xff] }
  0xd7   : > { %v2013_v48 = vrot.slane %v2011_v0, 4  ;;  %v1556_v50 = vsel %vm4991_vm14, %v3801_v39, %v1555_v34  ;;  %v1552_v24 = vsel %vm4991_vm14, %v1550_v55, %v1551_v22  ;;  %v2017_v61 = vshll.u32 %v5069_v47, 16  ;;  %v4122_v19 = vld [vmem:[#allocation2 + $0xc] sm:$0xff] }
  0xd8   : > { %1698 = vmatpush.bf16.msrb.mxu2 %v4145_v51  ;;  %1470 = vmatpush.bf16.msrb.mxu1 %v4129_v58  ;;  %v1559_v35 = vsel %vm4991_vm14, %v1557_v44, %v1558_v45  ;;  %v1615_v51 = vunpack.c.l.b16 %v1556_v50  ;;  %v1549_v58 = vsel %vm4991_vm14, %v3800_v29, %v1548_v4  ;;  %v2004_v57 = vor.u32 %v2003_v59, %v2000_v38  ;;  %v5092_v4 = vld [vmem:[#allocation2 + $0x28] sm:$0xf]  ;;  %v5106_v44 = vld [vmem:[#allocation2 + $0x2c] sm:$0x1] }
  0xd9   : > { %2268 = vmatpush.bf16.msrb.mxu0 %v4169_v63  ;;  %v1616_v2 = vunpack.c.l.b16 %v1559_v35  ;;  %v2014_v60 = vor.u32 %v2013_v48, %v2009_v46  ;;  %v1955_v63 = vld [vmem:[#allocation2 + $0x24] sm:$0xf]  ;;  %v1613_v1 = vunpack.c.l.b16 %v1549_v58  ;;  %v1614_v3 = vunpack.c.l.b16 %v1552_v24 }
  0xda   : > { %1891 = vmatpush.bf16.msrb.mxu3 %v4161_v62  ;;  %v2019_v41 = vrot.slane %v2017_v61, 5  ;;  %v2022_v23 = vshrl.u32 %v1955_v63, 16  ;;  %v2025_v49 = vshll.u32 %v1955_v63, 16  ;;  %v2031_v20 = vshll.u32 %v5092_v4, 16  ;;  %v5123_v61 = vld [vmem:[#allocation2 + $0x34] sm:$0xf] }
  0xdb   : > { %1471 = vmatmul.bf16.vlgmr.msrb.gmra.mxu1 %v4121_v14  ;;  %v5081_v62 = vpack.c.b16 %v1616_v2, %v1615_v51  ;;  %v2005_v14 = vrot.slane %v2004_v57, 4  ;;  %v2035_v0 = vshrl.u32 %v5092_v4, 16  ;;  %v1562_v29 = vrot.slane %v4815_v27, 5  ;;  %v4205_v2 = vld [vmem:[%s5556_s5 + $0x1e0] sm:$0xff]  ;;  %v4123_v63 = vld [vmem:[#allocation2 + $0x18] sm:$0xff] }
  0xdc   : > { %2704 = vmatpush.bf16.msra.mxu2 %v4200_v54  ;;  %2510 = vmatpush.bf16.msra.mxu1 %v4184_v11  ;;  %v2197_v54 = vpack.c.b16 %v2182_v42, %v2181_v40  ;;  %v4214_v11 = vld [vmem:[%s5556_s5 + $0x228] sm:$0xff]  ;;  %v2024_v38 = vrot.slane %v2022_v23, 4  ;;  %v2033_v39 = vrot.slane %v2031_v20, 5  ;;  %v2041_v51 = vshll.u32 %v5106_v44, 16 }
  0xdd   : > { %3330 = vmatpush.bf16.msra.mxu0 %v4216_v16  ;;  %1699 = vmatmul.bf16.vlgmr.msrb.gmra.mxu2 %v1627_v21  ;;  %v2015_v16 = vrot.slane %v2014_v60, 4  ;;  %v1628_v21 = vpack.c.b16 %v1614_v3, %v1613_v1  ;;  %v1564_v34 = vrot.slane %v1562_v29, 4  ;;  %v2037_v40 = vrot.slane %v2035_v0, 4  ;;  %v1958_v60 = vld [vmem:[#allocation2 + $0x30] sm:$0xf] }
  0xde   : > { %3081 = vmatpush.bf16.msra.mxu3 %v4208_v9  ;;  %v4182_v9 = vld [vmem:[%s5556_s5 + $0x168] sm:$0xff]  ;;  %v2043_v57 = vrot.slane %v2041_v51, 5  ;;  %v2046_v1 = vshrl.u32 %v1958_v60, 16  ;;  %v2049_v3 = vshll.u32 %v1958_v60, 16  ;;  %v1572_v60 = vrot.slane %v4777_v43, 5 }
  0xdf   : > { %1892 = vmatmul.bf16.vlgmr.msrb.gmra.mxu3 %v4153_v18  ;;  %v2020_v26 = vsel %vm4773_vm11, %v2015_v16, %v2019_v41  ;;  %v1565_v18 = vrot.slane %v4898_v12, 5  ;;  %v4197_v12 = vld [vmem:[%s5556_s5 + $0x1a0] sm:$0xff]  ;;  %v2038_v35 = vor.u32 %v2037_v40, %v2033_v39  ;;  %v1964_v43 = vld [vmem:[#allocation2 + $0x48] sm:$0xf] }
  0xe0   : > { %2705 = vmatpush.bf16.msra.mxu2 %v4199_v25  ;;  %2511 = vmatpush.bf16.msra.mxu1 %v4183_v36  ;;  %v2010_v25 = vsel %vm4773_vm11, %v2005_v14, %v2009_v46  ;;  %v4154_v36 = vld [vmem:[#allocation2 + $0x18] sm:$0xff]  ;;  %v2184_v22 = vunpack.c.l.b16 %v2020_v26  ;;  %v2059_v14 = vshrl.u32 %v5123_v61, 16  ;;  %v4155_v16 = vld [vmem:[#allocation2 + $0x24] sm:$0xff]  ;;  %v2051_v23 = vrot.slane %v2049_v3, 5 }
  0xe1   : > { %3331 = vmatpush.bf16.msra.mxu0 %v4215_v53  ;;  %v2183_v55 = vunpack.c.l.b16 %v2010_v25  ;;  %v2027_v53 = vrot.slane %v2025_v49, 5  ;;  %v1566_v27 = vsel %vm4991_vm14, %v1564_v34, %v1565_v18  ;;  %v2039_v24 = vrot.slane %v2038_v35, 4  ;;  %v5132_v25 = vld [vmem:[#allocation2 + $0x38] sm:$0x1]  ;;  %v4156_v35 = vld [vmem:[#allocation2 + $0x30] sm:$0xff] }
  0xe2   : > { %3082 = vmatpush.bf16.msra.mxu3 %v4207_v30  ;;  %2269 = vmatmul.bf16.vlgmr.msrb.gmra.mxu0 %v2197_v54  ;;  %v1515_v30 = vld [vmem:[#allocation2 + $0x24] sm:$0xe]  ;;  %v1618_v59 = vunpack.c.l.b16 %v1566_v27  ;;  %v2061_v20 = vrot.slane %v2059_v14, 4  ;;  %v4196_v26 = vld [vmem:[%s5556_s5 + $0x198] sm:$0xff] }
  0xe3   : > { %v3802_v33 = vrot.slane %v1515_v30, 9  ;;  %v2198_v46 = vpack.c.b16 %v2184_v22, %v2183_v55  ;;  %v2028_v50 = vor.u32 %v2027_v53, %v2024_v38  ;;  %v4213_v54 = vld [vmem:[%s5556_s5 + $0x220] sm:$0xff]  ;;  %v4180_v34 = vld [vmem:[%s5556_s5 + $0x158] sm:$0xff] }
  0xe4   : > { %2706 = vmatpush.bf16.msra.mxu2 %v4198_v28  ;;  %2512 = vmatpush.bf16.msra.mxu1 %v4182_v9  ;;  %v4181_v28 = vld [vmem:[%s5556_s5 + $0x160] sm:$0xff]  ;;  %v2044_v9 = vsel %vm4773_vm11, %v2039_v24, %v2043_v57  ;;  %v4212_v18 = vld [vmem:[%s5556_s5 + $0x218] sm:$0xff] }
  0xe5   : > { %3332 = vmatpush.bf16.msra.mxu0 %v4214_v11  ;;  %v1563_v42 = vsel %vm4991_vm14, %v3802_v33, %v1562_v29  ;;  %v2029_v58 = vrot.slane %v2028_v50, 4  ;;  %v2055_v11 = vshll.u32 %v5123_v61, 16  ;;  %v4204_v33 = vld [vmem:[%s5556_s5 + $0x1d8] sm:$0xff]  ;;  %v5147_v53 = vld [vmem:[#allocation2 + $0x40] sm:$0xf] }
  0xe6   : > { %3083 = vmatpush.bf16.msra.mxu3 %v4206_v6  ;;  %v1617_v45 = vunpack.c.l.b16 %v1563_v42  ;;  %v1961_v38 = vld [vmem:[#allocation2 + $0x3c] sm:$0xf]  ;;  %v1516_v50 = vld [vmem:[#allocation2 + $0x30] sm:$0xe] }
  0xe7   : > { %v2034_v6 = vsel %vm4773_vm11, %v2029_v58, %v2033_v39  ;;  %v2057_v49 = vrot.slane %v2055_v11, 5  ;;  %v4124_v39 = vld [vmem:[#allocation2 + $0x24] sm:$0xff]  ;;  %v2070_v42 = vshrl.u32 %v1961_v38, 16  ;;  %v2073_v27 = vshll.u32 %v1961_v38, 16  ;;  %v1517_v38 = vld [vmem:[#allocation2 + $0x3c] sm:$0xe] }
  0xe8   : > { %v5111_v48 = vpack.c.b16 %v1618_v59, %v1617_v45  ;;  %2707 = vmatpush.bf16.msra.mxu2 %v4197_v12  ;;  %2513 = vmatpush.bf16.msra.mxu1 %v4181_v28  ;;  %v2185_v41 = vunpack.c.l.b16 %v2034_v6  ;;  %v2079_v45 = vshll.u32 %v5147_v53, 16  ;;  %v1569_v12 = vrot.slane %v4746_v10, 5  ;;  %v4195_v10 = vld [vmem:[%s5556_s5 + $0x190] sm:$0xff] }
  0xe9   : > { %3333 = vmatpush.bf16.msra.mxu0 %v4213_v54  ;;  %v2062_v30 = vor.u32 %v2061_v20, %v2057_v49  ;;  %v2072_v28 = vrot.slane %v2070_v42, 4  ;;  %v2075_v54 = vrot.slane %v2073_v27, 5  ;;  %v3803_v24 = vrot.slane %v1516_v50, 9 }
  0xea   : > { %3084 = vmatpush.bf16.msra.mxu3 %v4205_v2  ;;  %v2081_v58 = vrot.slane %v2079_v45, 5  ;;  %v1571_v57 = vrot.slane %v1569_v12, 4  ;;  %v1579_v50 = vrot.slane %v4914_v52, 5 }
  0xeb   : > { %1476 = vmatmul.bf16.gmra.mxu1 %v4122_v19  ;;  %v2186_v19 = vunpack.c.l.b16 %v2044_v9  ;;  %v2063_v55 = vrot.slane %v2062_v30, 4  ;;  %v2076_v6 = vor.u32 %v2075_v54, %v2072_v28  ;;  %v2094_v30 = vshrl.u32 %v1964_v43, 16  ;;  %v4194_v28 = vld [vmem:[%s5556_s5 + $0x188] sm:$0xff] }
  0xec   : > { %2708 = vmatpush.bf16.msra.mxu2 %v4196_v26  ;;  %2514 = vmatpush.bf16.msra.mxu1 %v4180_v34  ;;  %v1573_v9 = vsel %vm4991_vm14, %v1571_v57, %v1572_v60 }
  0xed   : > { %1704 = vmatmul.bf16.gmra.mxu2 %v1628_v21  ;;  %v2048_v21 = vrot.slane %v2046_v1, 4  ;;  %v2199_v0 = vpack.c.b16 %v2186_v19, %v2185_v41  ;;  %3334 = vmatpush.bf16.msra.mxu0 %v4212_v18  ;;  %v5158_v1 = vld [vmem:[#allocation2 + $0x44] sm:$0x1]  ;;  %v1620_v41 = vunpack.c.l.b16 %v1573_v9  ;;  %v4203_v19 = vld [vmem:[%s5556_s5 + $0x1d0] sm:$0xff]  ;;  %v4202_v9 = vld [vmem:[%s5556_s5 + $0x1c8] sm:$0xff] }
  0xee   : > { %3085 = vmatpush.bf16.msra.mxu3 %v4204_v33  ;;  %v2089_v14 = vshll.u32 %v5158_v1, 16 }
  0xef   : > { %1897 = vmatmul.bf16.gmra.mxu3 %v4154_v36  ;;  %v2052_v29 = vor.u32 %v2051_v23, %v2048_v21  ;;  %v2065_v36 = vshll.u32 %v5132_v25, 16  ;;  %v4179_v21 = vld [vmem:[%s5556_s5 + $0x150] sm:$0xff] }
  0xf0   : > { %2709 = vmatpush.bf16.msra.mxu2 %v4195_v10  ;;  %v4211_v23 = vld [vmem:[%s5556_s5 + $0x210] sm:$0xff]  ;;  %v2091_v26 = vrot.slane %v2089_v14, 5  ;;  %2515 = vmatpush.bf16.msra.mxu1 %v4179_v21  ;;  %v4210_v14 = vld [vmem:[%s5556_s5 + $0x208] sm:$0xff]  ;;  %v4126_v21 = vld [vmem:[#allocation2 + $0x3c] sm:$0xff] }
  0xf1   : > { %v2067_v22 = vrot.slane %v2065_v36, 5  ;;  %v2097_v36 = vshll.u32 %v1964_v43, 16  ;;  %3335 = vmatpush.bf16.msra.mxu0 %v4211_v23 }
  0xf2   : > { %2274 = vmatmul.bf16.gmra.mxu0 %v2198_v46  ;;  %v2083_v46 = vshrl.u32 %v5147_v53, 16  ;;  %3086 = vmatpush.bf16.msra.mxu3 %v4203_v19  ;;  %v5210_v19 = vld [vmem:[#allocation2 + $0x58] sm:$0xf] }
  0xf3   : > { %v2068_v59 = vsel %vm4773_vm11, %v2063_v55, %v2067_v22  ;;  %v1576_v55 = vrot.slane %v4840_v5, 5  ;;  %v2099_v42 = vrot.slane %v2097_v36, 5  ;;  %v4379_v36 = vld [vmem:[#allocation2 + $0x4c] sm:$0xf] }
  0xf4   : > { %v2188_v2 = vunpack.c.l.b16 %v2068_v59  ;;  %2710 = vmatpush.bf16.msra.mxu2 %v4194_v28 }
  0xf5   : > { %3336 = vmatpush.bf16.msra.mxu0 %v4210_v14  ;;  %v4127_v14 = vld [vmem:[#allocation2 + $0x48] sm:$0xff] }
  0xf6   : > { %3087 = vmatpush.bf16.msra.mxu3 %v4202_v9 }
  0xfb   : > { %1481 = vmatmul.bf16.gmra.mxu1 %v4123_v63  ;;  %v2085_v63 = vrot.slane %v2083_v46, 4  ;;  %v1578_v46 = vrot.slane %v1576_v55, 4 }
  0xfd   : > { %1709 = vmatmul.bf16.gmra.mxu2 %v5081_v62  ;;  %v2053_v62 = vrot.slane %v2052_v29, 4  ;;  %v2086_v11 = vor.u32 %v2085_v63, %v2081_v58  ;;  %v4125_v29 = vld [vmem:[#allocation2 + $0x30] sm:$0xff]  ;;  %v1580_v52 = vsel %vm4991_vm14, %v1578_v46, %v1579_v50  ;;  %v981_v63 = vld [vmem:[#allocation2 + $0x68] sm:$0x1]  ;;  %v5218_v46 = vld [vmem:[#allocation2 + $0x5c] sm:$0x1] }
  0xfe   : > { %v982_v10 = vsel %vm4727_vm8, 0, %v981_v63  ;;  %v4177_v63 = vld [vmem:[%s5556_s5 + $0x140] sm:$0xff] }
  0xff   : > { %1902 = vmatmul.bf16.gmra.mxu3 %v4155_v16  ;;  %v2058_v40 = vsel %vm4773_vm11, %v2053_v62, %v2057_v49  ;;  %v2077_v49 = vrot.slane %v2076_v6, 4  ;;  %v2087_v20 = vrot.slane %v2086_v11, 4  ;;  %983 = vst [vmem:[#allocation2 + $0x68] sm:$0x1] %v982_v10  ;;  %v4178_v11 = vld [vmem:[%s5556_s5 + $0x148] sm:$0xff] }
 0x100   : > { %v2187_v51 = vunpack.c.l.b16 %v2058_v40  ;;  %v2096_v40 = vrot.slane %v2094_v30, 4  ;;  %2516 = vmatpush.bf16.msra.mxu1 %v4178_v11 }
 0x101   : > { %v2082_v34 = vsel %vm4773_vm11, %v2077_v49, %v2081_v58  ;;  %v2092_v18 = vsel %vm4773_vm11, %v2087_v20, %v2091_v26 }
 0x102   : > { %2279 = vmatmul.bf16.gmra.mxu0 %v2199_v0  ;;  %v2200_v3 = vpack.c.b16 %v2188_v2, %v2187_v51  ;;  %v5177_v0 = vld [vmem:[#allocation2 + $0x4c] sm:$0xf]  ;;  %v2189_v27 = vunpack.c.l.b16 %v2082_v34  ;;  %v2190_v45 = vunpack.c.l.b16 %v2092_v18  ;;  %v950_v51 = vld [vmem:[#allocation2 + $0x60] sm:$0x1]  ;;  %v5187_v2 = vld [vmem:[#allocation2 + $0x50] sm:$0x1]  ;;  %v2100_v5 = vor.u32 %v2099_v42, %v2096_v40 }
 0x103   : > { %v2103_v33 = vshll.u32 %v5177_v0, 16  ;;  %v2107_v22 = vshrl.u32 %v5177_v0, 16  ;;  %v951_v54 = vsel %vm4598_vm7, 0, %v950_v51  ;;  %v2113_v60 = vshll.u32 %v5187_v2, 16  ;;  %v1518_v34 = vld [vmem:[#allocation2 + $0x48] sm:$0xe] }
 0x104   : > { %v2201_v58 = vpack.c.b16 %v2190_v45, %v2189_v27  ;;  %952 = vst [vmem:[#allocation2 + $0x60] sm:$0x1] %v951_v54  ;;  %v4158_v18 = vld [vmem:[#allocation2 + $0x48] sm:$0xff]  ;;  %v3805_v42 = vrot.slane %v1518_v34, 9  ;;  %v4380_v45 = vld [vmem:[#allocation2 + $0x50] sm:$0x1]  ;;  %2517 = vmatpush.bf16.msra.mxu1 %v4177_v63 }
 0x105   : > { %v2105_v59 = vrot.slane %v2103_v33, 5  ;;  %v2131_v33 = vshrl.u32 %v5210_v19, 16  ;;  %v2137_v54 = vshll.u32 %v5218_v46, 16 }
 0x10b   : > { %1486 = vmatmul.bf16.gmra.mxu1 %v4124_v39  ;;  %v4157_v39 = vld [vmem:[#allocation2 + $0x3c] sm:$0xff] }
 0x10d   : > { %1714 = vmatmul.bf16.gmra.mxu2 %v5111_v48  ;;  %v1570_v48 = vsel %vm4991_vm14, %v3803_v24, %v1569_v12  ;;  %v3804_v12 = vrot.slane %v1517_v38, 9 }
 0x10e   : > { %v1619_v16 = vunpack.c.l.b16 %v1570_v48  ;;  %v1622_v48 = vunpack.c.l.b16 %v1580_v52 }
 0x10f   : > { %1907 = vmatmul.bf16.gmra.mxu3 %v4156_v35  ;;  %v2109_v35 = vrot.slane %v2107_v22, 4  ;;  %v1577_v24 = vsel %vm4991_vm14, %v3804_v12, %v1576_v55  ;;  %v2133_v12 = vrot.slane %v2131_v33, 4 }
 0x110   : > { %v1631_v62 = vpack.c.b16 %v1620_v41, %v1619_v16  ;;  %v1621_v6 = vunpack.c.l.b16 %v1577_v24  ;;  %v2115_v16 = vrot.slane %v2113_v60, 5  ;;  %v1967_v41 = vld [vmem:[#allocation2 + $0x54] sm:$0xf]  ;;  %v1970_v24 = vld [vmem:[#allocation2 + $0x60] sm:$0xf] }
 0x111   : > { %v2110_v57 = vor.u32 %v2109_v35, %v2105_v59  ;;  %v2118_v20 = vshrl.u32 %v1967_v41, 16  ;;  %v2121_v26 = vshll.u32 %v1967_v41, 16  ;;  %v4201_v60 = vld [vmem:[%s5556_s5 + $0x1c0] sm:$0xff]  ;;  %v2142_v9 = vshrl.u32 %v1970_v24, 16 }
 0x112   : > { %2284 = vmatmul.bf16.gmra.mxu0 %v2200_v3  ;;  %v2101_v3 = vrot.slane %v2100_v5, 4  ;;  %v1632_v49 = vpack.c.b16 %v1622_v48, %v1621_v6  ;;  %v2139_v6 = vrot.slane %v2137_v54, 5  ;;  %v5234_v48 = vld [vmem:[#allocation2 + $0x64] sm:$0xf]  ;;  %v2145_v11 = vshll.u32 %v1970_v24, 16  ;;  %3088 = vmatpush.bf16.msra.mxu3 %v4201_v60 }
 0x113   : > { %v2111_v43 = vrot.slane %v2110_v57, 4  ;;  %v2120_v38 = vrot.slane %v2118_v20, 4  ;;  %v2151_v41 = vshll.u32 %v5234_v48, 16  ;;  %v1590_v20 = vrot.slane %v4878_v17, 5 }
 0x114   : > { %v2106_v23 = vsel %vm4773_vm11, %v2101_v3, %v2105_v59  ;;  %v1586_v59 = vrot.slane %v4380_v45, 5  ;;  %v1593_v17 = vrot.slane %v4924_v7, 5 }
 0x115   : > { %v2116_v30 = vsel %vm4773_vm11, %v2111_v43, %v2115_v16  ;;  %v2191_v55 = vunpack.c.l.b16 %v2106_v23 }
 0x116   : > { %v2192_v22 = vunpack.c.l.b16 %v2116_v30  ;;  %v2144_v30 = vrot.slane %v2142_v9, 4 }
 0x118   : > { %v2202_v50 = vpack.c.b16 %v2192_v22, %v2191_v55 }
 0x11b   : > { %1491 = vmatmul.bf16.gmra.mxu1 %v4125_v29  ;;  %v2127_v29 = vshll.u32 %v5210_v19, 16 }
 0x11d   : > { %1719 = vmatmul.bf16.gmra.mxu2 %v1631_v62  ;;  %v1583_v62 = vrot.slane %v4379_v36, 5  ;;  %v2129_v40 = vrot.slane %v2127_v29, 5  ;;  %v1519_v29 = vld [vmem:[#allocation2 + $0x54] sm:$0xe]  ;;  %v2147_v36 = vrot.slane %v2145_v11, 5 }
 0x11f   : > { %1912 = vmatmul.bf16.gmra.mxu3 %v4157_v39  ;;  %v2123_v39 = vrot.slane %v2121_v26, 5  ;;  %v1585_v27 = vrot.slane %v1583_v62, 4  ;;  %v1584_v51 = vsel %vm4991_vm14, %v3805_v42, %v1583_v62  ;;  %v2134_v28 = vor.u32 %v2133_v12, %v2129_v40  ;;  %v4209_v26 = vld [vmem:[%s5556_s5 + $0x200] sm:$0xff]  ;;  %v4159_v62 = vld [vmem:[#allocation2 + $0x54] sm:$0xff] }
 0x120   : > { %v1623_v52 = vunpack.c.l.b16 %v1584_v51  ;;  %3337 = vmatpush.bf16.msra.mxu0 %v4209_v26  ;;  %v2769_v51 = vld [vmem:[#allocation2 + $0x18] sm:$0xf] }
 0x121   : > { %v2124_v35 = vor.u32 %v2123_v39, %v2120_v38  ;;  %v1587_v5 = vsel %vm4991_vm14, %v1585_v27, %v1586_v59  ;;  %v2135_v3 = vrot.slane %v2134_v28, 4  ;;  %v3806_v38 = vrot.slane %v1519_v29, 9 }
 0x122   : > { %2289 = vmatmul.bf16.gmra.mxu0 %v2201_v58  ;;  %v4193_v58 = vld [vmem:[%s5556_s5 + $0x180] sm:$0xff]  ;;  %v1624_v57 = vunpack.c.l.b16 %v1587_v5  ;;  %v1592_v39 = vrot.slane %v1590_v20, 4  ;;  %v2148_v27 = vor.u32 %v2147_v36, %v2144_v30  ;;  %v5260_v5 = vld [vmem:[#allocation2 + $0x1c] sm:$0xf]  ;;  %v2797_v24 = vshll.u32 %v2769_v51, 16 }
 0x123   : > { %2711 = vmatpush.bf16.msra.mxu2 %v4193_v58  ;;  %v2125_v10 = vrot.slane %v2124_v35, 4  ;;  %v1591_v7 = vsel %vm4991_vm14, %v3806_v38, %v1590_v20  ;;  %v2794_v58 = vshrl.u32 %v2769_v51, 16  ;;  %v2360_v30 = vrot.slane %v4972_v15, 5  ;;  %v2771_v36 = vld [vmem:[#allocation2 + $0x20] sm:$0x1] }
 0x124   : > { %v1633_v16 = vpack.c.b16 %v1624_v57, %v1623_v52  ;;  %v1594_v28 = vsel %vm4991_vm14, %v1592_v39, %v1593_v17  ;;  %v2149_v54 = vrot.slane %v2148_v27, 4  ;;  %v2803_v52 = vshll.u32 %v5260_v5, 16 }
 0x125   : > { %v2130_v23 = vsel %vm4773_vm11, %v2125_v10, %v2129_v40  ;;  %v5251_v40 = vld [vmem:[#allocation2 + $0x68] sm:$0x1]  ;;  %v2807_v57 = vshrl.u32 %v5260_v5, 16  ;;  %v1625_v60 = vunpack.c.l.b16 %v1591_v7  ;;  %v1626_v63 = vunpack.c.l.b16 %v1594_v28 }
 0x126   : > { %v2193_v33 = vunpack.c.l.b16 %v2130_v23  ;;  %v2161_v35 = vshll.u32 %v5251_v40, 16  ;;  %v2813_v39 = vshll.u32 %v2771_v36, 16  ;;  %v2363_v17 = vrot.slane %v4995_v32, 5 }
 0x127   : > { %v2809_v23 = vrot.slane %v2807_v57, 4  ;;  %v1634_v26 = vpack.c.b16 %v1626_v63, %v1625_v60  ;;  %v3146_v63 = vld [vmem:[#allocation2 + $0x18] sm:$0xe] }
 0x12b   : > { %1496 = vmatmul.bf16.gmra.mxu1 %v4126_v21  ;;  %v2155_v21 = vshrl.u32 %v5234_v48, 16 }
 0x12d   : > { %1724 = vmatmul.bf16.gmra.mxu2 %v1632_v49  ;;  %v2140_v49 = vsel %vm4773_vm11, %v2135_v3, %v2139_v6  ;;  %v2157_v55 = vrot.slane %v2155_v21, 4  ;;  %v2163_v3 = vrot.slane %v2161_v35, 5  ;;  %v2805_v21 = vrot.slane %v2803_v52, 5  ;;  %v5282_v35 = vld [vmem:[#allocation2 + $0x28] sm:$0xf] }
 0x12e   : > { %v2194_v34 = vunpack.c.l.b16 %v2140_v49 }
 0x12f   : > { %1917 = vmatmul.bf16.gmra.mxu3 %v4158_v18  ;;  %v2153_v18 = vrot.slane %v2151_v41, 5  ;;  %v2799_v41 = vrot.slane %v2797_v24, 5  ;;  %v2810_v38 = vor.u32 %v2809_v23, %v2805_v21 }
 0x130   : > { %v2203_v59 = vpack.c.b16 %v2194_v34, %v2193_v33  ;;  %v4160_v34 = vld [vmem:[#allocation2 + $0x60] sm:$0xff] }
 0x131   : > { %v2154_v9 = vsel %vm4773_vm11, %v2149_v54, %v2153_v18  ;;  %v2811_v28 = vrot.slane %v2810_v38, 4  ;;  %v2815_v54 = vrot.slane %v2813_v39, 5 }
 0x132   : > { %2294 = vmatmul.bf16.gmra.mxu0 %v2202_v50  ;;  %v2158_v50 = vor.u32 %v2157_v55, %v2153_v18  ;;  %v2195_v33 = vunpack.c.l.b16 %v2154_v9  ;;  %v2831_v9 = vshrl.u32 %v5282_v35, 16 }
 0x134   : > { %v2159_v10 = vrot.slane %v2158_v50, 4  ;;  %v2772_v50 = vld [vmem:[#allocation2 + $0x24] sm:$0xf] }
 0x135   : > { %v2818_v52 = vshrl.u32 %v2772_v50, 16  ;;  %v2821_v57 = vshll.u32 %v2772_v50, 16 }
 0x136   : > { %v2164_v29 = vsel %vm4773_vm11, %v2159_v10, %v2163_v3  ;;  %v3180_v10 = vrot.slane %v5260_v5, 5  ;;  %v2827_v3 = vshll.u32 %v5282_v35, 16  ;;  %v3183_v5 = vrot.slane %v2771_v36, 5 }
 0x137   : > { %v2196_v18 = vunpack.c.l.b16 %v2164_v29  ;;  %v4071_v29 = vrot.slane %v3146_v63, 9  ;;  %v2370_v63 = vrot.slane %v5069_v47, 5 }
 0x138   : > { %v5236_v43 = vpop.f32.mrf.mxu1 }
 0x139   : > { %v2204_v51 = vpack.c.b16 %v2196_v18, %v2195_v33  ;;  %v3182_v33 = vrot.slane %v3180_v10, 4  ;;  %v2833_v18 = vrot.slane %v2831_v9, 4  ;;  %v3181_v36 = vsel %vm4991_vm14, %v4071_v29, %v3180_v10 }
 0x13b   : > { %1501 = vmatmul.bf16.gmra.mxu1 %v4127_v14  ;;  %v5248_v22 = vpop.f32.mrf.mxu0  ;;  %v4128_v14 = vld [vmem:[#allocation2 + $0x54] sm:$0xff] }
 0x13d   : > { %1729 = vmatmul.bf16.gmra.mxu2 %v1633_v16  ;;  %v2796_v16 = vrot.slane %v2794_v58, 4 }
 0x13e   : > { %v5253_v42 = vpop.f32.mrf.mxu2 }
 0x13f   : > { %1922 = vmatmul.bf16.gmra.mxu3 %v4159_v62  ;;  %v2326_v62 = vld [vmem:[#allocation2 + $0xc] sm:$0xe]  ;;  %v2800_v55 = vor.u32 %v2799_v41, %v2796_v16 }
 0x140   : > { %v5255_v45 = vpop.f32.mrf.mxu3  ;;  %v5257_v12 = vpop.f32.mrf.mxu1  ;;  %v3935_v27 = vrot.slane %v2326_v62, 9  ;;  %v2823_v62 = vrot.slane %v2821_v57, 5 }
 0x141   : > { %v2801_v7 = vrot.slane %v2800_v55, 4  ;;  %v2367_v55 = vrot.slane %v5039_v13, 5  ;;  %v3184_v13 = vsel %vm4991_vm14, %v3182_v33, %v3183_v5  ;;  %v2775_v33 = vld [vmem:[#allocation2 + $0x30] sm:$0xf] }
 0x142   : > { %2299 = vmatmul.bf16.gmra.mxu0 %v2203_v59  ;;  %v2362_v59 = vrot.slane %v2360_v30, 4  ;;  %v2361_v24 = vsel %vm4991_vm14, %v3935_v27, %v2360_v30  ;;  %v2820_v30 = vrot.slane %v2818_v52, 4 }
 0x143   : > { %v5272_v11 = vpop.f32.mrf.mxu0  ;;  %v2430_v16 = vunpack.c.l.b16 %v2361_v24  ;;  %v2806_v23 = vsel %vm4773_vm11, %v2801_v7, %v2805_v21  ;;  %v2774_v21 = vld [vmem:[#allocation2 + $0x2c] sm:$0x1]  ;;  %v2369_v57 = vrot.slane %v2367_v55, 4 }
 0x144   : > { %v2364_v32 = vsel %vm4991_vm14, %v2362_v59, %v2363_v17  ;;  %v3001_v17 = vunpack.c.l.b16 %v2806_v23  ;;  %v2327_v59 = vld [vmem:[#allocation2 + $0x18] sm:$0xe]  ;;  %v2824_v7 = vor.u32 %v2823_v62, %v2820_v30  ;;  %v3147_v30 = vld [vmem:[#allocation2 + $0x24] sm:$0xe]  ;;  %v3187_v62 = vrot.slane %v5282_v35, 5 }
 0x145   : > { %v2431_v41 = vunpack.c.l.b16 %v2364_v32  ;;  %v3936_v52 = vrot.slane %v2327_v59, 9 }
 0x146   : > { %v5268_v6 = vpop.f32.mrf.mxu2 }
 0x147   : > { %v2446_v39 = vpack.c.b16 %v2431_v41, %v2430_v16  ;;  %v3250_v16 = vunpack.c.l.b16 %v3181_v36  ;;  %v3251_v41 = vunpack.c.l.b16 %v3184_v13  ;;  %v2368_v10 = vsel %vm4991_vm14, %v3936_v52, %v2367_v55 }
 0x148   : > { %v5274_v49 = vpop.f32.mrf.mxu3  ;;  %v5276_v20 = vpop.f32.mrf.mxu1  ;;  %v3189_v13 = vrot.slane %v3187_v62, 4  ;;  %v2845_v52 = vshll.u32 %v2775_v33, 16 }
 0x149   : > { %v3266_v5 = vpack.c.b16 %v3251_v41, %v3250_v16 }
 0x14a   : > { %v2847_v41 = vrot.slane %v2845_v52, 5 }
 0x14b   : > { %1506 = vmatmul.bf16.gmra.mxu1 %v4128_v14 }
 0x14d   : > { %1734 = vmatmul.bf16.gmra.mxu2 %v1634_v26  ;;  %v2816_v26 = vsel %vm4773_vm11, %v2811_v28, %v2815_v54 }
 0x14e   : > { %v3002_v27 = vunpack.c.l.b16 %v2816_v26  ;;  %v2371_v26 = vsel %vm4991_vm14, %v2369_v57, %v2370_v63  ;;  %v3190_v57 = vrot.slane %v2774_v21, 5 }
 0x14f   : > { %1927 = vmatmul.bf16.gmra.mxu3 %v4160_v34  ;;  %v5292_v60 = vpop.f32.mrf.mxu0  ;;  %v2829_v34 = vrot.slane %v2827_v3, 5  ;;  %v2837_v3 = vshll.u32 %v2774_v21, 16 }
 0x150   : > { %v5284_v15 = vpop.f32.mrf.mxu2  ;;  %v5286_v58 = vpop.f32.mrf.mxu1  ;;  %v3017_v9 = vpack.c.b16 %v3002_v27, %v3001_v17  ;;  %v5323_v27 = vld [vmem:[#allocation2 + $0x34] sm:$0xf] }
 0x151   : > { %v2834_v24 = vor.u32 %v2833_v18, %v2829_v34  ;;  %v2839_v29 = vrot.slane %v2837_v3, 5  ;;  %v2851_v63 = vshll.u32 %v5323_v27, 16 }
 0x152   : > { %v5297_v14 = vpop.f32.mrf.mxu3  ;;  %2304 = vmatmul.bf16.gmra.mxu0 %v2204_v51  ;;  %v4185_v51 = vld [vmem:[#allocation2 + $0x18] sm:$0xff] }
 0x153   : > { %v2835_v23 = vrot.slane %v2834_v24, 4  ;;  %v2842_v24 = vshrl.u32 %v2775_v33, 16  ;;  %v2853_v21 = vrot.slane %v2851_v63, 5  ;;  %v4186_v33 = vld [vmem:[#allocation2 + $0x24] sm:$0xff] }
 0x155   : > { %v2840_v35 = vsel %vm4773_vm11, %v2835_v23, %v2839_v29  ;;  %v2844_v16 = vrot.slane %v2842_v24, 4 }
 0x157   : > { %v5306_v28 = vpop.f32.mrf.mxu0 }
 0x158   : > { %v5304_v38 = vpop.f32.mrf.mxu2  ;;  %v1472_v50 = vpop.f32.mrf.mxu1 }
 0x159   : > { %v1473_v54 = vadd.f32 %v1472_v50, %v5248_v22  ;;  %v2825_v22 = vrot.slane %v2824_v7, 4  ;;  %v2432_v50 = vunpack.c.l.b16 %v2368_v10  ;;  %v4072_v7 = vrot.slane %v3147_v30, 9 }
 0x15a   : > { %v5313_v32 = vpop.f32.mrf.mxu3 }
 0x15b   : > { %2518 = vmatmul.bf16.vlgmr.msra.gmra.mxu1 %v2446_v39  ;;  %v2830_v17 = vsel %vm4773_vm11, %v2825_v22, %v2829_v34  ;;  %v2855_v34 = vshrl.u32 %v5323_v27, 16 }
 0x15c   : > { %v3003_v3 = vunpack.c.l.b16 %v2830_v17 }
 0x15d   : > { %2712 = vmatmul.bf16.vlgmr.msra.gmra.mxu2 %v4185_v51  ;;  %v2433_v51 = vunpack.c.l.b16 %v2371_v26  ;;  %v3191_v26 = vsel %vm4991_vm14, %v3189_v13, %v3190_v57  ;;  %v2857_v29 = vrot.slane %v2855_v34, 4  ;;  %v5342_v34 = vld [vmem:[#allocation2 + $0x40] sm:$0xf] }
 0x15f   : > { %3089 = vmatmul.bf16.vlgmr.msra.gmra.mxu3 %v3017_v9  ;;  %v2270_v59 = vpop.f32.mrf.mxu0  ;;  %v3004_v9 = vunpack.c.l.b16 %v2840_v35  ;;  %v2447_v10 = vpack.c.b16 %v2433_v51, %v2432_v50  ;;  %v3253_v50 = vunpack.c.l.b16 %v3191_v26  ;;  %v2848_v51 = vor.u32 %v2847_v41, %v2844_v16 }
 0x160   : > { %v1700_v47 = vpop.f32.mrf.mxu2  ;;  %v1474_v39 = vpop.f32.mrf.mxu1  ;;  %v2858_v24 = vor.u32 %v2857_v29, %v2853_v21  ;;  %v3194_v16 = vrot.slane %v5323_v27, 5 }
 0x161   : > { %v1740_v18 = vadd.f32 %v1700_v47, %v1473_v54  ;;  %v1475_v55 = vadd.f32 %v1474_v39, %v5272_v11  ;;  %v3188_v11 = vsel %vm4991_vm14, %v4072_v7, %v3187_v62  ;;  %v5337_v39 = vld [vmem:[#allocation2 + $0x38] sm:$0x1]  ;;  %v3018_v7 = vpack.c.b16 %v3004_v9, %v3003_v3 }
 0x162   : > { %v1893_v36 = vpop.f32.mrf.mxu3  ;;  %3338 = vmatmul.bf16.vlgmr.msra.gmra.mxu0 %v3266_v5  ;;  %v2328_v5 = vld [vmem:[#allocation2 + $0x24] sm:$0xe]  ;;  %v2849_v63 = vrot.slane %v2848_v51, 4  ;;  %v2859_v9 = vrot.slane %v2858_v24, 4  ;;  %v3196_v51 = vrot.slane %v3194_v16, 4 }
 0x163   : > { %v1933_v54 = vadd.f32 %v1893_v36, %v1740_v18  ;;  %v2374_v18 = vrot.slane %v5092_v4, 5  ;;  %v3252_v36 = vunpack.c.l.b16 %v3188_v11  ;;  %v3937_v13 = vrot.slane %v2328_v5, 9 }
 0x164   : > { %v2377_v4 = vrot.slane %v5106_v44, 5  ;;  %v2875_v5 = vshll.u32 %v5342_v34, 16 }
 0x165   : > { %v5332_v22 = vadd.f32 %v2270_v59, %v1933_v54  ;;  %v2376_v52 = vrot.slane %v2374_v18, 4  ;;  %v2778_v54 = vld [vmem:[#allocation2 + $0x3c] sm:$0xf]  ;;  %v3267_v57 = vpack.c.b16 %v3253_v50, %v3252_v36  ;;  %v2375_v3 = vsel %vm4991_vm14, %v3937_v13, %v2374_v18 }
 0x166   : > { %v2866_v44 = vshrl.u32 %v2778_v54, 16  ;;  %v2879_v18 = vshrl.u32 %v5342_v34, 16  ;;  %v2434_v27 = vunpack.c.l.b16 %v2375_v3  ;;  %v2854_v36 = vsel %vm4773_vm11, %v2849_v63, %v2853_v21  ;;  %v2780_v63 = vld [vmem:[#allocation2 + $0x44] sm:$0x1] }
 0x167   : > { %v2272_v62 = vpop.f32.mrf.mxu0  ;;  %v2877_v24 = vrot.slane %v2875_v5, 5  ;;  %v3005_v3 = vunpack.c.l.b16 %v2854_v36  ;;  %v3149_v36 = vld [vmem:[#allocation2 + $0x3c] sm:$0xe] }
 0x168   : > { %v1702_v23 = vpop.f32.mrf.mxu2  ;;  %v1477_v47 = vpop.f32.mrf.mxu1 }
 0x169   : > { %v1741_v30 = vadd.f32 %v1702_v23, %v1475_v55  ;;  %v1478_v17 = vadd.f32 %v1477_v47, %v5292_v60  ;;  %v2861_v55 = vshll.u32 %v5337_v39, 16  ;;  %v3148_v47 = vld [vmem:[#allocation2 + $0x30] sm:$0xe] }
 0x16a   : > { %v1895_v59 = vpop.f32.mrf.mxu3  ;;  %v4073_v50 = vrot.slane %v3148_v47, 9 }
 0x16b   : > { %v1934_v35 = vadd.f32 %v1895_v59, %v1741_v30  ;;  %2523 = vmatmul.bf16.gmra.mxu1 %v2447_v10  ;;  %v2863_v11 = vrot.slane %v2861_v55, 5  ;;  %v2378_v10 = vsel %vm4991_vm14, %v2376_v52, %v2377_v4  ;;  %v2881_v55 = vrot.slane %v2879_v18, 4 }
 0x16c   : > { %v2381_v52 = vrot.slane %v5123_v61, 5  ;;  %v2384_v18 = vrot.slane %v5132_v25, 5  ;;  %v3201_v25 = vrot.slane %v5342_v34, 5 }
 0x16d   : > { %2717 = vmatmul.bf16.gmra.mxu2 %v4186_v33  ;;  %v5349_v26 = vadd.f32 %v2272_v62, %v1934_v35  ;;  %v2869_v33 = vshll.u32 %v2778_v54, 16  ;;  %v2864_v62 = vsel %vm4773_vm11, %v2859_v9, %v2863_v11  ;;  %v2868_v35 = vrot.slane %v2866_v44, 4  ;;  %v4187_v11 = vld [vmem:[#allocation2 + $0x30] sm:$0xff] }
 0x16e   : > { %v3006_v21 = vunpack.c.l.b16 %v2864_v62  ;;  %v2383_v5 = vrot.slane %v2381_v52, 4 }
 0x16f   : > { %3094 = vmatmul.bf16.gmra.mxu3 %v3018_v7  ;;  %v2275_v29 = vpop.f32.mrf.mxu0  ;;  %v2871_v13 = vrot.slane %v2869_v33, 5 }
 0x170   : > { %v1705_v60 = vpop.f32.mrf.mxu2  ;;  %v1479_v23 = vpop.f32.mrf.mxu1  ;;  %v2385_v62 = vsel %vm4991_vm14, %v2383_v5, %v2384_v18 }
 0x171   : > { %v1742_v41 = vadd.f32 %v1705_v60, %v1478_v17  ;;  %v1480_v30 = vadd.f32 %v1479_v23, %v5306_v28  ;;  %v2435_v17 = vunpack.c.l.b16 %v2378_v10  ;;  %v3197_v28 = vrot.slane %v5337_v39, 5 }
 0x172   : > { %v1898_v59 = vpop.f32.mrf.mxu3  ;;  %3343 = vmatmul.bf16.gmra.mxu0 %v3267_v57  ;;  %v2329_v57 = vld [vmem:[#allocation2 + $0x30] sm:$0xe]  ;;  %v3195_v39 = vsel %vm4991_vm14, %v4073_v50, %v3194_v16  ;;  %v2872_v44 = vor.u32 %v2871_v13, %v2868_v35  ;;  %v2781_v35 = vld [vmem:[#allocation2 + $0x48] sm:$0xf] }
 0x173   : > { %v1935_v7 = vadd.f32 %v1898_v59, %v1742_v41  ;;  %v2448_v60 = vpack.c.b16 %v2435_v17, %v2434_v27  ;;  %v3198_v61 = vsel %vm4991_vm14, %v3196_v51, %v3197_v28  ;;  %v3938_v33 = vrot.slane %v2329_v57, 9 }
 0x174   : > { %v2885_v59 = vshll.u32 %v2780_v63, 16  ;;  %v3254_v27 = vunpack.c.l.b16 %v3195_v39  ;;  %v3255_v16 = vunpack.c.l.b16 %v3198_v61  ;;  %v2873_v17 = vrot.slane %v2872_v44, 4 }
 0x175   : > { %v5360_v4 = vadd.f32 %v2275_v29, %v1935_v7  ;;  %v2882_v29 = vor.u32 %v2881_v55, %v2877_v24  ;;  %v3019_v7 = vpack.c.b16 %v3006_v21, %v3005_v3  ;;  %v5373_v3 = vld [vmem:[#allocation2 + $0x4c] sm:$0xf]  ;;  %v2893_v44 = vshll.u32 %v2781_v35, 16 }
 0x176   : > { %v2887_v51 = vrot.slane %v2885_v59, 5  ;;  %v3268_v13 = vpack.c.b16 %v3255_v16, %v3254_v27  ;;  %v2878_v61 = vsel %vm4773_vm11, %v2873_v17, %v2877_v24 }
 0x177   : > { %v2277_v23 = vpop.f32.mrf.mxu0  ;;  %v2883_v50 = vrot.slane %v2882_v29, 4  ;;  %v2895_v59 = vrot.slane %v2893_v44, 5  ;;  %v5396_v44 = vld [vmem:[#allocation2 + $0x58] sm:$0xf] }
 0x178   : > { %v1707_v54 = vpop.f32.mrf.mxu2  ;;  %v1482_v9 = vpop.f32.mrf.mxu1 }
 0x179   : > { %v1743_v41 = vadd.f32 %v1707_v54, %v1480_v30  ;;  %v1483_v10 = vadd.f32 %v1482_v9, %v5236_v43  ;;  %v2382_v43 = vsel %vm4991_vm14, %v3938_v33, %v2381_v52  ;;  %v2437_v9 = vunpack.c.l.b16 %v2385_v62  ;;  %v4188_v62 = vld [vmem:[#allocation2 + $0x3c] sm:$0xff] }
 0x17a   : > { %v1900_v47 = vpop.f32.mrf.mxu3  ;;  %v2888_v34 = vsel %vm4773_vm11, %v2883_v50, %v2887_v51  ;;  %v2903_v33 = vshrl.u32 %v5373_v3, 16  ;;  %v2330_v50 = vld [vmem:[#allocation2 + $0x3c] sm:$0xe]  ;;  %v2388_v51 = vrot.slane %v5147_v53, 5  ;;  %v2391_v53 = vrot.slane %v5158_v1, 5 }
 0x17b   : > { %v1936_v30 = vadd.f32 %v1900_v47, %v1743_v41  ;;  %2528 = vmatmul.bf16.gmra.mxu1 %v2448_v60  ;;  %v4074_v60 = vrot.slane %v3149_v36, 9  ;;  %v2436_v41 = vunpack.c.l.b16 %v2382_v43  ;;  %v3203_v47 = vrot.slane %v3201_v25, 4  ;;  %v3150_v1 = vld [vmem:[#allocation2 + $0x48] sm:$0xe] }
 0x17c   : > { %v3008_v5 = vunpack.c.l.b16 %v2888_v34  ;;  %v2905_v17 = vrot.slane %v2903_v33, 4  ;;  %v3208_v33 = vrot.slane %v5373_v3, 5 }
 0x17d   : > { %2722 = vmatmul.bf16.gmra.mxu2 %v4187_v11  ;;  %v5375_v21 = vadd.f32 %v2277_v23, %v1936_v30  ;;  %v3204_v11 = vrot.slane %v2780_v63, 5  ;;  %v2899_v23 = vshll.u32 %v5373_v3, 16  ;;  %v3202_v63 = vsel %vm4991_vm14, %v4074_v60, %v3201_v25 }
 0x17f   : > { %3099 = vmatmul.bf16.gmra.mxu3 %v3019_v7  ;;  %v2280_v57 = vpop.f32.mrf.mxu0  ;;  %v2449_v7 = vpack.c.b16 %v2437_v9, %v2436_v41  ;;  %v3205_v27 = vsel %vm4991_vm14, %v3203_v47, %v3204_v11  ;;  %v2901_v16 = vrot.slane %v2899_v23, 5  ;;  %v3939_v9 = vrot.slane %v2330_v50, 9 }
 0x180   : > { %v1710_v28 = vpop.f32.mrf.mxu2  ;;  %v1484_v54 = vpop.f32.mrf.mxu1  ;;  %v3257_v60 = vunpack.c.l.b16 %v3205_v27 }
 0x181   : > { %v1744_v55 = vadd.f32 %v1710_v28, %v1483_v10  ;;  %v1485_v52 = vadd.f32 %v1484_v54, %v5257_v12  ;;  %v2890_v10 = vshrl.u32 %v2781_v35, 16  ;;  %v3007_v12 = vunpack.c.l.b16 %v2878_v61  ;;  %v5391_v28 = vld [vmem:[#allocation2 + $0x50] sm:$0x1]  ;;  %v2784_v61 = vld [vmem:[#allocation2 + $0x54] sm:$0xf] }
 0x182   : > { %v1903_v39 = vpop.f32.mrf.mxu3  ;;  %3348 = vmatmul.bf16.gmra.mxu0 %v3268_v13  ;;  %v3256_v54 = vunpack.c.l.b16 %v3202_v63  ;;  %v2906_v11 = vor.u32 %v2905_v17, %v2901_v16  ;;  %v2917_v27 = vshll.u32 %v2784_v61, 16  ;;  %v2923_v17 = vshll.u32 %v5396_v44, 16 }
 0x183   : > { %v1937_v29 = vadd.f32 %v1903_v39, %v1744_v55  ;;  %v2892_v18 = vrot.slane %v2890_v10, 4  ;;  %v3020_v55 = vpack.c.b16 %v3008_v5, %v3007_v12  ;;  %v2390_v39 = vrot.slane %v2388_v51, 4 }
 0x184   : > { %v3269_v34 = vpack.c.b16 %v3257_v60, %v3256_v54  ;;  %v2907_v47 = vrot.slane %v2906_v11, 4  ;;  %v2919_v54 = vrot.slane %v2917_v27, 5  ;;  %v5413_v60 = vrot.slane %v2923_v17, 5 }
 0x185   : > { %v5386_v24 = vadd.f32 %v2280_v57, %v1937_v29  ;;  %v2896_v57 = vor.u32 %v2895_v59, %v2892_v18  ;;  %v2389_v29 = vsel %vm4991_vm14, %v3939_v9, %v2388_v51  ;;  %v2392_v63 = vsel %vm4991_vm14, %v2390_v39, %v2391_v53 }
 0x186   : > { %v2914_v18 = vshrl.u32 %v2784_v61, 16  ;;  %v2438_v3 = vunpack.c.l.b16 %v2389_v29  ;;  %v2439_v50 = vunpack.c.l.b16 %v2392_v63  ;;  %v4075_v51 = vrot.slane %v3150_v1, 9 }
 0x187   : > { %v2282_v25 = vpop.f32.mrf.mxu0  ;;  %v2897_v10 = vrot.slane %v2896_v57, 4  ;;  %v2398_v17 = vrot.slane %v5187_v2, 5 }
 0x188   : > { %v1712_v30 = vpop.f32.mrf.mxu2  ;;  %v1487_v43 = vpop.f32.mrf.mxu1 }
 0x189   : > { %v1745_v36 = vadd.f32 %v1712_v30, %v1485_v52  ;;  %v1488_v35 = vadd.f32 %v1487_v43, %v5276_v20  ;;  %v2909_v52 = vshll.u32 %v5391_v28, 16 }
 0x18a   : > { %v1905_v13 = vpop.f32.mrf.mxu3 }
 0x18b   : > { %v1938_v41 = vadd.f32 %v1905_v13, %v1745_v36  ;;  %2533 = vmatmul.bf16.gmra.mxu1 %v2449_v7  ;;  %v2911_v23 = vrot.slane %v2909_v52, 5  ;;  %v2927_v36 = vshrl.u32 %v5396_v44, 16  ;;  %v3210_v13 = vrot.slane %v3208_v33, 4 }
 0x18c   : > { %v2450_v52 = vpack.c.b16 %v2439_v50, %v2438_v3  ;;  %v2787_v50 = vld [vmem:[#allocation2 + $0x60] sm:$0xf] }
 0x18d   : > { %2727 = vmatmul.bf16.gmra.mxu2 %v4188_v62  ;;  %v5403_v59 = vadd.f32 %v2282_v25, %v1938_v41  ;;  %v2912_v25 = vsel %vm4773_vm11, %v2907_v47, %v2911_v23  ;;  %v2929_v57 = vrot.slane %v2927_v36, 4  ;;  %v5415_v41 = vld [vmem:[#allocation2 + $0x5c] sm:$0x1]  ;;  %v2331_v47 = vld [vmem:[#allocation2 + $0x48] sm:$0xe] }
 0x18e   : > { %v3010_v53 = vunpack.c.l.b16 %v2912_v25  ;;  %v3215_v25 = vrot.slane %v5396_v44, 5 }
 0x18f   : > { %3104 = vmatmul.bf16.gmra.mxu3 %v3020_v55  ;;  %v2285_v30 = vpop.f32.mrf.mxu0  ;;  %v2916_v55 = vrot.slane %v2914_v18, 4 }
 0x190   : > { %v1715_v20 = vpop.f32.mrf.mxu2  ;;  %v1489_v5 = vpop.f32.mrf.mxu1  ;;  %v3217_v56 = vrot.slane %v3215_v25, 4 }
 0x191   : > { %v1746_v12 = vadd.f32 %v1715_v20, %v1488_v35  ;;  %v1490_v7 = vadd.f32 %v1489_v5, %v5286_v58  ;;  %v2902_v35 = vsel %vm4773_vm11, %v2897_v10, %v2901_v16  ;;  %v3211_v58 = vrot.slane %v5391_v28, 5 }
 0x192   : > { %v1908_v43 = vpop.f32.mrf.mxu3  ;;  %3353 = vmatmul.bf16.gmra.mxu0 %v3269_v34  ;;  %v3009_v39 = vunpack.c.l.b16 %v2902_v35  ;;  %v4189_v34 = vld [vmem:[#allocation2 + $0x48] sm:$0xff]  ;;  %v3209_v10 = vsel %vm4991_vm14, %v4075_v51, %v3208_v33  ;;  %v2395_v20 = vrot.slane %v5177_v0, 5  ;;  %v2920_v23 = vor.u32 %v2919_v54, %v2916_v55 }
 0x193   : > { %v1939_v62 = vadd.f32 %v1908_v43, %v1746_v12  ;;  %v3212_v28 = vsel %vm4991_vm14, %v3210_v13, %v3211_v58  ;;  %v2930_v12 = vor.u32 %v2929_v57, %v5413_v60  ;;  %v2933_v5 = vshll.u32 %v5415_v41, 16  ;;  %v5429_v13 = vld [vmem:[#allocation2 + $0x64] sm:$0xf]  ;;  %v984_v58 = vld [vmem:[#allocation2 + $0x74] sm:$0x1] }
 0x194   : > { %v3021_v18 = vpack.c.b16 %v3010_v53, %v3009_v39  ;;  %v3940_v33 = vrot.slane %v2331_v47, 9  ;;  %v2397_v27 = vrot.slane %v2395_v20, 4  ;;  %v2921_v36 = vrot.slane %v2920_v23, 4  ;;  %v3151_v39 = vld [vmem:[#allocation2 + $0x54] sm:$0xe] }
 0x195   : > { %v5417_v9 = vadd.f32 %v2285_v30, %v1939_v62  ;;  %v3258_v30 = vunpack.c.l.b16 %v3209_v10  ;;  %v2931_v0 = vrot.slane %v2930_v12, 4  ;;  %v2935_v43 = vrot.slane %v2933_v5, 5  ;;  %v953_v62 = vld [vmem:[#allocation2 + $0x6c] sm:$0x1] }
 0x196   : > { %v2396_v2 = vsel %vm4991_vm14, %v3940_v33, %v2395_v20  ;;  %v2399_v57 = vsel %vm4991_vm14, %v2397_v27, %v2398_v17  ;;  %v2938_v53 = vshrl.u32 %v2787_v50, 16  ;;  %v2947_v10 = vshll.u32 %v5429_v13, 16 }
 0x197   : > { %v2287_v29 = vpop.f32.mrf.mxu0  ;;  %v2936_v44 = vsel %vm4773_vm11, %v2931_v0, %v2935_v43  ;;  %v2951_v8 = vshrl.u32 %v5429_v13, 16  ;;  %v2441_v47 = vunpack.c.l.b16 %v2399_v57  ;;  %v4076_v12 = vrot.slane %v3151_v39, 9  ;;  %v2789_v0 = vld [vmem:[#allocation2 + $0x68] sm:$0x1] }
 0x198   : > { %v1717_v11 = vpop.f32.mrf.mxu2  ;;  %v1492_v61 = vpop.f32.mrf.mxu1  ;;  %v3218_v5 = vrot.slane %v5415_v41, 5  ;;  %v2949_v27 = vrot.slane %v2947_v10, 5 }
 0x199   : > { %v1747_v16 = vadd.f32 %v1717_v11, %v1490_v7  ;;  %v3259_v7 = vunpack.c.l.b16 %v3212_v28  ;;  %v1493_v3 = vadd.f32 %v1492_v61, %v5253_v42  ;;  %v954_v42 = vsel %vm4598_vm7, 0, %v953_v62 }
 0x19a   : > { %v1910_v63 = vpop.f32.mrf.mxu3  ;;  %955 = vst [vmem:[#allocation2 + $0x6c] sm:$0x1] %v954_v42  ;;  %v2953_v17 = vrot.slane %v2951_v8, 4 }
 0x19b   : > { %v1940_v1 = vadd.f32 %v1910_v63, %v1747_v16  ;;  %2538 = vmatmul.bf16.gmra.mxu1 %v2450_v52  ;;  %v3270_v51 = vpack.c.b16 %v3259_v7, %v3258_v30  ;;  %v2926_v52 = vsel %vm4773_vm11, %v2921_v36, %v5413_v60  ;;  %v985_v16 = vsel %vm4727_vm8, 0, %v984_v58 }
 0x19c   : > { %986 = vst [vmem:[#allocation2 + $0x74] sm:$0x1] %v985_v16  ;;  %v2440_v60 = vunpack.c.l.b16 %v2396_v2  ;;  %v3011_v23 = vunpack.c.l.b16 %v2926_v52  ;;  %v3012_v63 = vunpack.c.l.b16 %v2936_v44  ;;  %v2402_v36 = vrot.slane %v5210_v19, 5 }
 0x19d   : > { %2732 = vmatmul.bf16.gmra.mxu2 %v4189_v34  ;;  %v2941_v34 = vshll.u32 %v2787_v50, 16  ;;  %v5446_v28 = vadd.f32 %v2287_v29, %v1940_v1  ;;  %v2332_v50 = vld [vmem:[#allocation2 + $0x54] sm:$0xe]  ;;  %v2957_v2 = vshll.u32 %v2789_v0, 16 }
 0x19e   : > { %v2451_v1 = vpack.c.b16 %v2441_v47, %v2440_v60  ;;  %v3022_v58 = vpack.c.b16 %v3012_v63, %v3011_v23  ;;  %v3941_v19 = vrot.slane %v2332_v50, 9  ;;  %v2404_v42 = vrot.slane %v2402_v36, 4  ;;  %v5464_v23 = vld [vmem:[#allocation2 + $0x70] sm:$0xf] }
 0x19f   : > { %3109 = vmatmul.bf16.gmra.mxu3 %v3021_v18  ;;  %v2290_v11 = vpop.f32.mrf.mxu0  ;;  %v2940_v18 = vrot.slane %v2938_v53, 4  ;;  %v2943_v33 = vrot.slane %v2941_v34, 5  ;;  %v2959_v16 = vrot.slane %v2957_v2, 5 }
 0x1a0   : > { %v1720_v35 = vpop.f32.mrf.mxu2  ;;  %v1494_v54 = vpop.f32.mrf.mxu1  ;;  %v2403_v10 = vsel %vm4991_vm14, %v3941_v19, %v2402_v36  ;;  %v2971_v36 = vshll.u32 %v5464_v23, 16  ;;  %v4191_v19 = vld [vmem:[#allocation2 + $0x60] sm:$0xff] }
 0x1a1   : > { %v1748_v55 = vadd.f32 %v1720_v35, %v1493_v3  ;;  %v1495_v7 = vadd.f32 %v1494_v54, %v5268_v6  ;;  %v4190_v3 = vld [vmem:[#allocation2 + $0x54] sm:$0xff]  ;;  %v3219_v35 = vsel %vm4991_vm14, %v3217_v56, %v3218_v5  ;;  %v2954_v54 = vor.u32 %v2953_v17, %v2949_v27  ;;  %v2790_v63 = vld [vmem:[#allocation2 + $0x6c] sm:$0xf] }
 0x1a2   : > { %v1913_v61 = vpop.f32.mrf.mxu3  ;;  %3358 = vmatmul.bf16.gmra.mxu0 %v3270_v51  ;;  %v3216_v51 = vsel %vm4991_vm14, %v4076_v12, %v3215_v25  ;;  %v3261_v44 = vunpack.c.l.b16 %v3219_v35  ;;  %v3225_v5 = vrot.slane %v2789_v0, 5  ;;  %v2962_v0 = vshrl.u32 %v2790_v63, 16 }
 0x1a3   : > { %v1941_v20 = vadd.f32 %v1913_v61, %v1748_v55  ;;  %v2944_v55 = vor.u32 %v2943_v33, %v2940_v18  ;;  %v3260_v52 = vunpack.c.l.b16 %v3216_v51  ;;  %v2955_v53 = vrot.slane %v2954_v54, 4  ;;  %v3152_v61 = vld [vmem:[#allocation2 + $0x60] sm:$0xe] }
 0x1a4   : > { %v4077_v12 = vrot.slane %v3152_v61, 9 }
 0x1a5   : > { %v5449_v30 = vadd.f32 %v2290_v11, %v1941_v20  ;;  %v2405_v11 = vrot.slane %v5218_v46, 5  ;;  %v2945_v25 = vrot.slane %v2944_v55, 4  ;;  %v3222_v20 = vrot.slane %v5429_v13, 5 }
 0x1a6   : > { %v3271_v46 = vpack.c.b16 %v3261_v44, %v3260_v52  ;;  %v2960_v13 = vsel %vm4773_vm11, %v2955_v53, %v2959_v16  ;;  %v2973_v55 = vrot.slane %v2971_v36, 5  ;;  %v2964_v52 = vrot.slane %v2962_v0, 4 }
 0x1a7   : > { %v2292_v41 = vpop.f32.mrf.mxu0  ;;  %v2406_v8 = vsel %vm4991_vm14, %v2404_v42, %v2405_v11  ;;  %v2950_v17 = vsel %vm4773_vm11, %v2945_v25, %v2949_v27  ;;  %v3014_v51 = vunpack.c.l.b16 %v2960_v13  ;;  %v3223_v27 = vsel %vm4991_vm14, %v4077_v12, %v3222_v20  ;;  %v2792_v11 = vld [vmem:[#allocation2 + $0x74] sm:$0x1] }
 0x1a8   : > { %v1722_v29 = vpop.f32.mrf.mxu2  ;;  %v1497_v62 = vpop.f32.mrf.mxu1  ;;  %v2443_v33 = vunpack.c.l.b16 %v2406_v8  ;;  %v2409_v42 = vrot.slane %v5234_v48, 5  ;;  %v3262_v16 = vunpack.c.l.b16 %v3223_v27  ;;  %v2981_v8 = vshll.u32 %v2792_v11, 16 }
 0x1a9   : > { %v1749_v43 = vadd.f32 %v1722_v29, %v1495_v7  ;;  %v1498_v39 = vadd.f32 %v1497_v62, %v5284_v15  ;;  %v2442_v7 = vunpack.c.l.b16 %v2403_v10  ;;  %v2965_v62 = vshll.u32 %v2790_v63, 16 }
 0x1aa   : > { %v1915_v6 = vpop.f32.mrf.mxu3 }
 0x1ab   : > { %v1942_v57 = vadd.f32 %v1915_v6, %v1749_v43  ;;  %2543 = vmatmul.bf16.gmra.mxu1 %v2451_v1  ;;  %v3224_v1 = vrot.slane %v3222_v20, 4  ;;  %v2975_v43 = vshrl.u32 %v5464_v23, 16  ;;  %v2452_v6 = vpack.c.b16 %v2443_v33, %v2442_v7 }
 0x1ad   : > { %2737 = vmatmul.bf16.gmra.mxu2 %v4190_v3  ;;  %v5466_v56 = vadd.f32 %v2292_v41, %v1942_v57  ;;  %v3013_v41 = vunpack.c.l.b16 %v2950_v17  ;;  %v2977_v54 = vrot.slane %v2975_v43, 4  ;;  %v3153_v43 = vld [vmem:[#allocation2 + $0x6c] sm:$0xe] }
 0x1af   : > { %3114 = vmatmul.bf16.gmra.mxu3 %v3022_v58  ;;  %v2295_v15 = vpop.f32.mrf.mxu0  ;;  %v3226_v58 = vsel %vm4991_vm14, %v3224_v1, %v3225_v5  ;;  %v3023_v53 = vpack.c.b16 %v3014_v51, %v3013_v41  ;;  %v2978_v10 = vor.u32 %v2977_v54, %v2973_v55  ;;  %v3229_v1 = vrot.slane %v5464_v23, 5 }
 0x1b0   : > { %v1725_v34 = vpop.f32.mrf.mxu2  ;;  %v1499_v47 = vpop.f32.mrf.mxu1  ;;  %v4078_v51 = vrot.slane %v3153_v43, 9 }
 0x1b1   : > { %v1750_v60 = vadd.f32 %v1725_v34, %v1498_v39  ;;  %v1500_v50 = vadd.f32 %v1499_v47, %v5304_v38  ;;  %v2967_v38 = vrot.slane %v2965_v62, 5  ;;  %v2333_v39 = vld [vmem:[#allocation2 + $0x60] sm:$0xe]  ;;  %v3263_v34 = vunpack.c.l.b16 %v3226_v58 }
 0x1b2   : > { %v1918_v18 = vpop.f32.mrf.mxu3  ;;  %3363 = vmatmul.bf16.gmra.mxu0 %v3271_v46  ;;  %v3942_v20 = vrot.slane %v2333_v39, 9  ;;  %v2411_v46 = vrot.slane %v2409_v42, 4  ;;  %v2979_v63 = vrot.slane %v2978_v10, 4  ;;  %v3231_v27 = vrot.slane %v3229_v1, 4 }
 0x1b3   : > { %v1943_v29 = vadd.f32 %v1918_v18, %v1750_v60  ;;  %v2412_v60 = vrot.slane %v5251_v40, 5  ;;  %v2968_v47 = vor.u32 %v2967_v38, %v2964_v52  ;;  %v3272_v12 = vpack.c.b16 %v3263_v34, %v3262_v16  ;;  %v4192_v52 = vld [vmem:[#allocation2 + $0x6c] sm:$0xff] }
 0x1b4   : > { %v2983_v18 = vrot.slane %v2981_v8, 5  ;;  %v2410_v17 = vsel %vm4991_vm14, %v3942_v20, %v2409_v42 }
 0x1b5   : > { %v5474_v3 = vadd.f32 %v2295_v15, %v1943_v29  ;;  %v2413_v13 = vsel %vm4991_vm14, %v2411_v46, %v2412_v60  ;;  %v2969_v29 = vrot.slane %v2968_v47, 4  ;;  %v2444_v0 = vunpack.c.l.b16 %v2410_v17 }
 0x1b6   : > { %v2445_v62 = vunpack.c.l.b16 %v2413_v13  ;;  %v2984_v41 = vsel %vm4773_vm11, %v2979_v63, %v2983_v18 }
 0x1b7   : > { %v2297_v44 = vpop.f32.mrf.mxu0 }
 0x1b8   : > { %v1727_v35 = vpop.f32.mrf.mxu2  ;;  %v1502_v57 = vpop.f32.mrf.mxu1  ;;  %v2453_v54 = vpack.c.b16 %v2445_v62, %v2444_v0 }
 0x1b9   : > { %v1751_v2 = vadd.f32 %v1727_v35, %v1500_v50  ;;  %v1503_v15 = vadd.f32 %v1502_v57, %v5255_v45  ;;  %v2974_v50 = vsel %vm4773_vm11, %v2969_v29, %v2973_v55  ;;  %v3232_v35 = vrot.slane %v2792_v11, 5 }
 0x1ba   : > { %v1920_v25 = vpop.f32.mrf.mxu3  ;;  %v3016_v57 = vunpack.c.l.b16 %v2984_v41  ;;  %v3230_v55 = vsel %vm4991_vm14, %v4078_v51, %v3229_v1 }
 0x1bb   : > { %v1944_v61 = vadd.f32 %v1920_v25, %v1751_v2  ;;  %2548 = vmatmul.bf16.gmra.mxu1 %v2452_v6  ;;  %v3015_v2 = vunpack.c.l.b16 %v2974_v50  ;;  %v3233_v37 = vsel %vm4991_vm14, %v3231_v27, %v3232_v35 }
 0x1bc   : > { %v3265_v25 = vunpack.c.l.b16 %v3233_v37 }
 0x1bd   : > { %2742 = vmatmul.bf16.gmra.mxu2 %v4191_v19  ;;  %v5483_v48 = vadd.f32 %v2297_v44, %v1944_v61  ;;  %v3024_v39 = vpack.c.b16 %v3016_v57, %v3015_v2 }
 0x1bf   : > { %3119 = vmatmul.bf16.gmra.mxu3 %v3023_v53  ;;  %v2300_v40 = vpop.f32.mrf.mxu0 }
 0x1c0   : > { %v1730_v5 = vpop.f32.mrf.mxu2  ;;  %v1504_v33 = vpop.f32.mrf.mxu1 }
 0x1c1   : > { %v1752_v7 = vadd.f32 %v1730_v5, %v1503_v15  ;;  %v1505_v58 = vadd.f32 %v1504_v33, %v5274_v49  ;;  %v3264_v49 = vunpack.c.l.b16 %v3230_v55 }
 0x1c2   : > { %v1923_v36 = vpop.f32.mrf.mxu3  ;;  %3368 = vmatmul.bf16.gmra.mxu0 %v3272_v12 }
 0x1c3   : > { %v1945_v45 = vadd.f32 %v1923_v36, %v1752_v7  ;;  %v3273_v34 = vpack.c.b16 %v3265_v25, %v3264_v49 }
 0x1c5   : > { %v5495_v6 = vadd.f32 %v2300_v40, %v1945_v45 }
 0x1c7   : > { %v2302_v38 = vpop.f32.mrf.mxu0 }
 0x1c8   : > { %v1732_v23 = vpop.f32.mrf.mxu2  ;;  %v1507_v42 = vpop.f32.mrf.mxu1 }
 0x1c9   : > { %v1753_v19 = vadd.f32 %v1732_v23, %v1505_v58  ;;  %v1508_v16 = vadd.f32 %v1507_v42, %v5297_v14 }
 0x1ca   : > { %v1925_v44 = vpop.f32.mrf.mxu3 }
 0x1cb   : > { %v1946_v11 = vadd.f32 %v1925_v44, %v1753_v19  ;;  %2553 = vmatmul.bf16.gmra.mxu1 %v2453_v54 }
 0x1cd   : > { %2747 = vmatmul.bf16.gmra.mxu2 %v4192_v52  ;;  %v5502_v53 = vadd.f32 %v2302_v38, %v1946_v11 }
 0x1cf   : > { %3124 = vmatmul.bf16.gmra.mxu3 %v3024_v39  ;;  %v2305_v20 = vpop.f32.mrf.mxu0 }
 0x1d0   : > { %v1735_v61 = vpop.f32.mrf.mxu2  ;;  %v1509_v8 = vpop.f32.mrf.mxu1 }
 0x1d1   : > { %v1754_v10 = vadd.f32 %v1735_v61, %v1508_v16  ;;  %v1510_v47 = vadd.f32 %v1509_v8, %v5313_v32 }
 0x1d2   : > { %v1928_v46 = vpop.f32.mrf.mxu3  ;;  %3373 = vmatmul.bf16.gmra.mxu0 %v3273_v34 }
 0x1d3   : > { %v1947_v31 = vadd.f32 %v1928_v46, %v1754_v10 }
 0x1d5   : > { %v5505_v60 = vadd.f32 %v2305_v20, %v1947_v31 }
 0x1d7   : > { %v2307_v63 = vpop.f32.mrf.mxu0 }
 0x1d8   : > { %v1737_v15 = vpop.f32.mrf.mxu2  ;;  %v2519_v5 = vpop.f32.mrf.mxu1 }
 0x1d9   : > { %v1755_v12 = vadd.f32 %v1737_v15, %v1510_v47  ;;  %v2559_v13 = vadd.f32 %v2519_v5, %v5332_v22 }
 0x1da   : > { %v1930_v18 = vpop.f32.mrf.mxu3 }
 0x1db   : > { %v1948_v7 = vadd.f32 %v1930_v18, %v1755_v12 }
 0x1dd   : > { %v5508_v14 = vadd.f32 %v2307_v63, %v1948_v7 }
 0x1df   : > { %v3339_v29 = vpop.f32.mrf.mxu0 }
 0x1e0   : > { %v2713_v33 = vpop.f32.mrf.mxu2  ;;  %v2521_v17 = vpop.f32.mrf.mxu1 }
 0x1e1   : > { %v2753_v1 = vadd.f32 %v2713_v33, %v2559_v13  ;;  %v2560_v36 = vadd.f32 %v2521_v17, %v5349_v26 }
 0x1e2   : > { %v3090_v40 = vpop.f32.mrf.mxu3 }
 0x1e3   : > { %v3130_v43 = vadd.f32 %v3090_v40, %v2753_v1 }
 0x1e5   : > { %v3379_v41 = vadd.f32 %v3339_v29, %v3130_v43 }
 0x1e7   : > { %v3341_v62 = vpop.f32.mrf.mxu0  ;;  %v3448_v58 = vmul.f32 %v3379_v41, %v3379_v41 }
 0x1e8   : > { %v2715_v45 = vpop.f32.mrf.mxu2  ;;  %v2524_v0 = vpop.f32.mrf.mxu1 }
 0x1e9   : > { %v2754_v32 = vadd.f32 %v2715_v45, %v2560_v36  ;;  %v2561_v35 = vadd.f32 %v2524_v0, %v5360_v4 }
 0x1ea   : > { %v3092_v50 = vpop.f32.mrf.mxu3 }
 0x1eb   : > { %v3131_v51 = vadd.f32 %v3092_v50, %v2754_v32 }
 0x1ed   : > { %v3380_v27 = vadd.f32 %v3341_v62, %v3131_v51 }
 0x1ef   : > { %v4260_v23 = vpack.c.bf16 %v3380_v27, %v3379_v41  ;;  %v3427_v22 = vadd.f32 %v3380_v27, %v3379_v41  ;;  %v3449_v54 = vmul.f32 %v3380_v27, %v3380_v27  ;;  %v3344_v42 = vpop.f32.mrf.mxu0 }
 0x1f0   : > { %v2718_v2 = vpop.f32.mrf.mxu2  ;;  %v2526_v19 = vpop.f32.mrf.mxu1 }
 0x1f1   : > { %v2755_v57 = vadd.f32 %v2718_v2, %v2561_v35  ;;  %4261 = vst [vmem:[%s4581_s18] sm:$0xff] %v4260_v23   ;;  %v3464_v26 = vadd.f32 %v3449_v54, %v3448_v58  ;;  %v2562_v37 = vadd.f32 %v2526_v19, %v5375_v21 }
 0x1f2   : > { %v3095_v52 = vpop.f32.mrf.mxu3 }
 0x1f3   : > { %v3132_v38 = vadd.f32 %v3095_v52, %v2755_v57 }
 0x1f5   : > { %v3381_v55 = vadd.f32 %v3344_v42, %v3132_v38 }
 0x1f7   : > { %v3428_v44 = vadd.f32 %v3427_v22, %v3381_v55  ;;  %v3450_v11 = vmul.f32 %v3381_v55, %v3381_v55  ;;  %v3346_v16 = vpop.f32.mrf.mxu0 }
 0x1f8   : > { %v2720_v39 = vpop.f32.mrf.mxu2  ;;  %v2529_v49 = vpop.f32.mrf.mxu1 }
 0x1f9   : > { %v2756_v4 = vadd.f32 %v2720_v39, %v2562_v37  ;;  %v3465_v25 = vadd.f32 %v3464_v26, %v3450_v11  ;;  %v2563_v8 = vadd.f32 %v2529_v49, %v5386_v24 }
 0x1fa   : > { %v3097_v61 = vpop.f32.mrf.mxu3 }
 0x1fb   : > { %v3133_v34 = vadd.f32 %v3097_v61, %v2756_v4 }
 0x1fd   : > { %v3382_v10 = vadd.f32 %v3346_v16, %v3133_v34 }
 0x1ff   : > { %v4265_v20 = vpack.c.bf16 %v3382_v10, %v3381_v55  ;;  %v3429_v46 = vadd.f32 %v3428_v44, %v3382_v10  ;;  %v3451_v31 = vmul.f32 %v3382_v10, %v3382_v10  ;;  %v3349_v5 = vpop.f32.mrf.mxu0 }
 0x200   : > { %v2723_v47 = vpop.f32.mrf.mxu2  ;;  %v2531_v12 = vpop.f32.mrf.mxu1 }
 0x201   : > { %v2757_v15 = vadd.f32 %v2723_v47, %v2563_v8  ;;  %4304 = vst [vmem:[%s4581_s18 + $0x8] sm:$0xff] %v4265_v20   ;;  %v3466_v21 = vadd.f32 %v3465_v25, %v3451_v31  ;;  %v2564_v33 = vadd.f32 %v2531_v12, %v5403_v59 }
 0x202   : > { %v3100_v63 = vpop.f32.mrf.mxu3 }
 0x203   : > { %v3134_v18 = vadd.f32 %v3100_v63, %v2757_v15 }
 0x205   : > { %v3383_v7 = vadd.f32 %v3349_v5, %v3134_v18 }
 0x207   : > { %v3430_v17 = vadd.f32 %v3429_v46, %v3383_v7  ;;  %v3452_v13 = vmul.f32 %v3383_v7, %v3383_v7  ;;  %v3351_v36 = vpop.f32.mrf.mxu0 }
 0x208   : > { %v2725_v29 = vpop.f32.mrf.mxu2  ;;  %v2534_v24 = vpop.f32.mrf.mxu1 }
 0x209   : > { %v2758_v40 = vadd.f32 %v2725_v29, %v2564_v33  ;;  %v3467_v1 = vadd.f32 %v3466_v21, %v3452_v13  ;;  %v2565_v0 = vadd.f32 %v2534_v24, %v5417_v9 }
 0x20a   : > { %v3102_v43 = vpop.f32.mrf.mxu3 }
 0x20b   : > { %v3135_v45 = vadd.f32 %v3102_v43, %v2758_v40 }
 0x20d   : > { %v3384_v32 = vadd.f32 %v3351_v36, %v3135_v45 }
 0x20f   : > { %v4270_v62 = vpack.c.bf16 %v3384_v32, %v3383_v7  ;;  %v3431_v50 = vadd.f32 %v3430_v17, %v3384_v32  ;;  %v3453_v41 = vmul.f32 %v3384_v32, %v3384_v32  ;;  %v3354_v58 = vpop.f32.mrf.mxu0 }
 0x210   : > { %v2728_v51 = vpop.f32.mrf.mxu2  ;;  %v2536_v35 = vpop.f32.mrf.mxu1 }
 0x211   : > { %v2759_v27 = vadd.f32 %v2728_v51, %v2565_v0  ;;  %4305 = vst [vmem:[%s4581_s18 + $0x10] sm:$0xff] %v4270_v62   ;;  %v3468_v59 = vadd.f32 %v3467_v1, %v3453_v41  ;;  %v2566_v2 = vadd.f32 %v2536_v35, %v5446_v28 }
 0x212   : > { %v3105_v23 = vpop.f32.mrf.mxu3 }
 0x213   : > { %v3136_v22 = vadd.f32 %v3105_v23, %v2759_v27 }
 0x215   : > { %v3385_v54 = vadd.f32 %v3354_v58, %v3136_v22 }
 0x217   : > { %v3432_v57 = vadd.f32 %v3431_v50, %v3385_v54  ;;  %v3454_v19 = vmul.f32 %v3385_v54, %v3385_v54  ;;  %v3356_v38 = vpop.f32.mrf.mxu0 }
 0x218   : > { %v2730_v26 = vpop.f32.mrf.mxu2  ;;  %v2539_v9 = vpop.f32.mrf.mxu1 }
 0x219   : > { %v2760_v42 = vadd.f32 %v2730_v26, %v2566_v2  ;;  %v3469_v52 = vadd.f32 %v3468_v59, %v3454_v19  ;;  %v2567_v11 = vadd.f32 %v2539_v9, %v5449_v30 }
 0x21a   : > { %v3107_v55 = vpop.f32.mrf.mxu3 }
 0x21b   : > { %v3137_v37 = vadd.f32 %v3107_v55, %v2760_v42 }
 0x21d   : > { %v3386_v44 = vadd.f32 %v3356_v38, %v3137_v37 }
 0x21f   : > { %v4275_v39 = vpack.c.bf16 %v3386_v44, %v3385_v54  ;;  %v3433_v4 = vadd.f32 %v3432_v57, %v3386_v44  ;;  %v3455_v49 = vmul.f32 %v3386_v44, %v3386_v44  ;;  %v3359_v34 = vpop.f32.mrf.mxu0 }
 0x220   : > { %v2733_v25 = vpop.f32.mrf.mxu2  ;;  %v2541_v61 = vpop.f32.mrf.mxu1 }
 0x221   : > { %v2761_v16 = vadd.f32 %v2733_v25, %v2567_v11  ;;  %4306 = vst [vmem:[%s4581_s18 + $0x18] sm:$0xff] %v4275_v39   ;;  %v3470_v28 = vadd.f32 %v3469_v52, %v3455_v49  ;;  %v2568_v46 = vadd.f32 %v2541_v61, %v5466_v56 }
 0x222   : > { %v3110_v10 = vpop.f32.mrf.mxu3 }
 0x223   : > { %v3138_v8 = vadd.f32 %v3110_v10, %v2761_v16 }
 0x225   : > { %v3387_v20 = vadd.f32 %v3359_v34, %v3138_v8 }
 0x227   : > { %v3434_v31 = vadd.f32 %v3433_v4, %v3387_v20  ;;  %v3456_v47 = vmul.f32 %v3387_v20, %v3387_v20  ;;  %v3361_v5 = vpop.f32.mrf.mxu0 }
 0x228   : > { %v2735_v15 = vpop.f32.mrf.mxu2  ;;  %v2544_v30 = vpop.f32.mrf.mxu1 }
 0x229   : > { %v2762_v12 = vadd.f32 %v2735_v15, %v2568_v46  ;;  %v3471_v21 = vadd.f32 %v3470_v28, %v3456_v47  ;;  %v2569_v33 = vadd.f32 %v2544_v30, %v5474_v3 }
 0x22a   : > { %v3112_v63 = vpop.f32.mrf.mxu3 }
 0x22b   : > { %v3139_v18 = vadd.f32 %v3112_v63, %v2762_v12 }
 0x22d   : > { %v3388_v7 = vadd.f32 %v3361_v5, %v3139_v18 }
 0x22f   : > { %v4280_v17 = vpack.c.bf16 %v3388_v7, %v3387_v20  ;;  %v3435_v13 = vadd.f32 %v3434_v31, %v3388_v7  ;;  %v3457_v29 = vmul.f32 %v3388_v7, %v3388_v7  ;;  %v3364_v36 = vpop.f32.mrf.mxu0 }
 0x230   : > { %v2738_v40 = vpop.f32.mrf.mxu2  ;;  %v2546_v1 = vpop.f32.mrf.mxu1 }
 0x231   : > { %v2763_v24 = vadd.f32 %v2738_v40, %v2569_v33  ;;  %4307 = vst [vmem:[%s4581_s18 + $0x20] sm:$0xff] %v4280_v17   ;;  %v3472_v56 = vadd.f32 %v3471_v21, %v3457_v29  ;;  %v2570_v0 = vadd.f32 %v2546_v1, %v5483_v48 }
 0x232   : > { %v3115_v43 = vpop.f32.mrf.mxu3 }
 0x233   : > { %v3140_v45 = vadd.f32 %v3115_v43, %v2763_v24 }
 0x235   : > { %v3389_v32 = vadd.f32 %v3364_v36, %v3140_v45 }
 0x237   : > { %v3436_v62 = vadd.f32 %v3435_v13, %v3389_v32  ;;  %v3458_v50 = vmul.f32 %v3389_v32, %v3389_v32  ;;  %v3366_v35 = vpop.f32.mrf.mxu0 }
 0x238   : > { %v2740_v41 = vpop.f32.mrf.mxu2  ;;  %v2549_v3 = vpop.f32.mrf.mxu1 }
 0x239   : > { %v2764_v51 = vadd.f32 %v2740_v41, %v2570_v0  ;;  %v3473_v27 = vadd.f32 %v3472_v56, %v3458_v50  ;;  %v2571_v22 = vadd.f32 %v2549_v3, %v5495_v6 }
 0x23a   : > { %v3117_v59 = vpop.f32.mrf.mxu3 }
 0x23b   : > { %v3141_v58 = vadd.f32 %v3117_v59, %v2764_v51 }
 0x23d   : > { %v3390_v23 = vadd.f32 %v3366_v35, %v3141_v58 }
 0x23f   : > { %v4285_v54 = vpack.c.bf16 %v3390_v23, %v3389_v32  ;;  %v3437_v2 = vadd.f32 %v3436_v62, %v3390_v23  ;;  %v3459_v57 = vmul.f32 %v3390_v23, %v3390_v23  ;;  %v3369_v9 = vpop.f32.mrf.mxu0 }
 0x240   : > { %v2743_v19 = vpop.f32.mrf.mxu2  ;;  %v2551_v42 = vpop.f32.mrf.mxu1 }
 0x241   : > { %v2765_v26 = vadd.f32 %v2743_v19, %v2571_v22  ;;  %4308 = vst [vmem:[%s4581_s18 + $0x28] sm:$0xff] %v4285_v54   ;;  %v3474_v48 = vadd.f32 %v3473_v27, %v3459_v57  ;;  %v2572_v37 = vadd.f32 %v2551_v42, %v5502_v53 }
 0x242   : > { %v3120_v52 = vpop.f32.mrf.mxu3 }
 0x243   : > { %v3142_v38 = vadd.f32 %v3120_v52, %v2765_v26 }
 0x245   : > { %v3391_v55 = vadd.f32 %v3369_v9, %v3142_v38 }
 0x247   : > { %v3438_v44 = vadd.f32 %v3437_v2, %v3391_v55  ;;  %v3460_v11 = vmul.f32 %v3391_v55, %v3391_v55  ;;  %v3371_v49 = vpop.f32.mrf.mxu0 }
 0x248   : > { %v2745_v39 = vpop.f32.mrf.mxu2  ;;  %v2554_v25 = vpop.f32.mrf.mxu1 }
 0x249   : > { %v2766_v4 = vadd.f32 %v2745_v39, %v2572_v37  ;;  %v3475_v6 = vadd.f32 %v3474_v48, %v3460_v11  ;;  %v2573_v34 = vadd.f32 %v2554_v25, %v5505_v60 }
 0x24a   : > { %v3122_v16 = vpop.f32.mrf.mxu3 }
 0x24b   : > { %v3143_v61 = vadd.f32 %v3122_v16, %v2766_v4 }
 0x24d   : > { %v3392_v28 = vadd.f32 %v3371_v49, %v3143_v61 }
 0x24f   : > { %v4290_v10 = vpack.c.bf16 %v3392_v28, %v3391_v55  ;;  %v3439_v8 = vadd.f32 %v3438_v44, %v3392_v28  ;;  %v3461_v20 = vmul.f32 %v3392_v28, %v3392_v28  ;;  %v3374_v47 = vpop.f32.mrf.mxu0 }
 0x250   : > { %v2748_v46 = vpop.f32.mrf.mxu2  ;;  %v2556_v30 = vpop.f32.mrf.mxu1 }
 0x251   : > { %v2767_v31 = vadd.f32 %v2748_v46, %v2573_v34  ;;  %4309 = vst [vmem:[%s4581_s18 + $0x30] sm:$0xff] %v4290_v10   ;;  %v3476_v53 = vadd.f32 %v3475_v6, %v3461_v20  ;;  %v2574_v5 = vadd.f32 %v2556_v30, %v5508_v14 }
 0x252   : > { %v3125_v15 = vpop.f32.mrf.mxu3 }
 0x253   : > { %v3144_v12 = vadd.f32 %v3125_v15, %v2767_v31 }
 0x255   : > { %v3393_v21 = vadd.f32 %v3374_v47, %v3144_v12 }
 0x257   : > { %v3440_v63 = vadd.f32 %v3439_v8, %v3393_v21  ;;  %v3462_v18 = vmul.f32 %v3393_v21, %v3393_v21  ;;  %v3376_v29 = vpop.f32.mrf.mxu0 }
 0x258   : > { %v2750_v7 = vpop.f32.mrf.mxu2 }
 0x259   : > { %v2768_v33 = vadd.f32 %v2750_v7, %v2574_v5  ;;  %v3477_v60 = vadd.f32 %v3476_v53, %v3462_v18 }
 0x25a   : > { %v3127_v17 = vpop.f32.mrf.mxu3 }
 0x25b   : > { %v3145_v13 = vadd.f32 %v3127_v17, %v2768_v33 }
 0x25d   : > { %v3394_v40 = vadd.f32 %v3376_v29, %v3145_v13 }
 0x25f   : > { %v4295_v24 = vpack.c.bf16 %v3394_v40, %v3393_v21  ;;  %v3441_v1 = vadd.f32 %v3440_v63, %v3394_v40  ;;  %v3463_v56 = vmul.f32 %v3394_v40, %v3394_v40 }
 0x261   : > { %4310 = vst [vmem:[%s4581_s18 + $0x38] sm:$0xff] %v4295_v24   ;;  %v3442_v36 = vrot.slane %v3441_v1, 4  ;;  %v3478_v43 = vadd.f32 %v3477_v60, %v3463_v56 }
 0x263   : > { %v3443_v45 = vadd.f32 %v3442_v36, %v3441_v1  ;;  %v3479_v32 = vrot.slane %v3478_v43, 4 }
 0x265   : > { %v3444_v0 = vrot.slane %v3443_v45, 2  ;;  %v3480_v14 = vadd.f32 %v3479_v32, %v3478_v43 }
 0x267   : > { %v3445_v62 = vadd.f32 %v3444_v0, %v3443_v45  ;;  %v3481_v50 = vrot.slane %v3480_v14, 2 }
 0x269   : > { %v3446_v41 = vrot.slane %v3445_v62, 1  ;;  %v3482_v51 = vadd.f32 %v3481_v50, %v3480_v14 }
 0x26b   : > { %v3483_v3 = vrot.slane %v3482_v51, 1  ;;  %v3447_v27 = vadd.f32 %v3446_v41, %v3445_v62 }
 0x26d   : > { %v3484_v35 = vadd.f32 %v3483_v3, %v3482_v51 }
 0x26f   : > { %v3486_v59 = vsel %vm758_vm4, %v3447_v27, %v3484_v35 }
 0x270   : > { %3487 = vst [vmem:[%s4605_s19] sm:$0x3] %v3486_v59 }
 0x271 PF: > { %s18_s28 = sadd.s32 1, %s4419_s28   ;;  %s5573_s24 = smov %s4411_s26 }
 0x272   : > { %p15_p2 = scmp.ge.s32.totalorder %s18_s28, 6   ;;  %s5574_s25 = smov %s4415_s27 }
 0x273   : > { %s5575_s26 = smov %s5578_s29  ;;  %s5576_s27 = smov %s5582_s30 }
 0x274   :  { %17 = sbr.rel (!%p15_p2) target bundleno = 3 (0x3), region = 112 }

</bundles_post_ra>
